<compile_context>
chip_gen: v6e
topology: v6e:2x2x1
jax: 0.10.0
libtpu: 0.0.40
codegen_flags: <defaults>
</compile_context>

<pallas_src>
import math
from collections import namedtuple
from functools import partial

import numpy as np

import jax
import jax.numpy as jnp
from jax.experimental import pallas as pl
from jax.experimental.pallas import tpu as pltpu


_K = 5        # conv kernel size used throughout the network
_STRIDE = 2   # transpose-conv stride
_PAD = 2      # conv / transpose-conv padding
_LANE = 128   # TPU lane width

# Static network structure: (kind, activation, fused 2x2 max-pool afterwards).
_LAYER_DEFS = (
    ("conv",  "leaky", True),    # conv1 : 6  -> n   @16x16, pool -> 8x8
    ("conv",  "relu",  True),    # conv2 : n  -> 2n  @ 8x8,  pool -> 4x4
    ("conv",  "leaky", False),   # conv3 : 2n -> 2n  @ 4x4
    ("conv",  "leaky", False),   # conv4 : 2n -> 4n  @ 4x4
    ("tconv", "leaky", False),   # tconv1: 4n -> 2n  @ 4x4 -> 8x8
    ("conv",  "leaky", False),   # conv5 : 2n -> 2n  @ 8x8
    ("tconv", "leaky", False),   # tconv2: 2n -> n   @ 8x8 -> 16x16
    ("conv",  "none",  False),   # conv6 : n  -> 2   @16x16
)

_ACTS = {
    "leaky": lambda v: jnp.where(v >= 0, v, 0.01 * v),   # nn.LeakyReLU default
    "relu":  lambda v: jnp.maximum(v, 0.0),
    "none":  lambda v: v,
}

_Layer = namedtuple(
    "_Layer",
    "kind act pooled h_in w_in cin cin_pad h_out w_out cout cout_pad")


# ---------------------------------------------------------------------------
# Static plan: per-layer geometry with channel counts padded so W*C_pad is a
# multiple of 128 for every activation (including post-pool widths).
# ---------------------------------------------------------------------------
def _pad_channels(c, w_min):
    cp = c
    while (w_min * cp) % _LANE:
        cp += 1
    return cp


def _make_plan(n, h, w):
    chans = [(6, n), (n, 2 * n), (2 * n, 2 * n), (2 * n, 4 * n),
             (4 * n, 2 * n), (2 * n, 2 * n), (2 * n, n), (n, 2)]
    plan = []
    hh, ww = h, w
    cin_pad = _pad_channels(6, w)
    for (kind, act, pooled), (ci, co) in zip(_LAYER_DEFS, chans):
        if kind == "conv":
            h_out, w_out = hh, ww
        else:
            h_out, w_out = _STRIDE * hh, _STRIDE * ww
        w_min = w_out // 2 if pooled else w_out
        cout_pad = _pad_channels(co, w_min)
        plan.append(_Layer(kind, act, pooled, hh, ww, ci, cin_pad,
                           h_out, w_out, co, cout_pad))
        if pooled:
            hh, ww = h_out // 2, w_out // 2
        else:
            hh, ww = h_out, w_out
        cin_pad = cout_pad
    return tuple(plan)


# ---------------------------------------------------------------------------
# The fused kernel: full FCN forward for B stacked images per grid step.
# Activations live as (B*H, W*C_pad) f32 values; weights stay resident in
# VMEM (constant index maps); all matmul operands are bf16, accumulation f32.
# ---------------------------------------------------------------------------
def _make_kernel(plan, b_imgs):

    def kernel(x_ref, *refs):
        out_ref = refs[-1]
        prefs = refs[:-1]

        a = x_ref[0]                                   # (B*H0, W0*C0_pad) f32
        idx = 0
        for lay in plan:
            act = _ACTS[lay.act]
            cw_ref = prefs[idx]; idx += 1
            rs_ref = None
            if lay.kind == "tconv":
                rs_ref = prefs[idx]; idx += 1
            b_ref = prefs[idx]; idx += 1

            wc = lay.w_out * lay.cout_pad              # lane width of output
            # One wide MXU matmul per layer: all 5 kh taps at once.
            t = jnp.dot(a.astype(jnp.bfloat16), cw_ref[...],
                        preferred_element_type=jnp.float32)   # (B*Hin, 5*wc)

            if lay.kind == "conv":
                # Row taps via sublane rolls (XLU) + edge mask; tap k=2 is the
                # unshifted one and seeds the accumulator (no zeros init).
                h = lay.h_in
                m = b_imgs * h
                r = jax.lax.broadcasted_iota(jnp.int32, (m, wc), 0) % h
                y = t[:, 2 * wc:3 * wc]
                for k in (0, 1, 3, 4):
                    off = k - _PAD
                    tk = pltpu.roll(t[:, k * wc:(k + 1) * wc],
                                    shift=(-off) % m, axis=0)
                    ok = jnp.logical_and(r + off >= 0, r + off < h)
                    y = y + jnp.where(ok, tk, 0.0)
            else:
                # tconv: strided row-upsample kept as tiny selector matmuls
                # (block-diagonal over the B stacked images).
                y = jnp.dot(rs_ref[0], t[:, :wc].astype(jnp.bfloat16),
                            preferred_element_type=jnp.float32)
                for k in range(1, _K):
                    y = y + jnp.dot(rs_ref[k],
                                    t[:, k * wc:(k + 1) * wc].astype(jnp.bfloat16),
                                    preferred_element_type=jnp.float32)

            y = act(y + b_ref[...])

            if lay.pooled:
                # Fused MaxPool2d(2, 2): row-pair max via a sublane roll, even
                # rows kept with one block-diagonal selector matmul, then the
                # column-block max via the even/odd column selectors.
                re_ref = prefs[idx]
                ce_ref = prefs[idx + 1]
                co_ref = prefs[idx + 2]
                idx += 3
                rows = b_imgs * lay.h_out
                rp = jnp.maximum(y, pltpu.roll(y, shift=rows - 1, axis=0))
                rp = jnp.dot(re_ref[...], rp.astype(jnp.bfloat16),
                             preferred_element_type=jnp.float32)
                rp = rp.astype(jnp.bfloat16)
                y = jnp.maximum(
                    jnp.dot(rp, ce_ref[...], preferred_element_type=jnp.float32),
                    jnp.dot(rp, co_ref[...], preferred_element_type=jnp.float32))
            a = y

        out_ref[0] = a.astype(out_ref.dtype)

    return kernel


def _const_spec(shape):
    nd = len(shape)
    return pl.BlockSpec(shape, lambda i, _nd=nd: (0,) * _nd)


@partial(jax.jit, static_argnames=("n_feat", "imgs_per_step"))
def fcn_forward(x_nchw, flat_params, *, n_feat=6, imgs_per_step=4):
    n, c, h, w = x_nchw.shape
    if n % imgs_per_step:
        raise ValueError("batch must be divisible by imgs_per_step")
    plan = _make_plan(n_feat, h, w)
    b_imgs = imgs_per_step
    n_steps = n // b_imgs

    # NCHW -> per-step 2D (B*H, W*C_pad) layout (channels padded on the lanes).
    c0p = plan[0].cin_pad
    x = jnp.transpose(x_nchw, (0, 2, 3, 1))                       # NHWC
    x = jnp.pad(x, ((0, 0), (0, 0), (0, 0), (0, c0p - c)))
    x2d = x.reshape(n_steps, b_imgs * h, w * c0p)

    last = plan[-1]
    rows_out = b_imgs * last.h_out
    wc_out = last.w_out * last.cout_pad                           # 128 lanes
    out_shape = jax.ShapeDtypeStruct((n_steps, rows_out, wc_out), jnp.float32)

    in_specs = [pl.BlockSpec((1, b_imgs * h, w * c0p), lambda i: (i, 0, 0))]
    in_specs += [_const_spec(p.shape) for p in flat_params]
    out_spec = pl.BlockSpec((1, rows_out, wc_out), lambda i: (i, 0, 0))

    y2d = pl.pallas_call(
        _make_kernel(plan, b_imgs),
        grid=(n_steps,),
        in_specs=in_specs,
        out_specs=out_spec,
        out_shape=out_shape,
        compiler_params=pltpu.CompilerParams(
            dimension_semantics=("parallel",),
            vmem_limit_bytes=32 * 1024 * 1024),
    )(x2d, *flat_params)

    # back to PyTorch's NCHW convention, dropping the padded output channels
    y = y2d.reshape(n, last.h_out, last.w_out, last.cout_pad)[..., :last.cout]
    return jnp.transpose(y, (0, 3, 1, 2))


# ---------------------------------------------------------------------------
# Parameter / structural-matrix construction (init time, plain numpy).
# ---------------------------------------------------------------------------
def _shift_eye(rows, cols, offset):
    m = np.zeros((rows, cols), np.float32)
    for r in range(rows):
        c = r + offset
        if 0 <= c < cols:
            m[r, c] = 1.0
    return m


def _strided_place(n_in, n_out, stride, offset):
    # (n_out, n_in) with [stride*i + offset, i] = 1 (out-of-range rows dropped)
    m = np.zeros((n_out, n_in), np.float32)
    for i in range(n_in):
        o = stride * i + offset
        if 0 <= o < n_out:
            m[o, i] = 1.0
    return m


def _conv_layer_mats(w_hwio, b, lay):
    """Conv2d(k=5, s=1, p=2) as CW_cat (W*Cin_pad, 5*W*Cout_pad) + bias row."""
    wnp = np.asarray(w_hwio, np.float32)
    wp = np.zeros((_K, _K, lay.cin_pad, lay.cout_pad), np.float32)
    wp[:, :, :lay.cin, :lay.cout] = wnp
    W = lay.w_in
    blocks = []
    for kh in range(_K):
        m = np.zeros((W * lay.cin_pad, W * lay.cout_pad), np.float32)
        for kw in range(_K):
            s = _shift_eye(W, W, _PAD - kw)      # wi = wo + kw - 2 (zero pad)
            m += np.kron(s, wp[kh, kw])
        blocks.append(m)
    cw_cat = np.concatenate(blocks, axis=1)
    bias = np.zeros((1, lay.w_out * lay.cout_pad), np.float32)
    for wo in range(lay.w_out):
        bias[0, wo * lay.cout_pad:wo * lay.cout_pad + lay.cout] = np.asarray(b)
    return jnp.asarray(cw_cat, jnp.bfloat16), jnp.asarray(bias, jnp.float32)


def _tconv_layer_mats(w_t, b, lay):
    """ConvTranspose2d(k=5, s=2, p=2, op=1): CW_cat (Win*Cin_pad, 5*Wout*Cout_pad)."""
    wnp = np.asarray(w_t, np.float32)
    wp = np.zeros((lay.cin_pad, lay.cout_pad, _K, _K), np.float32)
    wp[:lay.cin, :lay.cout] = wnp
    Wi, Wo = lay.w_in, lay.w_out
    blocks = []
    for ky in range(_K):
        m = np.zeros((Wi * lay.cin_pad, Wo * lay.cout_pad), np.float32)
        for kx in range(_K):
            # S[wi, wo] = 1 iff wo = 2*wi + kx - 2
            s = _strided_place(Wi, Wo, _STRIDE, kx - _PAD).T
            m += np.kron(s, wp[:, :, ky, kx])
        blocks.append(m)
    cw_cat = np.concatenate(blocks, axis=1)
    bias = np.zeros((1, Wo * lay.cout_pad), np.float32)
    for wo in range(Wo):
        bias[0, wo * lay.cout_pad:wo * lay.cout_pad + lay.cout] = np.asarray(b)
    return jnp.asarray(cw_cat, jnp.bfloat16), jnp.asarray(bias, jnp.float32)


def _tconv_rs(lay, b_imgs):
    """Strided row-upsample selectors, block-diagonal over stacked images."""
    eye_b = np.eye(b_imgs, dtype=np.float32)
    rs = np.stack([np.kron(eye_b,
                           _strided_place(lay.h_in, lay.h_out, _STRIDE, ky - _PAD))
                   for ky in range(_K)])
    return jnp.asarray(rs, jnp.bfloat16)


def _pool_mats(lay, b_imgs):
    """Even-row selector (block-diag over B) + even/odd column-block selectors."""
    H, W, Cp = lay.h_out, lay.w_out, lay.cout_pad
    Ho, Wo = H // 2, W // 2
    re1 = np.zeros((Ho, H), np.float32)
    re1[np.arange(Ho), 2 * np.arange(Ho)] = 1.0
    re = np.kron(np.eye(b_imgs, dtype=np.float32), re1)
    pe = np.zeros((W, Wo), np.float32); pe[2 * np.arange(Wo), np.arange(Wo)] = 1.0
    po = np.zeros((W, Wo), np.float32); po[2 * np.arange(Wo) + 1, np.arange(Wo)] = 1.0
    ce = np.kron(pe, np.eye(Cp, dtype=np.float32))
    co = np.kron(po, np.eye(Cp, dtype=np.float32))
    return (jnp.asarray(re, jnp.bfloat16),
            jnp.asarray(ce, jnp.bfloat16),
            jnp.asarray(co, jnp.bfloat16))


def _init_conv(key, c_in, c_out, k=_K):
    k1, k2 = jax.random.split(key)
    bound = 1.0 / math.sqrt(c_in * k * k)
    w = jax.random.uniform(k1, (k, k, c_in, c_out), jnp.float32, -bound, bound)  # HWIO
    b = jax.random.uniform(k2, (c_out,), jnp.float32, -bound, bound)
    return w, b


def _init_tconv(key, c_in, c_out, k=_K):
    k1, k2 = jax.random.split(key)
    bound = 1.0 / math.sqrt(c_out * k * k)
    w = jax.random.uniform(k1, (c_in, c_out, k, k), jnp.float32, -bound, bound)  # torch layout
    b = jax.random.uniform(k2, (c_out,), jnp.float32, -bound, bound)
    return w, b


def init_fcn_params(key, n=6, h=16, w=16, imgs_per_step=4):
    """Returns (flat tuple of kernel operands, raw per-layer weights for the reference)."""
    plan = _make_plan(n, h, w)
    keys = jax.random.split(key, len(plan))
    flat, raw = [], []
    for i, lay in enumerate(plan):
        if lay.kind == "conv":
            wgt, b = _init_conv(keys[i], lay.cin, lay.cout)
            cw, bias = _conv_layer_mats(wgt, b, lay)
            flat.append(cw)
        else:
            wgt, b = _init_tconv(keys[i], lay.cin, lay.cout)
            cw, bias = _tconv_layer_mats(wgt, b, lay)
            flat.append(cw)
            flat.append(_tconv_rs(lay, imgs_per_step))
        flat.append(bias)
        raw.append((lay.kind, wgt, b))
        if lay.pooled:
            flat += list(_pool_mats(lay, imgs_per_step))
    return tuple(flat), raw


# ---------------------------------------------------------------------------
# Pure-JAX reference (XLA convs) used only for a correctness check in main.
# ---------------------------------------------------------------------------
def _ref_forward(x_nchw, raw):
    hp = jax.lax.Precision.HIGHEST
    x = jnp.transpose(x_nchw, (0, 2, 3, 1))       # NHWC
    for (kind, wgt, b), (_, act_name, pooled) in zip(raw, _LAYER_DEFS):
        if kind == "conv":
            y = jax.lax.conv_general_dilated(
                x, wgt, (1, 1), ((2, 2), (2, 2)),
                dimension_numbers=("NHWC", "HWIO", "NHWC"), precision=hp)
        else:
            w_eff = jnp.transpose(wgt[:, :, ::-1, ::-1], (2, 3, 0, 1))   # flipped, HWIO
            y = jax.lax.conv_general_dilated(
                x, w_eff, (1, 1), ((2, 3), (2, 3)), lhs_dilation=(2, 2),
                dimension_numbers=("NHWC", "HWIO", "NHWC"), precision=hp)
        y = _ACTS[act_name](y + b)
        if pooled:
            y = jax.lax.reduce_window(y, -jnp.inf, jax.lax.max,
                                      (1, 2, 2, 1), (1, 2, 2, 1), "VALID")
        x = y
    return jnp.transpose(x, (0, 3, 1, 2))


# ---------------------------------------------------------------------------
if __name__ == "__main__":
    key = jax.random.PRNGKey(0)
    xkey, pkey = jax.random.split(key)

    # Input matches nn.Conv2d(in_channels=6, ...): NCHW = (8, 6, 16, 16);
    # 4 images are stacked per grid step -> grid=(2,) (even, v7x-friendly).
    N, H, W = 8, 16, 16
    x = jax.random.normal(xkey, (N, 6, H, W), jnp.float32)
    flat_params, raw_params = init_fcn_params(pkey, n=6, h=H, w=W, imgs_per_step=4)

    out = fcn_forward(x, flat_params, n_feat=6, imgs_per_step=4)
    out = jax.block_until_ready(out)

    assert out.shape == (N, 2, H, W), out.shape
    assert out.dtype == jnp.float32
    assert bool(jnp.all(jnp.isfinite(out)))

    ref = _ref_forward(x, raw_params)
    err = float(jnp.max(jnp.abs(out - ref)))
    assert err < 1e-2, f"max abs diff vs reference = {err}"

    print("KERNEL_OK")
</pallas_src>

<mosaic_0001>
module attributes {stable_mosaic.version = 11 : i64} {
  func.func @kernel(%arg0: i32, %arg1: memref<1x64x128xf32, #tpu.memory_space<vmem>>, %arg2: memref<128x1280xbf16, #tpu.memory_space<vmem>>, %arg3: memref<1x256xf32, #tpu.memory_space<vmem>>, %arg4: memref<32x64xbf16, #tpu.memory_space<vmem>>, %arg5: memref<256x128xbf16, #tpu.memory_space<vmem>>, %arg6: memref<256x128xbf16, #tpu.memory_space<vmem>>, %arg7: memref<128x1280xbf16, #tpu.memory_space<vmem>>, %arg8: memref<1x256xf32, #tpu.memory_space<vmem>>, %arg9: memref<16x32xbf16, #tpu.memory_space<vmem>>, %arg10: memref<256x128xbf16, #tpu.memory_space<vmem>>, %arg11: memref<256x128xbf16, #tpu.memory_space<vmem>>, %arg12: memref<128x640xbf16, #tpu.memory_space<vmem>>, %arg13: memref<1x128xf32, #tpu.memory_space<vmem>>, %arg14: memref<128x640xbf16, #tpu.memory_space<vmem>>, %arg15: memref<1x128xf32, #tpu.memory_space<vmem>>, %arg16: memref<128x640xbf16, #tpu.memory_space<vmem>>, %arg17: memref<5x32x16xbf16, #tpu.memory_space<vmem>>, %arg18: memref<1x128xf32, #tpu.memory_space<vmem>>, %arg19: memref<128x640xbf16, #tpu.memory_space<vmem>>, %arg20: memref<1x128xf32, #tpu.memory_space<vmem>>, %arg21: memref<128x640xbf16, #tpu.memory_space<vmem>>, %arg22: memref<5x64x32xbf16, #tpu.memory_space<vmem>>, %arg23: memref<1x128xf32, #tpu.memory_space<vmem>>, %arg24: memref<128x640xbf16, #tpu.memory_space<vmem>>, %arg25: memref<1x128xf32, #tpu.memory_space<vmem>>, %arg26: memref<1x64x128xf32, #tpu.memory_space<vmem>>) attributes {dimension_semantics = [#tpu.dimension_semantics<parallel>], iteration_bounds = array<i64: 2>, scalar_prefetch = 0 : i64, scratch_operands = 0 : i64, tpu.core_type = #tpu.core_type<tc>, window_params = [{transform_indices = @transform_0, window_bounds = array<i64: 1, 64, 128>}, {pipeline_mode = #tpu.pipeline_mode<synchronous>, transform_indices = @transform_1, window_bounds = array<i64: 128, 1280>}, {pipeline_mode = #tpu.pipeline_mode<synchronous>, transform_indices = @transform_2, window_bounds = array<i64: 1, 256>}, {pipeline_mode = #tpu.pipeline_mode<synchronous>, transform_indices = @transform_3, window_bounds = array<i64: 32, 64>}, {pipeline_mode = #tpu.pipeline_mode<synchronous>, transform_indices = @transform_4, window_bounds = array<i64: 256, 128>}, {pipeline_mode = #tpu.pipeline_mode<synchronous>, transform_indices = @transform_5, window_bounds = array<i64: 256, 128>}, {pipeline_mode = #tpu.pipeline_mode<synchronous>, transform_indices = @transform_6, window_bounds = array<i64: 128, 1280>}, {pipeline_mode = #tpu.pipeline_mode<synchronous>, transform_indices = @transform_7, window_bounds = array<i64: 1, 256>}, {pipeline_mode = #tpu.pipeline_mode<synchronous>, transform_indices = @transform_8, window_bounds = array<i64: 16, 32>}, {pipeline_mode = #tpu.pipeline_mode<synchronous>, transform_indices = @transform_9, window_bounds = array<i64: 256, 128>}, {pipeline_mode = #tpu.pipeline_mode<synchronous>, transform_indices = @transform_10, window_bounds = array<i64: 256, 128>}, {pipeline_mode = #tpu.pipeline_mode<synchronous>, transform_indices = @transform_11, window_bounds = array<i64: 128, 640>}, {pipeline_mode = #tpu.pipeline_mode<synchronous>, transform_indices = @transform_12, window_bounds = array<i64: 1, 128>}, {pipeline_mode = #tpu.pipeline_mode<synchronous>, transform_indices = @transform_13, window_bounds = array<i64: 128, 640>}, {pipeline_mode = #tpu.pipeline_mode<synchronous>, transform_indices = @transform_14, window_bounds = array<i64: 1, 128>}, {pipeline_mode = #tpu.pipeline_mode<synchronous>, transform_indices = @transform_15, window_bounds = array<i64: 128, 640>}, {pipeline_mode = #tpu.pipeline_mode<synchronous>, transform_indices = @transform_16, window_bounds = array<i64: 5, 32, 16>}, {pipeline_mode = #tpu.pipeline_mode<synchronous>, transform_indices = @transform_17, window_bounds = array<i64: 1, 128>}, {pipeline_mode = #tpu.pipeline_mode<synchronous>, transform_indices = @transform_18, window_bounds = array<i64: 128, 640>}, {pipeline_mode = #tpu.pipeline_mode<synchronous>, transform_indices = @transform_19, window_bounds = array<i64: 1, 128>}, {pipeline_mode = #tpu.pipeline_mode<synchronous>, transform_indices = @transform_20, window_bounds = array<i64: 128, 640>}, {pipeline_mode = #tpu.pipeline_mode<synchronous>, transform_indices = @transform_21, window_bounds = array<i64: 5, 64, 32>}, {pipeline_mode = #tpu.pipeline_mode<synchronous>, transform_indices = @transform_22, window_bounds = array<i64: 1, 128>}, {pipeline_mode = #tpu.pipeline_mode<synchronous>, transform_indices = @transform_23, window_bounds = array<i64: 128, 640>}, {pipeline_mode = #tpu.pipeline_mode<synchronous>, transform_indices = @transform_24, window_bounds = array<i64: 1, 128>}, {transform_indices = @transform_25, window_bounds = array<i64: 1, 64, 128>}]} {
    %c0 = arith.constant 0 : index
    %c0_0 = arith.constant 0 : index
    %c0_1 = arith.constant 0 : index
    %0 = vector.load %arg1[%c0, %c0_0, %c0_1] : memref<1x64x128xf32, #tpu.memory_space<vmem>>, vector<1x64x128xf32>
    %1 = vector.shape_cast %0 : vector<1x64x128xf32> to vector<64x128xf32>
    %2 = arith.truncf %1 : vector<64x128xf32> to vector<64x128xbf16>
    %c0_2 = arith.constant 0 : index
    %c0_3 = arith.constant 0 : index
    %3 = vector.load %arg2[%c0_2, %c0_3] : memref<128x1280xbf16, #tpu.memory_space<vmem>>, vector<128x1280xbf16>
    %cst = arith.constant dense<0.000000e+00> : vector<64x1280xf32>
    %4 = tpu.matmul %2, %3, %cst {dimension_numbers = #tpu.dot_dimension_numbers<[1], [0], [0], [1], [0, 0, 1, 1], [], []>} : vector<64x128xbf16>, vector<128x1280xbf16>, vector<64x1280xf32> -> vector<64x1280xf32>
    %5 = tpu.iota {dimensions = array<i32: 0>} : vector<64x256xi32>
    %c16_i32 = arith.constant 16 : i32
    %c0_i32 = arith.constant 0 : i32
    %6 = arith.cmpi eq, %c16_i32, %c0_i32 : i32
    %c1_i32 = arith.constant 1 : i32
    %7 = arith.select %6, %c1_i32, %c16_i32 : i32
    %8 = vector.broadcast %7 : i32 to vector<64x256xi32>
    %9 = arith.remsi %5, %8 : vector<64x256xi32>
    %c0_i32_4 = arith.constant 0 : i32
    %10 = vector.broadcast %c0_i32_4 : i32 to vector<64x256xi32>
    %11 = arith.cmpi ne, %9, %10 : vector<64x256xi32>
    %c0_i32_5 = arith.constant 0 : i32
    %12 = vector.broadcast %c0_i32_5 : i32 to vector<64x256xi32>
    %13 = arith.cmpi slt, %9, %12 : vector<64x256xi32>
    %c0_i32_6 = arith.constant 0 : i32
    %14 = arith.cmpi slt, %7, %c0_i32_6 : i32
    %15 = vector.broadcast %14 : i1 to vector<64x256xi1>
    %16 = vector.broadcast %15 : vector<64x256xi1> to vector<64x256xi1>
    %17 = arith.xori %13, %16 : vector<64x256xi1>
    %18 = arith.andi %17, %11 : vector<64x256xi1>
    %19 = vector.broadcast %7 : i32 to vector<64x256xi32>
    %20 = arith.addi %9, %19 : vector<64x256xi32>
    %21 = arith.select %18, %20, %9 : vector<64x256xi1>, vector<64x256xi32>
    %22 = vector.extract_strided_slice %4 {offsets = [0, 512], sizes = [64, 256], strides = [1, 1]} : vector<64x1280xf32> to vector<64x256xf32>
    %23 = vector.extract_strided_slice %4 {offsets = [0, 0], sizes = [64, 256], strides = [1, 1]} : vector<64x1280xf32> to vector<64x256xf32>
    %c2_i32 = arith.constant 2 : i32
    %24 = tpu.dynamic_rotate %23 by %c2_i32 dim 0 : vector<64x256xf32>, i32 -> vector<64x256xf32>
    %c-2_i32 = arith.constant -2 : i32
    %25 = vector.broadcast %c-2_i32 : i32 to vector<64x256xi32>
    %26 = arith.addi %21, %25 : vector<64x256xi32>
    %c0_i32_7 = arith.constant 0 : i32
    %27 = vector.broadcast %c0_i32_7 : i32 to vector<64x256xi32>
    %28 = arith.cmpi sge, %26, %27 : vector<64x256xi32>
    %c-2_i32_8 = arith.constant -2 : i32
    %29 = vector.broadcast %c-2_i32_8 : i32 to vector<64x256xi32>
    %30 = arith.addi %21, %29 : vector<64x256xi32>
    %c16_i32_9 = arith.constant 16 : i32
    %31 = vector.broadcast %c16_i32_9 : i32 to vector<64x256xi32>
    %32 = arith.cmpi slt, %30, %31 : vector<64x256xi32>
    %33 = arith.andi %28, %32 : vector<64x256xi1>
    %cst_10 = arith.constant 0.000000e+00 : f32
    %34 = vector.broadcast %cst_10 : f32 to vector<64x256xf32>
    %35 = arith.select %33, %24, %34 : vector<64x256xi1>, vector<64x256xf32>
    %36 = arith.addf %22, %35 : vector<64x256xf32>
    %37 = vector.extract_strided_slice %4 {offsets = [0, 256], sizes = [64, 256], strides = [1, 1]} : vector<64x1280xf32> to vector<64x256xf32>
    %c1_i32_11 = arith.constant 1 : i32
    %38 = tpu.dynamic_rotate %37 by %c1_i32_11 dim 0 : vector<64x256xf32>, i32 -> vector<64x256xf32>
    %c-1_i32 = arith.constant -1 : i32
    %39 = vector.broadcast %c-1_i32 : i32 to vector<64x256xi32>
    %40 = arith.addi %21, %39 : vector<64x256xi32>
    %c0_i32_12 = arith.constant 0 : i32
    %41 = vector.broadcast %c0_i32_12 : i32 to vector<64x256xi32>
    %42 = arith.cmpi sge, %40, %41 : vector<64x256xi32>
    %c-1_i32_13 = arith.constant -1 : i32
    %43 = vector.broadcast %c-1_i32_13 : i32 to vector<64x256xi32>
    %44 = arith.addi %21, %43 : vector<64x256xi32>
    %c16_i32_14 = arith.constant 16 : i32
    %45 = vector.broadcast %c16_i32_14 : i32 to vector<64x256xi32>
    %46 = arith.cmpi slt, %44, %45 : vector<64x256xi32>
    %47 = arith.andi %42, %46 : vector<64x256xi1>
    %cst_15 = arith.constant 0.000000e+00 : f32
    %48 = vector.broadcast %cst_15 : f32 to vector<64x256xf32>
    %49 = arith.select %47, %38, %48 : vector<64x256xi1>, vector<64x256xf32>
    %50 = arith.addf %36, %49 : vector<64x256xf32>
    %51 = vector.extract_strided_slice %4 {offsets = [0, 768], sizes = [64, 256], strides = [1, 1]} : vector<64x1280xf32> to vector<64x256xf32>
    %c63_i32 = arith.constant 63 : i32
    %52 = tpu.dynamic_rotate %51 by %c63_i32 dim 0 : vector<64x256xf32>, i32 -> vector<64x256xf32>
    %c1_i32_16 = arith.constant 1 : i32
    %53 = vector.broadcast %c1_i32_16 : i32 to vector<64x256xi32>
    %54 = arith.addi %21, %53 : vector<64x256xi32>
    %c0_i32_17 = arith.constant 0 : i32
    %55 = vector.broadcast %c0_i32_17 : i32 to vector<64x256xi32>
    %56 = arith.cmpi sge, %54, %55 : vector<64x256xi32>
    %c1_i32_18 = arith.constant 1 : i32
    %57 = vector.broadcast %c1_i32_18 : i32 to vector<64x256xi32>
    %58 = arith.addi %21, %57 : vector<64x256xi32>
    %c16_i32_19 = arith.constant 16 : i32
    %59 = vector.broadcast %c16_i32_19 : i32 to vector<64x256xi32>
    %60 = arith.cmpi slt, %58, %59 : vector<64x256xi32>
    %61 = arith.andi %56, %60 : vector<64x256xi1>
    %cst_20 = arith.constant 0.000000e+00 : f32
    %62 = vector.broadcast %cst_20 : f32 to vector<64x256xf32>
    %63 = arith.select %61, %52, %62 : vector<64x256xi1>, vector<64x256xf32>
    %64 = arith.addf %50, %63 : vector<64x256xf32>
    %65 = vector.extract_strided_slice %4 {offsets = [0, 1024], sizes = [64, 256], strides = [1, 1]} : vector<64x1280xf32> to vector<64x256xf32>
    %c62_i32 = arith.constant 62 : i32
    %66 = tpu.dynamic_rotate %65 by %c62_i32 dim 0 : vector<64x256xf32>, i32 -> vector<64x256xf32>
    %c2_i32_21 = arith.constant 2 : i32
    %67 = vector.broadcast %c2_i32_21 : i32 to vector<64x256xi32>
    %68 = arith.addi %21, %67 : vector<64x256xi32>
    %c0_i32_22 = arith.constant 0 : i32
    %69 = vector.broadcast %c0_i32_22 : i32 to vector<64x256xi32>
    %70 = arith.cmpi sge, %68, %69 : vector<64x256xi32>
    %c2_i32_23 = arith.constant 2 : i32
    %71 = vector.broadcast %c2_i32_23 : i32 to vector<64x256xi32>
    %72 = arith.addi %21, %71 : vector<64x256xi32>
    %c16_i32_24 = arith.constant 16 : i32
    %73 = vector.broadcast %c16_i32_24 : i32 to vector<64x256xi32>
    %74 = arith.cmpi slt, %72, %73 : vector<64x256xi32>
    %75 = arith.andi %70, %74 : vector<64x256xi1>
    %cst_25 = arith.constant 0.000000e+00 : f32
    %76 = vector.broadcast %cst_25 : f32 to vector<64x256xf32>
    %77 = arith.select %75, %66, %76 : vector<64x256xi1>, vector<64x256xf32>
    %78 = arith.addf %64, %77 : vector<64x256xf32>
    %c0_26 = arith.constant 0 : index
    %c0_27 = arith.constant 0 : index
    %79 = vector.load %arg3[%c0_26, %c0_27] : memref<1x256xf32, #tpu.memory_space<vmem>>, vector<1x256xf32>
    %80 = vector.broadcast %79 : vector<1x256xf32> to vector<64x256xf32>
    %81 = arith.addf %78, %80 : vector<64x256xf32>
    %cst_28 = arith.constant 0.000000e+00 : f32
    %82 = vector.broadcast %cst_28 : f32 to vector<64x256xf32>
    %83 = arith.cmpf oge, %81, %82 : vector<64x256xf32>
    %cst_29 = arith.constant 0.00999999977 : f32
    %84 = vector.broadcast %cst_29 : f32 to vector<64x256xf32>
    %85 = arith.mulf %84, %81 : vector<64x256xf32>
    %86 = arith.select %83, %81, %85 : vector<64x256xi1>, vector<64x256xf32>
    %c63_i32_30 = arith.constant 63 : i32
    %87 = tpu.dynamic_rotate %86 by %c63_i32_30 dim 0 : vector<64x256xf32>, i32 -> vector<64x256xf32>
    %88 = arith.maximumf %86, %87 : vector<64x256xf32>
    %c0_31 = arith.constant 0 : index
    %c0_32 = arith.constant 0 : index
    %89 = vector.load %arg4[%c0_31, %c0_32] : memref<32x64xbf16, #tpu.memory_space<vmem>>, vector<32x64xbf16>
    %90 = arith.truncf %88 : vector<64x256xf32> to vector<64x256xbf16>
    %cst_33 = arith.constant dense<0.000000e+00> : vector<32x256xf32>
    %91 = tpu.matmul %89, %90, %cst_33 {dimension_numbers = #tpu.dot_dimension_numbers<[1], [0], [0], [1], [0, 0, 1, 1], [], []>} : vector<32x64xbf16>, vector<64x256xbf16>, vector<32x256xf32> -> vector<32x256xf32>
    %92 = arith.truncf %91 : vector<32x256xf32> to vector<32x256xbf16>
    %c0_34 = arith.constant 0 : index
    %c0_35 = arith.constant 0 : index
    %93 = vector.load %arg5[%c0_34, %c0_35] : memref<256x128xbf16, #tpu.memory_space<vmem>>, vector<256x128xbf16>
    %cst_36 = arith.constant dense<0.000000e+00> : vector<32x128xf32>
    %94 = tpu.matmul %92, %93, %cst_36 {dimension_numbers = #tpu.dot_dimension_numbers<[1], [0], [0], [1], [0, 0, 1, 1], [], []>} : vector<32x256xbf16>, vector<256x128xbf16>, vector<32x128xf32> -> vector<32x128xf32>
    %c0_37 = arith.constant 0 : index
    %c0_38 = arith.constant 0 : index
    %95 = vector.load %arg6[%c0_37, %c0_38] : memref<256x128xbf16, #tpu.memory_space<vmem>>, vector<256x128xbf16>
    %cst_39 = arith.constant dense<0.000000e+00> : vector<32x128xf32>
    %96 = tpu.matmul %92, %95, %cst_39 {dimension_numbers = #tpu.dot_dimension_numbers<[1], [0], [0], [1], [0, 0, 1, 1], [], []>} : vector<32x256xbf16>, vector<256x128xbf16>, vector<32x128xf32> -> vector<32x128xf32>
    %97 = arith.maximumf %94, %96 : vector<32x128xf32>
    %98 = arith.truncf %97 : vector<32x128xf32> to vector<32x128xbf16>
    %c0_40 = arith.constant 0 : index
    %c0_41 = arith.constant 0 : index
    %99 = vector.load %arg7[%c0_40, %c0_41] : memref<128x1280xbf16, #tpu.memory_space<vmem>>, vector<128x1280xbf16>
    %cst_42 = arith.constant dense<0.000000e+00> : vector<32x1280xf32>
    %100 = tpu.matmul %98, %99, %cst_42 {dimension_numbers = #tpu.dot_dimension_numbers<[1], [0], [0], [1], [0, 0, 1, 1], [], []>} : vector<32x128xbf16>, vector<128x1280xbf16>, vector<32x1280xf32> -> vector<32x1280xf32>
    %101 = tpu.iota {dimensions = array<i32: 0>} : vector<32x256xi32>
    %c8_i32 = arith.constant 8 : i32
    %c0_i32_43 = arith.constant 0 : i32
    %102 = arith.cmpi eq, %c8_i32, %c0_i32_43 : i32
    %c1_i32_44 = arith.constant 1 : i32
    %103 = arith.select %102, %c1_i32_44, %c8_i32 : i32
    %104 = vector.broadcast %103 : i32 to vector<32x256xi32>
    %105 = arith.remsi %101, %104 : vector<32x256xi32>
    %c0_i32_45 = arith.constant 0 : i32
    %106 = vector.broadcast %c0_i32_45 : i32 to vector<32x256xi32>
    %107 = arith.cmpi ne, %105, %106 : vector<32x256xi32>
    %c0_i32_46 = arith.constant 0 : i32
    %108 = vector.broadcast %c0_i32_46 : i32 to vector<32x256xi32>
    %109 = arith.cmpi slt, %105, %108 : vector<32x256xi32>
    %c0_i32_47 = arith.constant 0 : i32
    %110 = arith.cmpi slt, %103, %c0_i32_47 : i32
    %111 = vector.broadcast %110 : i1 to vector<32x256xi1>
    %112 = vector.broadcast %111 : vector<32x256xi1> to vector<32x256xi1>
    %113 = arith.xori %109, %112 : vector<32x256xi1>
    %114 = arith.andi %113, %107 : vector<32x256xi1>
    %115 = vector.broadcast %103 : i32 to vector<32x256xi32>
    %116 = arith.addi %105, %115 : vector<32x256xi32>
    %117 = arith.select %114, %116, %105 : vector<32x256xi1>, vector<32x256xi32>
    %118 = vector.extract_strided_slice %100 {offsets = [0, 512], sizes = [32, 256], strides = [1, 1]} : vector<32x1280xf32> to vector<32x256xf32>
    %119 = vector.extract_strided_slice %100 {offsets = [0, 0], sizes = [32, 256], strides = [1, 1]} : vector<32x1280xf32> to vector<32x256xf32>
    %c2_i32_48 = arith.constant 2 : i32
    %120 = tpu.dynamic_rotate %119 by %c2_i32_48 dim 0 : vector<32x256xf32>, i32 -> vector<32x256xf32>
    %c-2_i32_49 = arith.constant -2 : i32
    %121 = vector.broadcast %c-2_i32_49 : i32 to vector<32x256xi32>
    %122 = arith.addi %117, %121 : vector<32x256xi32>
    %c0_i32_50 = arith.constant 0 : i32
    %123 = vector.broadcast %c0_i32_50 : i32 to vector<32x256xi32>
    %124 = arith.cmpi sge, %122, %123 : vector<32x256xi32>
    %c-2_i32_51 = arith.constant -2 : i32
    %125 = vector.broadcast %c-2_i32_51 : i32 to vector<32x256xi32>
    %126 = arith.addi %117, %125 : vector<32x256xi32>
    %c8_i32_52 = arith.constant 8 : i32
    %127 = vector.broadcast %c8_i32_52 : i32 to vector<32x256xi32>
    %128 = arith.cmpi slt, %126, %127 : vector<32x256xi32>
    %129 = arith.andi %124, %128 : vector<32x256xi1>
    %cst_53 = arith.constant 0.000000e+00 : f32
    %130 = vector.broadcast %cst_53 : f32 to vector<32x256xf32>
    %131 = arith.select %129, %120, %130 : vector<32x256xi1>, vector<32x256xf32>
    %132 = arith.addf %118, %131 : vector<32x256xf32>
    %133 = vector.extract_strided_slice %100 {offsets = [0, 256], sizes = [32, 256], strides = [1, 1]} : vector<32x1280xf32> to vector<32x256xf32>
    %c1_i32_54 = arith.constant 1 : i32
    %134 = tpu.dynamic_rotate %133 by %c1_i32_54 dim 0 : vector<32x256xf32>, i32 -> vector<32x256xf32>
    %c-1_i32_55 = arith.constant -1 : i32
    %135 = vector.broadcast %c-1_i32_55 : i32 to vector<32x256xi32>
    %136 = arith.addi %117, %135 : vector<32x256xi32>
    %c0_i32_56 = arith.constant 0 : i32
    %137 = vector.broadcast %c0_i32_56 : i32 to vector<32x256xi32>
    %138 = arith.cmpi sge, %136, %137 : vector<32x256xi32>
    %c-1_i32_57 = arith.constant -1 : i32
    %139 = vector.broadcast %c-1_i32_57 : i32 to vector<32x256xi32>
    %140 = arith.addi %117, %139 : vector<32x256xi32>
    %c8_i32_58 = arith.constant 8 : i32
    %141 = vector.broadcast %c8_i32_58 : i32 to vector<32x256xi32>
    %142 = arith.cmpi slt, %140, %141 : vector<32x256xi32>
    %143 = arith.andi %138, %142 : vector<32x256xi1>
    %cst_59 = arith.constant 0.000000e+00 : f32
    %144 = vector.broadcast %cst_59 : f32 to vector<32x256xf32>
    %145 = arith.select %143, %134, %144 : vector<32x256xi1>, vector<32x256xf32>
    %146 = arith.addf %132, %145 : vector<32x256xf32>
    %147 = vector.extract_strided_slice %100 {offsets = [0, 768], sizes = [32, 256], strides = [1, 1]} : vector<32x1280xf32> to vector<32x256xf32>
    %c31_i32 = arith.constant 31 : i32
    %148 = tpu.dynamic_rotate %147 by %c31_i32 dim 0 : vector<32x256xf32>, i32 -> vector<32x256xf32>
    %c1_i32_60 = arith.constant 1 : i32
    %149 = vector.broadcast %c1_i32_60 : i32 to vector<32x256xi32>
    %150 = arith.addi %117, %149 : vector<32x256xi32>
    %c0_i32_61 = arith.constant 0 : i32
    %151 = vector.broadcast %c0_i32_61 : i32 to vector<32x256xi32>
    %152 = arith.cmpi sge, %150, %151 : vector<32x256xi32>
    %c1_i32_62 = arith.constant 1 : i32
    %153 = vector.broadcast %c1_i32_62 : i32 to vector<32x256xi32>
    %154 = arith.addi %117, %153 : vector<32x256xi32>
    %c8_i32_63 = arith.constant 8 : i32
    %155 = vector.broadcast %c8_i32_63 : i32 to vector<32x256xi32>
    %156 = arith.cmpi slt, %154, %155 : vector<32x256xi32>
    %157 = arith.andi %152, %156 : vector<32x256xi1>
    %cst_64 = arith.constant 0.000000e+00 : f32
    %158 = vector.broadcast %cst_64 : f32 to vector<32x256xf32>
    %159 = arith.select %157, %148, %158 : vector<32x256xi1>, vector<32x256xf32>
    %160 = arith.addf %146, %159 : vector<32x256xf32>
    %161 = vector.extract_strided_slice %100 {offsets = [0, 1024], sizes = [32, 256], strides = [1, 1]} : vector<32x1280xf32> to vector<32x256xf32>
    %c30_i32 = arith.constant 30 : i32
    %162 = tpu.dynamic_rotate %161 by %c30_i32 dim 0 : vector<32x256xf32>, i32 -> vector<32x256xf32>
    %c2_i32_65 = arith.constant 2 : i32
    %163 = vector.broadcast %c2_i32_65 : i32 to vector<32x256xi32>
    %164 = arith.addi %117, %163 : vector<32x256xi32>
    %c0_i32_66 = arith.constant 0 : i32
    %165 = vector.broadcast %c0_i32_66 : i32 to vector<32x256xi32>
    %166 = arith.cmpi sge, %164, %165 : vector<32x256xi32>
    %c2_i32_67 = arith.constant 2 : i32
    %167 = vector.broadcast %c2_i32_67 : i32 to vector<32x256xi32>
    %168 = arith.addi %117, %167 : vector<32x256xi32>
    %c8_i32_68 = arith.constant 8 : i32
    %169 = vector.broadcast %c8_i32_68 : i32 to vector<32x256xi32>
    %170 = arith.cmpi slt, %168, %169 : vector<32x256xi32>
    %171 = arith.andi %166, %170 : vector<32x256xi1>
    %cst_69 = arith.constant 0.000000e+00 : f32
    %172 = vector.broadcast %cst_69 : f32 to vector<32x256xf32>
    %173 = arith.select %171, %162, %172 : vector<32x256xi1>, vector<32x256xf32>
    %174 = arith.addf %160, %173 : vector<32x256xf32>
    %c0_70 = arith.constant 0 : index
    %c0_71 = arith.constant 0 : index
    %175 = vector.load %arg8[%c0_70, %c0_71] : memref<1x256xf32, #tpu.memory_space<vmem>>, vector<1x256xf32>
    %176 = vector.broadcast %175 : vector<1x256xf32> to vector<32x256xf32>
    %177 = arith.addf %174, %176 : vector<32x256xf32>
    %cst_72 = arith.constant 0.000000e+00 : f32
    %178 = vector.broadcast %cst_72 : f32 to vector<32x256xf32>
    %179 = arith.maximumf %177, %178 : vector<32x256xf32>
    %c31_i32_73 = arith.constant 31 : i32
    %180 = tpu.dynamic_rotate %179 by %c31_i32_73 dim 0 : vector<32x256xf32>, i32 -> vector<32x256xf32>
    %181 = arith.maximumf %179, %180 : vector<32x256xf32>
    %c0_74 = arith.constant 0 : index
    %c0_75 = arith.constant 0 : index
    %182 = vector.load %arg9[%c0_74, %c0_75] : memref<16x32xbf16, #tpu.memory_space<vmem>>, vector<16x32xbf16>
    %183 = arith.truncf %181 : vector<32x256xf32> to vector<32x256xbf16>
    %cst_76 = arith.constant dense<0.000000e+00> : vector<16x256xf32>
    %184 = tpu.matmul %182, %183, %cst_76 {dimension_numbers = #tpu.dot_dimension_numbers<[1], [0], [0], [1], [0, 0, 1, 1], [], []>} : vector<16x32xbf16>, vector<32x256xbf16>, vector<16x256xf32> -> vector<16x256xf32>
    %185 = arith.truncf %184 : vector<16x256xf32> to vector<16x256xbf16>
    %c0_77 = arith.constant 0 : index
    %c0_78 = arith.constant 0 : index
    %186 = vector.load %arg10[%c0_77, %c0_78] : memref<256x128xbf16, #tpu.memory_space<vmem>>, vector<256x128xbf16>
    %cst_79 = arith.constant dense<0.000000e+00> : vector<16x128xf32>
    %187 = tpu.matmul %185, %186, %cst_79 {dimension_numbers = #tpu.dot_dimension_numbers<[1], [0], [0], [1], [0, 0, 1, 1], [], []>} : vector<16x256xbf16>, vector<256x128xbf16>, vector<16x128xf32> -> vector<16x128xf32>
    %c0_80 = arith.constant 0 : index
    %c0_81 = arith.constant 0 : index
    %188 = vector.load %arg11[%c0_80, %c0_81] : memref<256x128xbf16, #tpu.memory_space<vmem>>, vector<256x128xbf16>
    %cst_82 = arith.constant dense<0.000000e+00> : vector<16x128xf32>
    %189 = tpu.matmul %185, %188, %cst_82 {dimension_numbers = #tpu.dot_dimension_numbers<[1], [0], [0], [1], [0, 0, 1, 1], [], []>} : vector<16x256xbf16>, vector<256x128xbf16>, vector<16x128xf32> -> vector<16x128xf32>
    %190 = arith.maximumf %187, %189 : vector<16x128xf32>
    %191 = arith.truncf %190 : vector<16x128xf32> to vector<16x128xbf16>
    %c0_83 = arith.constant 0 : index
    %c0_84 = arith.constant 0 : index
    %192 = vector.load %arg12[%c0_83, %c0_84] : memref<128x640xbf16, #tpu.memory_space<vmem>>, vector<128x640xbf16>
    %cst_85 = arith.constant dense<0.000000e+00> : vector<16x640xf32>
    %193 = tpu.matmul %191, %192, %cst_85 {dimension_numbers = #tpu.dot_dimension_numbers<[1], [0], [0], [1], [0, 0, 1, 1], [], []>} : vector<16x128xbf16>, vector<128x640xbf16>, vector<16x640xf32> -> vector<16x640xf32>
    %194 = tpu.iota {dimensions = array<i32: 0>} : vector<16x128xi32>
    %c4_i32 = arith.constant 4 : i32
    %c0_i32_86 = arith.constant 0 : i32
    %195 = arith.cmpi eq, %c4_i32, %c0_i32_86 : i32
    %c1_i32_87 = arith.constant 1 : i32
    %196 = arith.select %195, %c1_i32_87, %c4_i32 : i32
    %197 = vector.broadcast %196 : i32 to vector<16x128xi32>
    %198 = arith.remsi %194, %197 : vector<16x128xi32>
    %c0_i32_88 = arith.constant 0 : i32
    %199 = vector.broadcast %c0_i32_88 : i32 to vector<16x128xi32>
    %200 = arith.cmpi ne, %198, %199 : vector<16x128xi32>
    %c0_i32_89 = arith.constant 0 : i32
    %201 = vector.broadcast %c0_i32_89 : i32 to vector<16x128xi32>
    %202 = arith.cmpi slt, %198, %201 : vector<16x128xi32>
    %c0_i32_90 = arith.constant 0 : i32
    %203 = arith.cmpi slt, %196, %c0_i32_90 : i32
    %204 = vector.broadcast %203 : i1 to vector<16x128xi1>
    %205 = vector.broadcast %204 : vector<16x128xi1> to vector<16x128xi1>
    %206 = arith.xori %202, %205 : vector<16x128xi1>
    %207 = arith.andi %206, %200 : vector<16x128xi1>
    %208 = vector.broadcast %196 : i32 to vector<16x128xi32>
    %209 = arith.addi %198, %208 : vector<16x128xi32>
    %210 = arith.select %207, %209, %198 : vector<16x128xi1>, vector<16x128xi32>
    %211 = vector.extract_strided_slice %193 {offsets = [0, 256], sizes = [16, 128], strides = [1, 1]} : vector<16x640xf32> to vector<16x128xf32>
    %212 = vector.extract_strided_slice %193 {offsets = [0, 0], sizes = [16, 128], strides = [1, 1]} : vector<16x640xf32> to vector<16x128xf32>
    %c2_i32_91 = arith.constant 2 : i32
    %213 = tpu.dynamic_rotate %212 by %c2_i32_91 dim 0 : vector<16x128xf32>, i32 -> vector<16x128xf32>
    %c-2_i32_92 = arith.constant -2 : i32
    %214 = vector.broadcast %c-2_i32_92 : i32 to vector<16x128xi32>
    %215 = arith.addi %210, %214 : vector<16x128xi32>
    %c0_i32_93 = arith.constant 0 : i32
    %216 = vector.broadcast %c0_i32_93 : i32 to vector<16x128xi32>
    %217 = arith.cmpi sge, %215, %216 : vector<16x128xi32>
    %c-2_i32_94 = arith.constant -2 : i32
    %218 = vector.broadcast %c-2_i32_94 : i32 to vector<16x128xi32>
    %219 = arith.addi %210, %218 : vector<16x128xi32>
    %c4_i32_95 = arith.constant 4 : i32
    %220 = vector.broadcast %c4_i32_95 : i32 to vector<16x128xi32>
    %221 = arith.cmpi slt, %219, %220 : vector<16x128xi32>
    %222 = arith.andi %217, %221 : vector<16x128xi1>
    %cst_96 = arith.constant 0.000000e+00 : f32
    %223 = vector.broadcast %cst_96 : f32 to vector<16x128xf32>
    %224 = arith.select %222, %213, %223 : vector<16x128xi1>, vector<16x128xf32>
    %225 = arith.addf %211, %224 : vector<16x128xf32>
    %226 = vector.extract_strided_slice %193 {offsets = [0, 128], sizes = [16, 128], strides = [1, 1]} : vector<16x640xf32> to vector<16x128xf32>
    %c1_i32_97 = arith.constant 1 : i32
    %227 = tpu.dynamic_rotate %226 by %c1_i32_97 dim 0 : vector<16x128xf32>, i32 -> vector<16x128xf32>
    %c-1_i32_98 = arith.constant -1 : i32
    %228 = vector.broadcast %c-1_i32_98 : i32 to vector<16x128xi32>
    %229 = arith.addi %210, %228 : vector<16x128xi32>
    %c0_i32_99 = arith.constant 0 : i32
    %230 = vector.broadcast %c0_i32_99 : i32 to vector<16x128xi32>
    %231 = arith.cmpi sge, %229, %230 : vector<16x128xi32>
    %c-1_i32_100 = arith.constant -1 : i32
    %232 = vector.broadcast %c-1_i32_100 : i32 to vector<16x128xi32>
    %233 = arith.addi %210, %232 : vector<16x128xi32>
    %c4_i32_101 = arith.constant 4 : i32
    %234 = vector.broadcast %c4_i32_101 : i32 to vector<16x128xi32>
    %235 = arith.cmpi slt, %233, %234 : vector<16x128xi32>
    %236 = arith.andi %231, %235 : vector<16x128xi1>
    %cst_102 = arith.constant 0.000000e+00 : f32
    %237 = vector.broadcast %cst_102 : f32 to vector<16x128xf32>
    %238 = arith.select %236, %227, %237 : vector<16x128xi1>, vector<16x128xf32>
    %239 = arith.addf %225, %238 : vector<16x128xf32>
    %240 = vector.extract_strided_slice %193 {offsets = [0, 384], sizes = [16, 128], strides = [1, 1]} : vector<16x640xf32> to vector<16x128xf32>
    %c15_i32 = arith.constant 15 : i32
    %241 = tpu.dynamic_rotate %240 by %c15_i32 dim 0 : vector<16x128xf32>, i32 -> vector<16x128xf32>
    %c1_i32_103 = arith.constant 1 : i32
    %242 = vector.broadcast %c1_i32_103 : i32 to vector<16x128xi32>
    %243 = arith.addi %210, %242 : vector<16x128xi32>
    %c0_i32_104 = arith.constant 0 : i32
    %244 = vector.broadcast %c0_i32_104 : i32 to vector<16x128xi32>
    %245 = arith.cmpi sge, %243, %244 : vector<16x128xi32>
    %c1_i32_105 = arith.constant 1 : i32
    %246 = vector.broadcast %c1_i32_105 : i32 to vector<16x128xi32>
    %247 = arith.addi %210, %246 : vector<16x128xi32>
    %c4_i32_106 = arith.constant 4 : i32
    %248 = vector.broadcast %c4_i32_106 : i32 to vector<16x128xi32>
    %249 = arith.cmpi slt, %247, %248 : vector<16x128xi32>
    %250 = arith.andi %245, %249 : vector<16x128xi1>
    %cst_107 = arith.constant 0.000000e+00 : f32
    %251 = vector.broadcast %cst_107 : f32 to vector<16x128xf32>
    %252 = arith.select %250, %241, %251 : vector<16x128xi1>, vector<16x128xf32>
    %253 = arith.addf %239, %252 : vector<16x128xf32>
    %254 = vector.extract_strided_slice %193 {offsets = [0, 512], sizes = [16, 128], strides = [1, 1]} : vector<16x640xf32> to vector<16x128xf32>
    %c14_i32 = arith.constant 14 : i32
    %255 = tpu.dynamic_rotate %254 by %c14_i32 dim 0 : vector<16x128xf32>, i32 -> vector<16x128xf32>
    %c2_i32_108 = arith.constant 2 : i32
    %256 = vector.broadcast %c2_i32_108 : i32 to vector<16x128xi32>
    %257 = arith.addi %210, %256 : vector<16x128xi32>
    %c0_i32_109 = arith.constant 0 : i32
    %258 = vector.broadcast %c0_i32_109 : i32 to vector<16x128xi32>
    %259 = arith.cmpi sge, %257, %258 : vector<16x128xi32>
    %c2_i32_110 = arith.constant 2 : i32
    %260 = vector.broadcast %c2_i32_110 : i32 to vector<16x128xi32>
    %261 = arith.addi %210, %260 : vector<16x128xi32>
    %c4_i32_111 = arith.constant 4 : i32
    %262 = vector.broadcast %c4_i32_111 : i32 to vector<16x128xi32>
    %263 = arith.cmpi slt, %261, %262 : vector<16x128xi32>
    %264 = arith.andi %259, %263 : vector<16x128xi1>
    %cst_112 = arith.constant 0.000000e+00 : f32
    %265 = vector.broadcast %cst_112 : f32 to vector<16x128xf32>
    %266 = arith.select %264, %255, %265 : vector<16x128xi1>, vector<16x128xf32>
    %267 = arith.addf %253, %266 : vector<16x128xf32>
    %c0_113 = arith.constant 0 : index
    %c0_114 = arith.constant 0 : index
    %268 = vector.load %arg13[%c0_113, %c0_114] : memref<1x128xf32, #tpu.memory_space<vmem>>, vector<1x128xf32>
    %269 = vector.broadcast %268 : vector<1x128xf32> to vector<16x128xf32>
    %270 = arith.addf %267, %269 : vector<16x128xf32>
    %cst_115 = arith.constant 0.000000e+00 : f32
    %271 = vector.broadcast %cst_115 : f32 to vector<16x128xf32>
    %272 = arith.cmpf oge, %270, %271 : vector<16x128xf32>
    %cst_116 = arith.constant 0.00999999977 : f32
    %273 = vector.broadcast %cst_116 : f32 to vector<16x128xf32>
    %274 = arith.mulf %273, %270 : vector<16x128xf32>
    %275 = arith.select %272, %270, %274 : vector<16x128xi1>, vector<16x128xf32>
    %276 = arith.truncf %275 : vector<16x128xf32> to vector<16x128xbf16>
    %c0_117 = arith.constant 0 : index
    %c0_118 = arith.constant 0 : index
    %277 = vector.load %arg14[%c0_117, %c0_118] : memref<128x640xbf16, #tpu.memory_space<vmem>>, vector<128x640xbf16>
    %cst_119 = arith.constant dense<0.000000e+00> : vector<16x640xf32>
    %278 = tpu.matmul %276, %277, %cst_119 {dimension_numbers = #tpu.dot_dimension_numbers<[1], [0], [0], [1], [0, 0, 1, 1], [], []>} : vector<16x128xbf16>, vector<128x640xbf16>, vector<16x640xf32> -> vector<16x640xf32>
    %279 = tpu.iota {dimensions = array<i32: 0>} : vector<16x128xi32>
    %c4_i32_120 = arith.constant 4 : i32
    %c0_i32_121 = arith.constant 0 : i32
    %280 = arith.cmpi eq, %c4_i32_120, %c0_i32_121 : i32
    %c1_i32_122 = arith.constant 1 : i32
    %281 = arith.select %280, %c1_i32_122, %c4_i32_120 : i32
    %282 = vector.broadcast %281 : i32 to vector<16x128xi32>
    %283 = arith.remsi %279, %282 : vector<16x128xi32>
    %c0_i32_123 = arith.constant 0 : i32
    %284 = vector.broadcast %c0_i32_123 : i32 to vector<16x128xi32>
    %285 = arith.cmpi ne, %283, %284 : vector<16x128xi32>
    %c0_i32_124 = arith.constant 0 : i32
    %286 = vector.broadcast %c0_i32_124 : i32 to vector<16x128xi32>
    %287 = arith.cmpi slt, %283, %286 : vector<16x128xi32>
    %c0_i32_125 = arith.constant 0 : i32
    %288 = arith.cmpi slt, %281, %c0_i32_125 : i32
    %289 = vector.broadcast %288 : i1 to vector<16x128xi1>
    %290 = vector.broadcast %289 : vector<16x128xi1> to vector<16x128xi1>
    %291 = arith.xori %287, %290 : vector<16x128xi1>
    %292 = arith.andi %291, %285 : vector<16x128xi1>
    %293 = vector.broadcast %281 : i32 to vector<16x128xi32>
    %294 = arith.addi %283, %293 : vector<16x128xi32>
    %295 = arith.select %292, %294, %283 : vector<16x128xi1>, vector<16x128xi32>
    %296 = vector.extract_strided_slice %278 {offsets = [0, 256], sizes = [16, 128], strides = [1, 1]} : vector<16x640xf32> to vector<16x128xf32>
    %297 = vector.extract_strided_slice %278 {offsets = [0, 0], sizes = [16, 128], strides = [1, 1]} : vector<16x640xf32> to vector<16x128xf32>
    %c2_i32_126 = arith.constant 2 : i32
    %298 = tpu.dynamic_rotate %297 by %c2_i32_126 dim 0 : vector<16x128xf32>, i32 -> vector<16x128xf32>
    %c-2_i32_127 = arith.constant -2 : i32
    %299 = vector.broadcast %c-2_i32_127 : i32 to vector<16x128xi32>
    %300 = arith.addi %295, %299 : vector<16x128xi32>
    %c0_i32_128 = arith.constant 0 : i32
    %301 = vector.broadcast %c0_i32_128 : i32 to vector<16x128xi32>
    %302 = arith.cmpi sge, %300, %301 : vector<16x128xi32>
    %c-2_i32_129 = arith.constant -2 : i32
    %303 = vector.broadcast %c-2_i32_129 : i32 to vector<16x128xi32>
    %304 = arith.addi %295, %303 : vector<16x128xi32>
    %c4_i32_130 = arith.constant 4 : i32
    %305 = vector.broadcast %c4_i32_130 : i32 to vector<16x128xi32>
    %306 = arith.cmpi slt, %304, %305 : vector<16x128xi32>
    %307 = arith.andi %302, %306 : vector<16x128xi1>
    %cst_131 = arith.constant 0.000000e+00 : f32
    %308 = vector.broadcast %cst_131 : f32 to vector<16x128xf32>
    %309 = arith.select %307, %298, %308 : vector<16x128xi1>, vector<16x128xf32>
    %310 = arith.addf %296, %309 : vector<16x128xf32>
    %311 = vector.extract_strided_slice %278 {offsets = [0, 128], sizes = [16, 128], strides = [1, 1]} : vector<16x640xf32> to vector<16x128xf32>
    %c1_i32_132 = arith.constant 1 : i32
    %312 = tpu.dynamic_rotate %311 by %c1_i32_132 dim 0 : vector<16x128xf32>, i32 -> vector<16x128xf32>
    %c-1_i32_133 = arith.constant -1 : i32
    %313 = vector.broadcast %c-1_i32_133 : i32 to vector<16x128xi32>
    %314 = arith.addi %295, %313 : vector<16x128xi32>
    %c0_i32_134 = arith.constant 0 : i32
    %315 = vector.broadcast %c0_i32_134 : i32 to vector<16x128xi32>
    %316 = arith.cmpi sge, %314, %315 : vector<16x128xi32>
    %c-1_i32_135 = arith.constant -1 : i32
    %317 = vector.broadcast %c-1_i32_135 : i32 to vector<16x128xi32>
    %318 = arith.addi %295, %317 : vector<16x128xi32>
    %c4_i32_136 = arith.constant 4 : i32
    %319 = vector.broadcast %c4_i32_136 : i32 to vector<16x128xi32>
    %320 = arith.cmpi slt, %318, %319 : vector<16x128xi32>
    %321 = arith.andi %316, %320 : vector<16x128xi1>
    %cst_137 = arith.constant 0.000000e+00 : f32
    %322 = vector.broadcast %cst_137 : f32 to vector<16x128xf32>
    %323 = arith.select %321, %312, %322 : vector<16x128xi1>, vector<16x128xf32>
    %324 = arith.addf %310, %323 : vector<16x128xf32>
    %325 = vector.extract_strided_slice %278 {offsets = [0, 384], sizes = [16, 128], strides = [1, 1]} : vector<16x640xf32> to vector<16x128xf32>
    %c15_i32_138 = arith.constant 15 : i32
    %326 = tpu.dynamic_rotate %325 by %c15_i32_138 dim 0 : vector<16x128xf32>, i32 -> vector<16x128xf32>
    %c1_i32_139 = arith.constant 1 : i32
    %327 = vector.broadcast %c1_i32_139 : i32 to vector<16x128xi32>
    %328 = arith.addi %295, %327 : vector<16x128xi32>
    %c0_i32_140 = arith.constant 0 : i32
    %329 = vector.broadcast %c0_i32_140 : i32 to vector<16x128xi32>
    %330 = arith.cmpi sge, %328, %329 : vector<16x128xi32>
    %c1_i32_141 = arith.constant 1 : i32
    %331 = vector.broadcast %c1_i32_141 : i32 to vector<16x128xi32>
    %332 = arith.addi %295, %331 : vector<16x128xi32>
    %c4_i32_142 = arith.constant 4 : i32
    %333 = vector.broadcast %c4_i32_142 : i32 to vector<16x128xi32>
    %334 = arith.cmpi slt, %332, %333 : vector<16x128xi32>
    %335 = arith.andi %330, %334 : vector<16x128xi1>
    %cst_143 = arith.constant 0.000000e+00 : f32
    %336 = vector.broadcast %cst_143 : f32 to vector<16x128xf32>
    %337 = arith.select %335, %326, %336 : vector<16x128xi1>, vector<16x128xf32>
    %338 = arith.addf %324, %337 : vector<16x128xf32>
    %339 = vector.extract_strided_slice %278 {offsets = [0, 512], sizes = [16, 128], strides = [1, 1]} : vector<16x640xf32> to vector<16x128xf32>
    %c14_i32_144 = arith.constant 14 : i32
    %340 = tpu.dynamic_rotate %339 by %c14_i32_144 dim 0 : vector<16x128xf32>, i32 -> vector<16x128xf32>
    %c2_i32_145 = arith.constant 2 : i32
    %341 = vector.broadcast %c2_i32_145 : i32 to vector<16x128xi32>
    %342 = arith.addi %295, %341 : vector<16x128xi32>
    %c0_i32_146 = arith.constant 0 : i32
    %343 = vector.broadcast %c0_i32_146 : i32 to vector<16x128xi32>
    %344 = arith.cmpi sge, %342, %343 : vector<16x128xi32>
    %c2_i32_147 = arith.constant 2 : i32
    %345 = vector.broadcast %c2_i32_147 : i32 to vector<16x128xi32>
    %346 = arith.addi %295, %345 : vector<16x128xi32>
    %c4_i32_148 = arith.constant 4 : i32
    %347 = vector.broadcast %c4_i32_148 : i32 to vector<16x128xi32>
    %348 = arith.cmpi slt, %346, %347 : vector<16x128xi32>
    %349 = arith.andi %344, %348 : vector<16x128xi1>
    %cst_149 = arith.constant 0.000000e+00 : f32
    %350 = vector.broadcast %cst_149 : f32 to vector<16x128xf32>
    %351 = arith.select %349, %340, %350 : vector<16x128xi1>, vector<16x128xf32>
    %352 = arith.addf %338, %351 : vector<16x128xf32>
    %c0_150 = arith.constant 0 : index
    %c0_151 = arith.constant 0 : index
    %353 = vector.load %arg15[%c0_150, %c0_151] : memref<1x128xf32, #tpu.memory_space<vmem>>, vector<1x128xf32>
    %354 = vector.broadcast %353 : vector<1x128xf32> to vector<16x128xf32>
    %355 = arith.addf %352, %354 : vector<16x128xf32>
    %cst_152 = arith.constant 0.000000e+00 : f32
    %356 = vector.broadcast %cst_152 : f32 to vector<16x128xf32>
    %357 = arith.cmpf oge, %355, %356 : vector<16x128xf32>
    %cst_153 = arith.constant 0.00999999977 : f32
    %358 = vector.broadcast %cst_153 : f32 to vector<16x128xf32>
    %359 = arith.mulf %358, %355 : vector<16x128xf32>
    %360 = arith.select %357, %355, %359 : vector<16x128xi1>, vector<16x128xf32>
    %361 = arith.truncf %360 : vector<16x128xf32> to vector<16x128xbf16>
    %c0_154 = arith.constant 0 : index
    %c0_155 = arith.constant 0 : index
    %362 = vector.load %arg16[%c0_154, %c0_155] : memref<128x640xbf16, #tpu.memory_space<vmem>>, vector<128x640xbf16>
    %cst_156 = arith.constant dense<0.000000e+00> : vector<16x640xf32>
    %363 = tpu.matmul %361, %362, %cst_156 {dimension_numbers = #tpu.dot_dimension_numbers<[1], [0], [0], [1], [0, 0, 1, 1], [], []>} : vector<16x128xbf16>, vector<128x640xbf16>, vector<16x640xf32> -> vector<16x640xf32>
    %c0_157 = arith.constant 0 : index
    %c0_158 = arith.constant 0 : index
    %c0_159 = arith.constant 0 : index
    %364 = vector.load %arg17[%c0_157, %c0_158, %c0_159] : memref<5x32x16xbf16, #tpu.memory_space<vmem>>, vector<1x32x16xbf16>
    %365 = vector.shape_cast %364 : vector<1x32x16xbf16> to vector<32x16xbf16>
    %366 = vector.extract_strided_slice %363 {offsets = [0, 0], sizes = [16, 128], strides = [1, 1]} : vector<16x640xf32> to vector<16x128xf32>
    %367 = arith.truncf %366 : vector<16x128xf32> to vector<16x128xbf16>
    %cst_160 = arith.constant dense<0.000000e+00> : vector<32x128xf32>
    %368 = tpu.matmul %365, %367, %cst_160 {dimension_numbers = #tpu.dot_dimension_numbers<[1], [0], [0], [1], [0, 0, 1, 1], [], []>} : vector<32x16xbf16>, vector<16x128xbf16>, vector<32x128xf32> -> vector<32x128xf32>
    %c1 = arith.constant 1 : index
    %c0_161 = arith.constant 0 : index
    %c0_162 = arith.constant 0 : index
    %369 = vector.load %arg17[%c1, %c0_161, %c0_162] : memref<5x32x16xbf16, #tpu.memory_space<vmem>>, vector<1x32x16xbf16>
    %370 = vector.shape_cast %369 : vector<1x32x16xbf16> to vector<32x16xbf16>
    %371 = vector.extract_strided_slice %363 {offsets = [0, 128], sizes = [16, 128], strides = [1, 1]} : vector<16x640xf32> to vector<16x128xf32>
    %372 = arith.truncf %371 : vector<16x128xf32> to vector<16x128xbf16>
    %cst_163 = arith.constant dense<0.000000e+00> : vector<32x128xf32>
    %373 = tpu.matmul %370, %372, %cst_163 {dimension_numbers = #tpu.dot_dimension_numbers<[1], [0], [0], [1], [0, 0, 1, 1], [], []>} : vector<32x16xbf16>, vector<16x128xbf16>, vector<32x128xf32> -> vector<32x128xf32>
    %374 = arith.addf %368, %373 : vector<32x128xf32>
    %c2 = arith.constant 2 : index
    %c0_164 = arith.constant 0 : index
    %c0_165 = arith.constant 0 : index
    %375 = vector.load %arg17[%c2, %c0_164, %c0_165] : memref<5x32x16xbf16, #tpu.memory_space<vmem>>, vector<1x32x16xbf16>
    %376 = vector.shape_cast %375 : vector<1x32x16xbf16> to vector<32x16xbf16>
    %377 = vector.extract_strided_slice %363 {offsets = [0, 256], sizes = [16, 128], strides = [1, 1]} : vector<16x640xf32> to vector<16x128xf32>
    %378 = arith.truncf %377 : vector<16x128xf32> to vector<16x128xbf16>
    %cst_166 = arith.constant dense<0.000000e+00> : vector<32x128xf32>
    %379 = tpu.matmul %376, %378, %cst_166 {dimension_numbers = #tpu.dot_dimension_numbers<[1], [0], [0], [1], [0, 0, 1, 1], [], []>} : vector<32x16xbf16>, vector<16x128xbf16>, vector<32x128xf32> -> vector<32x128xf32>
    %380 = arith.addf %374, %379 : vector<32x128xf32>
    %c3 = arith.constant 3 : index
    %c0_167 = arith.constant 0 : index
    %c0_168 = arith.constant 0 : index
    %381 = vector.load %arg17[%c3, %c0_167, %c0_168] : memref<5x32x16xbf16, #tpu.memory_space<vmem>>, vector<1x32x16xbf16>
    %382 = vector.shape_cast %381 : vector<1x32x16xbf16> to vector<32x16xbf16>
    %383 = vector.extract_strided_slice %363 {offsets = [0, 384], sizes = [16, 128], strides = [1, 1]} : vector<16x640xf32> to vector<16x128xf32>
    %384 = arith.truncf %383 : vector<16x128xf32> to vector<16x128xbf16>
    %cst_169 = arith.constant dense<0.000000e+00> : vector<32x128xf32>
    %385 = tpu.matmul %382, %384, %cst_169 {dimension_numbers = #tpu.dot_dimension_numbers<[1], [0], [0], [1], [0, 0, 1, 1], [], []>} : vector<32x16xbf16>, vector<16x128xbf16>, vector<32x128xf32> -> vector<32x128xf32>
    %386 = arith.addf %380, %385 : vector<32x128xf32>
    %c4 = arith.constant 4 : index
    %c0_170 = arith.constant 0 : index
    %c0_171 = arith.constant 0 : index
    %387 = vector.load %arg17[%c4, %c0_170, %c0_171] : memref<5x32x16xbf16, #tpu.memory_space<vmem>>, vector<1x32x16xbf16>
    %388 = vector.shape_cast %387 : vector<1x32x16xbf16> to vector<32x16xbf16>
    %389 = vector.extract_strided_slice %363 {offsets = [0, 512], sizes = [16, 128], strides = [1, 1]} : vector<16x640xf32> to vector<16x128xf32>
    %390 = arith.truncf %389 : vector<16x128xf32> to vector<16x128xbf16>
    %cst_172 = arith.constant dense<0.000000e+00> : vector<32x128xf32>
    %391 = tpu.matmul %388, %390, %cst_172 {dimension_numbers = #tpu.dot_dimension_numbers<[1], [0], [0], [1], [0, 0, 1, 1], [], []>} : vector<32x16xbf16>, vector<16x128xbf16>, vector<32x128xf32> -> vector<32x128xf32>
    %392 = arith.addf %386, %391 : vector<32x128xf32>
    %c0_173 = arith.constant 0 : index
    %c0_174 = arith.constant 0 : index
    %393 = vector.load %arg18[%c0_173, %c0_174] : memref<1x128xf32, #tpu.memory_space<vmem>>, vector<1x128xf32>
    %394 = vector.broadcast %393 : vector<1x128xf32> to vector<32x128xf32>
    %395 = arith.addf %392, %394 : vector<32x128xf32>
    %cst_175 = arith.constant 0.000000e+00 : f32
    %396 = vector.broadcast %cst_175 : f32 to vector<32x128xf32>
    %397 = arith.cmpf oge, %395, %396 : vector<32x128xf32>
    %cst_176 = arith.constant 0.00999999977 : f32
    %398 = vector.broadcast %cst_176 : f32 to vector<32x128xf32>
    %399 = arith.mulf %398, %395 : vector<32x128xf32>
    %400 = arith.select %397, %395, %399 : vector<32x128xi1>, vector<32x128xf32>
    %401 = arith.truncf %400 : vector<32x128xf32> to vector<32x128xbf16>
    %c0_177 = arith.constant 0 : index
    %c0_178 = arith.constant 0 : index
    %402 = vector.load %arg19[%c0_177, %c0_178] : memref<128x640xbf16, #tpu.memory_space<vmem>>, vector<128x640xbf16>
    %cst_179 = arith.constant dense<0.000000e+00> : vector<32x640xf32>
    %403 = tpu.matmul %401, %402, %cst_179 {dimension_numbers = #tpu.dot_dimension_numbers<[1], [0], [0], [1], [0, 0, 1, 1], [], []>} : vector<32x128xbf16>, vector<128x640xbf16>, vector<32x640xf32> -> vector<32x640xf32>
    %404 = tpu.iota {dimensions = array<i32: 0>} : vector<32x128xi32>
    %c8_i32_180 = arith.constant 8 : i32
    %c0_i32_181 = arith.constant 0 : i32
    %405 = arith.cmpi eq, %c8_i32_180, %c0_i32_181 : i32
    %c1_i32_182 = arith.constant 1 : i32
    %406 = arith.select %405, %c1_i32_182, %c8_i32_180 : i32
    %407 = vector.broadcast %406 : i32 to vector<32x128xi32>
    %408 = arith.remsi %404, %407 : vector<32x128xi32>
    %c0_i32_183 = arith.constant 0 : i32
    %409 = vector.broadcast %c0_i32_183 : i32 to vector<32x128xi32>
    %410 = arith.cmpi ne, %408, %409 : vector<32x128xi32>
    %c0_i32_184 = arith.constant 0 : i32
    %411 = vector.broadcast %c0_i32_184 : i32 to vector<32x128xi32>
    %412 = arith.cmpi slt, %408, %411 : vector<32x128xi32>
    %c0_i32_185 = arith.constant 0 : i32
    %413 = arith.cmpi slt, %406, %c0_i32_185 : i32
    %414 = vector.broadcast %413 : i1 to vector<32x128xi1>
    %415 = vector.broadcast %414 : vector<32x128xi1> to vector<32x128xi1>
    %416 = arith.xori %412, %415 : vector<32x128xi1>
    %417 = arith.andi %416, %410 : vector<32x128xi1>
    %418 = vector.broadcast %406 : i32 to vector<32x128xi32>
    %419 = arith.addi %408, %418 : vector<32x128xi32>
    %420 = arith.select %417, %419, %408 : vector<32x128xi1>, vector<32x128xi32>
    %421 = vector.extract_strided_slice %403 {offsets = [0, 256], sizes = [32, 128], strides = [1, 1]} : vector<32x640xf32> to vector<32x128xf32>
    %422 = vector.extract_strided_slice %403 {offsets = [0, 0], sizes = [32, 128], strides = [1, 1]} : vector<32x640xf32> to vector<32x128xf32>
    %c2_i32_186 = arith.constant 2 : i32
    %423 = tpu.dynamic_rotate %422 by %c2_i32_186 dim 0 : vector<32x128xf32>, i32 -> vector<32x128xf32>
    %c-2_i32_187 = arith.constant -2 : i32
    %424 = vector.broadcast %c-2_i32_187 : i32 to vector<32x128xi32>
    %425 = arith.addi %420, %424 : vector<32x128xi32>
    %c0_i32_188 = arith.constant 0 : i32
    %426 = vector.broadcast %c0_i32_188 : i32 to vector<32x128xi32>
    %427 = arith.cmpi sge, %425, %426 : vector<32x128xi32>
    %c-2_i32_189 = arith.constant -2 : i32
    %428 = vector.broadcast %c-2_i32_189 : i32 to vector<32x128xi32>
    %429 = arith.addi %420, %428 : vector<32x128xi32>
    %c8_i32_190 = arith.constant 8 : i32
    %430 = vector.broadcast %c8_i32_190 : i32 to vector<32x128xi32>
    %431 = arith.cmpi slt, %429, %430 : vector<32x128xi32>
    %432 = arith.andi %427, %431 : vector<32x128xi1>
    %cst_191 = arith.constant 0.000000e+00 : f32
    %433 = vector.broadcast %cst_191 : f32 to vector<32x128xf32>
    %434 = arith.select %432, %423, %433 : vector<32x128xi1>, vector<32x128xf32>
    %435 = arith.addf %421, %434 : vector<32x128xf32>
    %436 = vector.extract_strided_slice %403 {offsets = [0, 128], sizes = [32, 128], strides = [1, 1]} : vector<32x640xf32> to vector<32x128xf32>
    %c1_i32_192 = arith.constant 1 : i32
    %437 = tpu.dynamic_rotate %436 by %c1_i32_192 dim 0 : vector<32x128xf32>, i32 -> vector<32x128xf32>
    %c-1_i32_193 = arith.constant -1 : i32
    %438 = vector.broadcast %c-1_i32_193 : i32 to vector<32x128xi32>
    %439 = arith.addi %420, %438 : vector<32x128xi32>
    %c0_i32_194 = arith.constant 0 : i32
    %440 = vector.broadcast %c0_i32_194 : i32 to vector<32x128xi32>
    %441 = arith.cmpi sge, %439, %440 : vector<32x128xi32>
    %c-1_i32_195 = arith.constant -1 : i32
    %442 = vector.broadcast %c-1_i32_195 : i32 to vector<32x128xi32>
    %443 = arith.addi %420, %442 : vector<32x128xi32>
    %c8_i32_196 = arith.constant 8 : i32
    %444 = vector.broadcast %c8_i32_196 : i32 to vector<32x128xi32>
    %445 = arith.cmpi slt, %443, %444 : vector<32x128xi32>
    %446 = arith.andi %441, %445 : vector<32x128xi1>
    %cst_197 = arith.constant 0.000000e+00 : f32
    %447 = vector.broadcast %cst_197 : f32 to vector<32x128xf32>
    %448 = arith.select %446, %437, %447 : vector<32x128xi1>, vector<32x128xf32>
    %449 = arith.addf %435, %448 : vector<32x128xf32>
    %450 = vector.extract_strided_slice %403 {offsets = [0, 384], sizes = [32, 128], strides = [1, 1]} : vector<32x640xf32> to vector<32x128xf32>
    %c31_i32_198 = arith.constant 31 : i32
    %451 = tpu.dynamic_rotate %450 by %c31_i32_198 dim 0 : vector<32x128xf32>, i32 -> vector<32x128xf32>
    %c1_i32_199 = arith.constant 1 : i32
    %452 = vector.broadcast %c1_i32_199 : i32 to vector<32x128xi32>
    %453 = arith.addi %420, %452 : vector<32x128xi32>
    %c0_i32_200 = arith.constant 0 : i32
    %454 = vector.broadcast %c0_i32_200 : i32 to vector<32x128xi32>
    %455 = arith.cmpi sge, %453, %454 : vector<32x128xi32>
    %c1_i32_201 = arith.constant 1 : i32
    %456 = vector.broadcast %c1_i32_201 : i32 to vector<32x128xi32>
    %457 = arith.addi %420, %456 : vector<32x128xi32>
    %c8_i32_202 = arith.constant 8 : i32
    %458 = vector.broadcast %c8_i32_202 : i32 to vector<32x128xi32>
    %459 = arith.cmpi slt, %457, %458 : vector<32x128xi32>
    %460 = arith.andi %455, %459 : vector<32x128xi1>
    %cst_203 = arith.constant 0.000000e+00 : f32
    %461 = vector.broadcast %cst_203 : f32 to vector<32x128xf32>
    %462 = arith.select %460, %451, %461 : vector<32x128xi1>, vector<32x128xf32>
    %463 = arith.addf %449, %462 : vector<32x128xf32>
    %464 = vector.extract_strided_slice %403 {offsets = [0, 512], sizes = [32, 128], strides = [1, 1]} : vector<32x640xf32> to vector<32x128xf32>
    %c30_i32_204 = arith.constant 30 : i32
    %465 = tpu.dynamic_rotate %464 by %c30_i32_204 dim 0 : vector<32x128xf32>, i32 -> vector<32x128xf32>
    %c2_i32_205 = arith.constant 2 : i32
    %466 = vector.broadcast %c2_i32_205 : i32 to vector<32x128xi32>
    %467 = arith.addi %420, %466 : vector<32x128xi32>
    %c0_i32_206 = arith.constant 0 : i32
    %468 = vector.broadcast %c0_i32_206 : i32 to vector<32x128xi32>
    %469 = arith.cmpi sge, %467, %468 : vector<32x128xi32>
    %c2_i32_207 = arith.constant 2 : i32
    %470 = vector.broadcast %c2_i32_207 : i32 to vector<32x128xi32>
    %471 = arith.addi %420, %470 : vector<32x128xi32>
    %c8_i32_208 = arith.constant 8 : i32
    %472 = vector.broadcast %c8_i32_208 : i32 to vector<32x128xi32>
    %473 = arith.cmpi slt, %471, %472 : vector<32x128xi32>
    %474 = arith.andi %469, %473 : vector<32x128xi1>
    %cst_209 = arith.constant 0.000000e+00 : f32
    %475 = vector.broadcast %cst_209 : f32 to vector<32x128xf32>
    %476 = arith.select %474, %465, %475 : vector<32x128xi1>, vector<32x128xf32>
    %477 = arith.addf %463, %476 : vector<32x128xf32>
    %c0_210 = arith.constant 0 : index
    %c0_211 = arith.constant 0 : index
    %478 = vector.load %arg20[%c0_210, %c0_211] : memref<1x128xf32, #tpu.memory_space<vmem>>, vector<1x128xf32>
    %479 = vector.broadcast %478 : vector<1x128xf32> to vector<32x128xf32>
    %480 = arith.addf %477, %479 : vector<32x128xf32>
    %cst_212 = arith.constant 0.000000e+00 : f32
    %481 = vector.broadcast %cst_212 : f32 to vector<32x128xf32>
    %482 = arith.cmpf oge, %480, %481 : vector<32x128xf32>
    %cst_213 = arith.constant 0.00999999977 : f32
    %483 = vector.broadcast %cst_213 : f32 to vector<32x128xf32>
    %484 = arith.mulf %483, %480 : vector<32x128xf32>
    %485 = arith.select %482, %480, %484 : vector<32x128xi1>, vector<32x128xf32>
    %486 = arith.truncf %485 : vector<32x128xf32> to vector<32x128xbf16>
    %c0_214 = arith.constant 0 : index
    %c0_215 = arith.constant 0 : index
    %487 = vector.load %arg21[%c0_214, %c0_215] : memref<128x640xbf16, #tpu.memory_space<vmem>>, vector<128x640xbf16>
    %cst_216 = arith.constant dense<0.000000e+00> : vector<32x640xf32>
    %488 = tpu.matmul %486, %487, %cst_216 {dimension_numbers = #tpu.dot_dimension_numbers<[1], [0], [0], [1], [0, 0, 1, 1], [], []>} : vector<32x128xbf16>, vector<128x640xbf16>, vector<32x640xf32> -> vector<32x640xf32>
    %c0_217 = arith.constant 0 : index
    %c0_218 = arith.constant 0 : index
    %c0_219 = arith.constant 0 : index
    %489 = vector.load %arg22[%c0_217, %c0_218, %c0_219] : memref<5x64x32xbf16, #tpu.memory_space<vmem>>, vector<1x64x32xbf16>
    %490 = vector.shape_cast %489 : vector<1x64x32xbf16> to vector<64x32xbf16>
    %491 = vector.extract_strided_slice %488 {offsets = [0, 0], sizes = [32, 128], strides = [1, 1]} : vector<32x640xf32> to vector<32x128xf32>
    %492 = arith.truncf %491 : vector<32x128xf32> to vector<32x128xbf16>
    %cst_220 = arith.constant dense<0.000000e+00> : vector<64x128xf32>
    %493 = tpu.matmul %490, %492, %cst_220 {dimension_numbers = #tpu.dot_dimension_numbers<[1], [0], [0], [1], [0, 0, 1, 1], [], []>} : vector<64x32xbf16>, vector<32x128xbf16>, vector<64x128xf32> -> vector<64x128xf32>
    %c1_221 = arith.constant 1 : index
    %c0_222 = arith.constant 0 : index
    %c0_223 = arith.constant 0 : index
    %494 = vector.load %arg22[%c1_221, %c0_222, %c0_223] : memref<5x64x32xbf16, #tpu.memory_space<vmem>>, vector<1x64x32xbf16>
    %495 = vector.shape_cast %494 : vector<1x64x32xbf16> to vector<64x32xbf16>
    %496 = vector.extract_strided_slice %488 {offsets = [0, 128], sizes = [32, 128], strides = [1, 1]} : vector<32x640xf32> to vector<32x128xf32>
    %497 = arith.truncf %496 : vector<32x128xf32> to vector<32x128xbf16>
    %cst_224 = arith.constant dense<0.000000e+00> : vector<64x128xf32>
    %498 = tpu.matmul %495, %497, %cst_224 {dimension_numbers = #tpu.dot_dimension_numbers<[1], [0], [0], [1], [0, 0, 1, 1], [], []>} : vector<64x32xbf16>, vector<32x128xbf16>, vector<64x128xf32> -> vector<64x128xf32>
    %499 = arith.addf %493, %498 : vector<64x128xf32>
    %c2_225 = arith.constant 2 : index
    %c0_226 = arith.constant 0 : index
    %c0_227 = arith.constant 0 : index
    %500 = vector.load %arg22[%c2_225, %c0_226, %c0_227] : memref<5x64x32xbf16, #tpu.memory_space<vmem>>, vector<1x64x32xbf16>
    %501 = vector.shape_cast %500 : vector<1x64x32xbf16> to vector<64x32xbf16>
    %502 = vector.extract_strided_slice %488 {offsets = [0, 256], sizes = [32, 128], strides = [1, 1]} : vector<32x640xf32> to vector<32x128xf32>
    %503 = arith.truncf %502 : vector<32x128xf32> to vector<32x128xbf16>
    %cst_228 = arith.constant dense<0.000000e+00> : vector<64x128xf32>
    %504 = tpu.matmul %501, %503, %cst_228 {dimension_numbers = #tpu.dot_dimension_numbers<[1], [0], [0], [1], [0, 0, 1, 1], [], []>} : vector<64x32xbf16>, vector<32x128xbf16>, vector<64x128xf32> -> vector<64x128xf32>
    %505 = arith.addf %499, %504 : vector<64x128xf32>
    %c3_229 = arith.constant 3 : index
    %c0_230 = arith.constant 0 : index
    %c0_231 = arith.constant 0 : index
    %506 = vector.load %arg22[%c3_229, %c0_230, %c0_231] : memref<5x64x32xbf16, #tpu.memory_space<vmem>>, vector<1x64x32xbf16>
    %507 = vector.shape_cast %506 : vector<1x64x32xbf16> to vector<64x32xbf16>
    %508 = vector.extract_strided_slice %488 {offsets = [0, 384], sizes = [32, 128], strides = [1, 1]} : vector<32x640xf32> to vector<32x128xf32>
    %509 = arith.truncf %508 : vector<32x128xf32> to vector<32x128xbf16>
    %cst_232 = arith.constant dense<0.000000e+00> : vector<64x128xf32>
    %510 = tpu.matmul %507, %509, %cst_232 {dimension_numbers = #tpu.dot_dimension_numbers<[1], [0], [0], [1], [0, 0, 1, 1], [], []>} : vector<64x32xbf16>, vector<32x128xbf16>, vector<64x128xf32> -> vector<64x128xf32>
    %511 = arith.addf %505, %510 : vector<64x128xf32>
    %c4_233 = arith.constant 4 : index
    %c0_234 = arith.constant 0 : index
    %c0_235 = arith.constant 0 : index
    %512 = vector.load %arg22[%c4_233, %c0_234, %c0_235] : memref<5x64x32xbf16, #tpu.memory_space<vmem>>, vector<1x64x32xbf16>
    %513 = vector.shape_cast %512 : vector<1x64x32xbf16> to vector<64x32xbf16>
    %514 = vector.extract_strided_slice %488 {offsets = [0, 512], sizes = [32, 128], strides = [1, 1]} : vector<32x640xf32> to vector<32x128xf32>
    %515 = arith.truncf %514 : vector<32x128xf32> to vector<32x128xbf16>
    %cst_236 = arith.constant dense<0.000000e+00> : vector<64x128xf32>
    %516 = tpu.matmul %513, %515, %cst_236 {dimension_numbers = #tpu.dot_dimension_numbers<[1], [0], [0], [1], [0, 0, 1, 1], [], []>} : vector<64x32xbf16>, vector<32x128xbf16>, vector<64x128xf32> -> vector<64x128xf32>
    %517 = arith.addf %511, %516 : vector<64x128xf32>
    %c0_237 = arith.constant 0 : index
    %c0_238 = arith.constant 0 : index
    %518 = vector.load %arg23[%c0_237, %c0_238] : memref<1x128xf32, #tpu.memory_space<vmem>>, vector<1x128xf32>
    %519 = vector.broadcast %518 : vector<1x128xf32> to vector<64x128xf32>
    %520 = arith.addf %517, %519 : vector<64x128xf32>
    %cst_239 = arith.constant 0.000000e+00 : f32
    %521 = vector.broadcast %cst_239 : f32 to vector<64x128xf32>
    %522 = arith.cmpf oge, %520, %521 : vector<64x128xf32>
    %cst_240 = arith.constant 0.00999999977 : f32
    %523 = vector.broadcast %cst_240 : f32 to vector<64x128xf32>
    %524 = arith.mulf %523, %520 : vector<64x128xf32>
    %525 = arith.select %522, %520, %524 : vector<64x128xi1>, vector<64x128xf32>
    %526 = arith.truncf %525 : vector<64x128xf32> to vector<64x128xbf16>
    %c0_241 = arith.constant 0 : index
    %c0_242 = arith.constant 0 : index
    %527 = vector.load %arg24[%c0_241, %c0_242] : memref<128x640xbf16, #tpu.memory_space<vmem>>, vector<128x640xbf16>
    %cst_243 = arith.constant dense<0.000000e+00> : vector<64x640xf32>
    %528 = tpu.matmul %526, %527, %cst_243 {dimension_numbers = #tpu.dot_dimension_numbers<[1], [0], [0], [1], [0, 0, 1, 1], [], []>} : vector<64x128xbf16>, vector<128x640xbf16>, vector<64x640xf32> -> vector<64x640xf32>
    %529 = tpu.iota {dimensions = array<i32: 0>} : vector<64x128xi32>
    %c16_i32_244 = arith.constant 16 : i32
    %c0_i32_245 = arith.constant 0 : i32
    %530 = arith.cmpi eq, %c16_i32_244, %c0_i32_245 : i32
    %c1_i32_246 = arith.constant 1 : i32
    %531 = arith.select %530, %c1_i32_246, %c16_i32_244 : i32
    %532 = vector.broadcast %531 : i32 to vector<64x128xi32>
    %533 = arith.remsi %529, %532 : vector<64x128xi32>
    %c0_i32_247 = arith.constant 0 : i32
    %534 = vector.broadcast %c0_i32_247 : i32 to vector<64x128xi32>
    %535 = arith.cmpi ne, %533, %534 : vector<64x128xi32>
    %c0_i32_248 = arith.constant 0 : i32
    %536 = vector.broadcast %c0_i32_248 : i32 to vector<64x128xi32>
    %537 = arith.cmpi slt, %533, %536 : vector<64x128xi32>
    %c0_i32_249 = arith.constant 0 : i32
    %538 = arith.cmpi slt, %531, %c0_i32_249 : i32
    %539 = vector.broadcast %538 : i1 to vector<64x128xi1>
    %540 = vector.broadcast %539 : vector<64x128xi1> to vector<64x128xi1>
    %541 = arith.xori %537, %540 : vector<64x128xi1>
    %542 = arith.andi %541, %535 : vector<64x128xi1>
    %543 = vector.broadcast %531 : i32 to vector<64x128xi32>
    %544 = arith.addi %533, %543 : vector<64x128xi32>
    %545 = arith.select %542, %544, %533 : vector<64x128xi1>, vector<64x128xi32>
    %546 = vector.extract_strided_slice %528 {offsets = [0, 256], sizes = [64, 128], strides = [1, 1]} : vector<64x640xf32> to vector<64x128xf32>
    %547 = vector.extract_strided_slice %528 {offsets = [0, 0], sizes = [64, 128], strides = [1, 1]} : vector<64x640xf32> to vector<64x128xf32>
    %c2_i32_250 = arith.constant 2 : i32
    %548 = tpu.dynamic_rotate %547 by %c2_i32_250 dim 0 : vector<64x128xf32>, i32 -> vector<64x128xf32>
    %c-2_i32_251 = arith.constant -2 : i32
    %549 = vector.broadcast %c-2_i32_251 : i32 to vector<64x128xi32>
    %550 = arith.addi %545, %549 : vector<64x128xi32>
    %c0_i32_252 = arith.constant 0 : i32
    %551 = vector.broadcast %c0_i32_252 : i32 to vector<64x128xi32>
    %552 = arith.cmpi sge, %550, %551 : vector<64x128xi32>
    %c-2_i32_253 = arith.constant -2 : i32
    %553 = vector.broadcast %c-2_i32_253 : i32 to vector<64x128xi32>
    %554 = arith.addi %545, %553 : vector<64x128xi32>
    %c16_i32_254 = arith.constant 16 : i32
    %555 = vector.broadcast %c16_i32_254 : i32 to vector<64x128xi32>
    %556 = arith.cmpi slt, %554, %555 : vector<64x128xi32>
    %557 = arith.andi %552, %556 : vector<64x128xi1>
    %cst_255 = arith.constant 0.000000e+00 : f32
    %558 = vector.broadcast %cst_255 : f32 to vector<64x128xf32>
    %559 = arith.select %557, %548, %558 : vector<64x128xi1>, vector<64x128xf32>
    %560 = arith.addf %546, %559 : vector<64x128xf32>
    %561 = vector.extract_strided_slice %528 {offsets = [0, 128], sizes = [64, 128], strides = [1, 1]} : vector<64x640xf32> to vector<64x128xf32>
    %c1_i32_256 = arith.constant 1 : i32
    %562 = tpu.dynamic_rotate %561 by %c1_i32_256 dim 0 : vector<64x128xf32>, i32 -> vector<64x128xf32>
    %c-1_i32_257 = arith.constant -1 : i32
    %563 = vector.broadcast %c-1_i32_257 : i32 to vector<64x128xi32>
    %564 = arith.addi %545, %563 : vector<64x128xi32>
    %c0_i32_258 = arith.constant 0 : i32
    %565 = vector.broadcast %c0_i32_258 : i32 to vector<64x128xi32>
    %566 = arith.cmpi sge, %564, %565 : vector<64x128xi32>
    %c-1_i32_259 = arith.constant -1 : i32
    %567 = vector.broadcast %c-1_i32_259 : i32 to vector<64x128xi32>
    %568 = arith.addi %545, %567 : vector<64x128xi32>
    %c16_i32_260 = arith.constant 16 : i32
    %569 = vector.broadcast %c16_i32_260 : i32 to vector<64x128xi32>
    %570 = arith.cmpi slt, %568, %569 : vector<64x128xi32>
    %571 = arith.andi %566, %570 : vector<64x128xi1>
    %cst_261 = arith.constant 0.000000e+00 : f32
    %572 = vector.broadcast %cst_261 : f32 to vector<64x128xf32>
    %573 = arith.select %571, %562, %572 : vector<64x128xi1>, vector<64x128xf32>
    %574 = arith.addf %560, %573 : vector<64x128xf32>
    %575 = vector.extract_strided_slice %528 {offsets = [0, 384], sizes = [64, 128], strides = [1, 1]} : vector<64x640xf32> to vector<64x128xf32>
    %c63_i32_262 = arith.constant 63 : i32
    %576 = tpu.dynamic_rotate %575 by %c63_i32_262 dim 0 : vector<64x128xf32>, i32 -> vector<64x128xf32>
    %c1_i32_263 = arith.constant 1 : i32
    %577 = vector.broadcast %c1_i32_263 : i32 to vector<64x128xi32>
    %578 = arith.addi %545, %577 : vector<64x128xi32>
    %c0_i32_264 = arith.constant 0 : i32
    %579 = vector.broadcast %c0_i32_264 : i32 to vector<64x128xi32>
    %580 = arith.cmpi sge, %578, %579 : vector<64x128xi32>
    %c1_i32_265 = arith.constant 1 : i32
    %581 = vector.broadcast %c1_i32_265 : i32 to vector<64x128xi32>
    %582 = arith.addi %545, %581 : vector<64x128xi32>
    %c16_i32_266 = arith.constant 16 : i32
    %583 = vector.broadcast %c16_i32_266 : i32 to vector<64x128xi32>
    %584 = arith.cmpi slt, %582, %583 : vector<64x128xi32>
    %585 = arith.andi %580, %584 : vector<64x128xi1>
    %cst_267 = arith.constant 0.000000e+00 : f32
    %586 = vector.broadcast %cst_267 : f32 to vector<64x128xf32>
    %587 = arith.select %585, %576, %586 : vector<64x128xi1>, vector<64x128xf32>
    %588 = arith.addf %574, %587 : vector<64x128xf32>
    %589 = vector.extract_strided_slice %528 {offsets = [0, 512], sizes = [64, 128], strides = [1, 1]} : vector<64x640xf32> to vector<64x128xf32>
    %c62_i32_268 = arith.constant 62 : i32
    %590 = tpu.dynamic_rotate %589 by %c62_i32_268 dim 0 : vector<64x128xf32>, i32 -> vector<64x128xf32>
    %c2_i32_269 = arith.constant 2 : i32
    %591 = vector.broadcast %c2_i32_269 : i32 to vector<64x128xi32>
    %592 = arith.addi %545, %591 : vector<64x128xi32>
    %c0_i32_270 = arith.constant 0 : i32
    %593 = vector.broadcast %c0_i32_270 : i32 to vector<64x128xi32>
    %594 = arith.cmpi sge, %592, %593 : vector<64x128xi32>
    %c2_i32_271 = arith.constant 2 : i32
    %595 = vector.broadcast %c2_i32_271 : i32 to vector<64x128xi32>
    %596 = arith.addi %545, %595 : vector<64x128xi32>
    %c16_i32_272 = arith.constant 16 : i32
    %597 = vector.broadcast %c16_i32_272 : i32 to vector<64x128xi32>
    %598 = arith.cmpi slt, %596, %597 : vector<64x128xi32>
    %599 = arith.andi %594, %598 : vector<64x128xi1>
    %cst_273 = arith.constant 0.000000e+00 : f32
    %600 = vector.broadcast %cst_273 : f32 to vector<64x128xf32>
    %601 = arith.select %599, %590, %600 : vector<64x128xi1>, vector<64x128xf32>
    %602 = arith.addf %588, %601 : vector<64x128xf32>
    %c0_274 = arith.constant 0 : index
    %c0_275 = arith.constant 0 : index
    %603 = vector.load %arg25[%c0_274, %c0_275] : memref<1x128xf32, #tpu.memory_space<vmem>>, vector<1x128xf32>
    %604 = vector.broadcast %603 : vector<1x128xf32> to vector<64x128xf32>
    %605 = arith.addf %602, %604 : vector<64x128xf32>
    %c0_276 = arith.constant 0 : index
    %c0_277 = arith.constant 0 : index
    %c0_278 = arith.constant 0 : index
    %606 = vector.load %arg26[%c0_276, %c0_277, %c0_278] : memref<1x64x128xf32, #tpu.memory_space<vmem>>, vector<1x64x128xf32>
    %607 = vector.shape_cast %606 : vector<1x64x128xf32> to vector<64x128xf32>
    %608 = vector.shape_cast %605 : vector<64x128xf32> to vector<1x64x128xf32>
    tpu.vector_store %arg26[%c0_276, %c0_277, %c0_278], %608 {strides = array<i32>} : memref<1x64x128xf32, #tpu.memory_space<vmem>>, vector<1x64x128xf32>,
    return
  }
  func.func @transform_0(%arg0: i32) -> (i32, i32, i32) {
    %c0_i32 = arith.constant 0 : i32
    %c0_i32_0 = arith.constant 0 : i32
    %c0_i32_1 = arith.constant 0 : i32
    return %arg0, %c0_i32, %c0_i32_0 : i32, i32, i32
  }
  func.func @transform_1(%arg0: i32) -> (i32, i32) {
    %c0_i32 = arith.constant 0 : i32
    %c0_i32_0 = arith.constant 0 : i32
    %c0_i32_1 = arith.constant 0 : i32
    return %c0_i32, %c0_i32_0 : i32, i32
  }
  func.func @transform_2(%arg0: i32) -> (i32, i32) {
    %c0_i32 = arith.constant 0 : i32
    %c0_i32_0 = arith.constant 0 : i32
    %c0_i32_1 = arith.constant 0 : i32
    return %c0_i32, %c0_i32_0 : i32, i32
  }
  func.func @transform_3(%arg0: i32) -> (i32, i32) {
    %c0_i32 = arith.constant 0 : i32
    %c0_i32_0 = arith.constant 0 : i32
    %c0_i32_1 = arith.constant 0 : i32
    return %c0_i32, %c0_i32_0 : i32, i32
  }
  func.func @transform_4(%arg0: i32) -> (i32, i32) {
    %c0_i32 = arith.constant 0 : i32
    %c0_i32_0 = arith.constant 0 : i32
    %c0_i32_1 = arith.constant 0 : i32
    return %c0_i32, %c0_i32_0 : i32, i32
  }
  func.func @transform_5(%arg0: i32) -> (i32, i32) {
    %c0_i32 = arith.constant 0 : i32
    %c0_i32_0 = arith.constant 0 : i32
    %c0_i32_1 = arith.constant 0 : i32
    return %c0_i32, %c0_i32_0 : i32, i32
  }
  func.func @transform_6(%arg0: i32) -> (i32, i32) {
    %c0_i32 = arith.constant 0 : i32
    %c0_i32_0 = arith.constant 0 : i32
    %c0_i32_1 = arith.constant 0 : i32
    return %c0_i32, %c0_i32_0 : i32, i32
  }
  func.func @transform_7(%arg0: i32) -> (i32, i32) {
    %c0_i32 = arith.constant 0 : i32
    %c0_i32_0 = arith.constant 0 : i32
    %c0_i32_1 = arith.constant 0 : i32
    return %c0_i32, %c0_i32_0 : i32, i32
  }
  func.func @transform_8(%arg0: i32) -> (i32, i32) {
    %c0_i32 = arith.constant 0 : i32
    %c0_i32_0 = arith.constant 0 : i32
    %c0_i32_1 = arith.constant 0 : i32
    return %c0_i32, %c0_i32_0 : i32, i32
  }
  func.func @transform_9(%arg0: i32) -> (i32, i32) {
    %c0_i32 = arith.constant 0 : i32
    %c0_i32_0 = arith.constant 0 : i32
    %c0_i32_1 = arith.constant 0 : i32
    return %c0_i32, %c0_i32_0 : i32, i32
  }
  func.func @transform_10(%arg0: i32) -> (i32, i32) {
    %c0_i32 = arith.constant 0 : i32
    %c0_i32_0 = arith.constant 0 : i32
    %c0_i32_1 = arith.constant 0 : i32
    return %c0_i32, %c0_i32_0 : i32, i32
  }
  func.func @transform_11(%arg0: i32) -> (i32, i32) {
    %c0_i32 = arith.constant 0 : i32
    %c0_i32_0 = arith.constant 0 : i32
    %c0_i32_1 = arith.constant 0 : i32
    return %c0_i32, %c0_i32_0 : i32, i32
  }
  func.func @transform_12(%arg0: i32) -> (i32, i32) {
    %c0_i32 = arith.constant 0 : i32
    %c0_i32_0 = arith.constant 0 : i32
    %c0_i32_1 = arith.constant 0 : i32
    return %c0_i32, %c0_i32_0 : i32, i32
  }
  func.func @transform_13(%arg0: i32) -> (i32, i32) {
    %c0_i32 = arith.constant 0 : i32
    %c0_i32_0 = arith.constant 0 : i32
    %c0_i32_1 = arith.constant 0 : i32
    return %c0_i32, %c0_i32_0 : i32, i32
  }
  func.func @transform_14(%arg0: i32) -> (i32, i32) {
    %c0_i32 = arith.constant 0 : i32
    %c0_i32_0 = arith.constant 0 : i32
    %c0_i32_1 = arith.constant 0 : i32
    return %c0_i32, %c0_i32_0 : i32, i32
  }
  func.func @transform_15(%arg0: i32) -> (i32, i32) {
    %c0_i32 = arith.constant 0 : i32
    %c0_i32_0 = arith.constant 0 : i32
    %c0_i32_1 = arith.constant 0 : i32
    return %c0_i32, %c0_i32_0 : i32, i32
  }
  func.func @transform_16(%arg0: i32) -> (i32, i32, i32) {
    %c0_i32 = arith.constant 0 : i32
    %c0_i32_0 = arith.constant 0 : i32
    %c0_i32_1 = arith.constant 0 : i32
    %c0_i32_2 = arith.constant 0 : i32
    return %c0_i32, %c0_i32_0, %c0_i32_1 : i32, i32, i32
  }
  func.func @transform_17(%arg0: i32) -> (i32, i32) {
    %c0_i32 = arith.constant 0 : i32
    %c0_i32_0 = arith.constant 0 : i32
    %c0_i32_1 = arith.constant 0 : i32
    return %c0_i32, %c0_i32_0 : i32, i32
  }
  func.func @transform_18(%arg0: i32) -> (i32, i32) {
    %c0_i32 = arith.constant 0 : i32
    %c0_i32_0 = arith.constant 0 : i32
    %c0_i32_1 = arith.constant 0 : i32
    return %c0_i32, %c0_i32_0 : i32, i32
  }
  func.func @transform_19(%arg0: i32) -> (i32, i32) {
    %c0_i32 = arith.constant 0 : i32
    %c0_i32_0 = arith.constant 0 : i32
    %c0_i32_1 = arith.constant 0 : i32
    return %c0_i32, %c0_i32_0 : i32, i32
  }
  func.func @transform_20(%arg0: i32) -> (i32, i32) {
    %c0_i32 = arith.constant 0 : i32
    %c0_i32_0 = arith.constant 0 : i32
    %c0_i32_1 = arith.constant 0 : i32
    return %c0_i32, %c0_i32_0 : i32, i32
  }
  func.func @transform_21(%arg0: i32) -> (i32, i32, i32) {
    %c0_i32 = arith.constant 0 : i32
    %c0_i32_0 = arith.constant 0 : i32
    %c0_i32_1 = arith.constant 0 : i32
    %c0_i32_2 = arith.constant 0 : i32
    return %c0_i32, %c0_i32_0, %c0_i32_1 : i32, i32, i32
  }
  func.func @transform_22(%arg0: i32) -> (i32, i32) {
    %c0_i32 = arith.constant 0 : i32
    %c0_i32_0 = arith.constant 0 : i32
    %c0_i32_1 = arith.constant 0 : i32
    return %c0_i32, %c0_i32_0 : i32, i32
  }
  func.func @transform_23(%arg0: i32) -> (i32, i32) {
    %c0_i32 = arith.constant 0 : i32
    %c0_i32_0 = arith.constant 0 : i32
    %c0_i32_1 = arith.constant 0 : i32
    return %c0_i32, %c0_i32_0 : i32, i32
  }
  func.func @transform_24(%arg0: i32) -> (i32, i32) {
    %c0_i32 = arith.constant 0 : i32
    %c0_i32_0 = arith.constant 0 : i32
    %c0_i32_1 = arith.constant 0 : i32
    return %c0_i32, %c0_i32_0 : i32, i32
  }
  func.func @transform_25(%arg0: i32) -> (i32, i32, i32) {
    %c0_i32 = arith.constant 0 : i32
    %c0_i32_0 = arith.constant 0 : i32
    %c0_i32_1 = arith.constant 0 : i32
    return %arg0, %c0_i32, %c0_i32_0 : i32, i32, i32
  }
}

</mosaic_0001>

<bundles_post_ra>
// kernel: fcn_forward.1
= control target key start
LH: loop header
LB: loop body
LE: loop exit
PB: predicated region body
PF: predicated region fallthrough
CT: control target
= control target key end

     0   :  { %s9847_s29 = smov 0   ;;  %s12957_s0 = inlined_call_operand.vmem [shape: f32[2,64,128], index: 0, kind: input, shape index: {}]   ;;  %s12958_s1 = inlined_call_operand.vmem [shape: bf16[128,1280], index: 1, kind: input, shape index: {}]   ;;  %s12959_s2 = inlined_call_operand.vmem [shape: f32[1,256], index: 2, kind: input, shape index: {}]   ;;  %s12960_s3 = inlined_call_operand.vmem [shape: bf16[32,64], index: 3, kind: input, shape index: {}]   ;;  %s12961_s4 = inlined_call_operand.vmem [shape: bf16[256,128], index: 4, kind: input, shape index: {}]   ;;  %s12962_s5 = inlined_call_operand.vmem [shape: bf16[256,128], index: 5, kind: input, shape index: {}]   ;;  %s12963_s6 = inlined_call_operand.vmem [shape: bf16[128,1280], index: 6, kind: input, shape index: {}]   ;;  %s12964_s7 = inlined_call_operand.vmem [shape: f32[1,256], index: 7, kind: input, shape index: {}]   ;;  %s12965_s8 = inlined_call_operand.vmem [shape: bf16[16,32], index: 8, kind: input, shape index: {}]   ;;  %s12966_s9 = inlined_call_operand.vmem [shape: bf16[256,128], index: 9, kind: input, shape index: {}]   ;;  %s12967_s10 = inlined_call_operand.vmem [shape: bf16[256,128], index: 10, kind: input, shape index: {}]   ;;  %s12968_s11 = inlined_call_operand.vmem [shape: bf16[128,640], index: 11, kind: input, shape index: {}]   ;;  %s12969_s12 = inlined_call_operand.vmem [shape: f32[1,128], index: 12, kind: input, shape index: {}]   ;;  %s12970_s13 = inlined_call_operand.vmem [shape: bf16[128,640], index: 13, kind: input, shape index: {}]   ;;  %s12971_s14 = inlined_call_operand.vmem [shape: f32[1,128], index: 14, kind: input, shape index: {}]   ;;  %s12972_s15 = inlined_call_operand.vmem [shape: bf16[128,640], index: 15, kind: input, shape index: {}]   ;;  %s12973_s16 = inlined_call_operand.vmem [shape: bf16[5,32,16], index: 16, kind: input, shape index: {}]   ;;  %s12974_s17 = inlined_call_operand.vmem [shape: f32[1,128], index: 17, kind: input, shape index: {}]   ;;  %s12975_s18 = inlined_call_operand.vmem [shape: bf16[128,640], index: 18, kind: input, shape index: {}]   ;;  %s12976_s19 = inlined_call_operand.vmem [shape: f32[1,128], index: 19, kind: input, shape index: {}]   ;;  %s12977_s20 = inlined_call_operand.vmem [shape: bf16[128,640], index: 20, kind: input, shape index: {}]   ;;  %s12978_s21 = inlined_call_operand.vmem [shape: bf16[5,64,32], index: 21, kind: input, shape index: {}]   ;;  %s12979_s22 = inlined_call_operand.vmem [shape: f32[1,128], index: 22, kind: input, shape index: {}]   ;;  %s12980_s23 = inlined_call_operand.vmem [shape: bf16[128,640], index: 23, kind: input, shape index: {}]   ;;  %s12981_s24 = inlined_call_operand.vmem [shape: f32[1,128], index: 24, kind: input, shape index: {}]   ;;  %s12982_s25 = inlined_call_operand.vmem [shape: f32[2,64,128], index: 25, kind: output, shape index: {}]  }
   0x1   :  { %13056 = sst [smem:[#allocation27_spill]] %s12957_s0 }
   0x2   :  { %13057 = sst [smem:[#allocation28_spill]] %s12958_s1 }
   0x3   :  { %13058 = sst [smem:[#allocation29_spill]] %s12959_s2 }
   0x4   :  { %13059 = sst [smem:[#allocation30_spill]] %s12960_s3 }
   0x5   :  { %13060 = sst [smem:[#allocation31_spill]] %s12961_s4 }
   0x6   :  { %13061 = sst [smem:[#allocation32_spill]] %s12962_s5 }
   0x7   :  { %13062 = sst [smem:[#allocation33_spill]] %s12963_s6 }
   0x8   :  { %13063 = sst [smem:[#allocation34_spill]] %s12964_s7 }
   0x9   :  { %13064 = sst [smem:[#allocation35_spill]] %s12965_s8 }
   0xa   :  { %13065 = sst [smem:[#allocation36_spill]] %s12966_s9 }
   0xb LB: > { %s8007_s2 = sadd.s32 4294967295, %s9712_s29   ;;  %p8011_p0 = scmp.ge.s32.totalorder %s9712_s29, 1  ;;  %s9712_s29 = sphi %s9847_s29, %s35_s29  }
   0xc   : > { %p687_p1 = scmp.lt.s32.totalorder %s9712_s29, 3 }
   0xe   : > { %p688_p2 = pnand %p8011_p0, %p687_p1 }
  0x10   : > { %691 = sbr.rel (%p688_p2) target bundleno = 3370 (0xd2a), region = 120 }
  0x15   : > { %s13066_s7 = sld [smem:[#allocation28_spill]]  ;;  %v12989_v2 = vmov 0   ;;  %p755_p3 = scmp.lt.s32.totalorder %s8007_s2, 1 }
  0x16   : > { %1290 = vmatprep.mubr.bf16.mxu0 %v12989_v2  ;;  %1363 = vmatprep.mubr.bf16.mxu1 %v12989_v2  ;;  %s13067_s0 = sld [smem:[#allocation27_spill]] }
  0x17   : > { %s13219_s2 = smov (!%p755_p3, %s8007_s2), 1  ;;  %s13081_s28 = sld [smem:[#allocation29_spill]] }
  0x18   : > { %s13021_s1 = sshll.u32 %s13219_s2, 6  ;;  %s13138_s26 = sld [smem:[#allocation30_spill]] }
  0x19   : > { %s13144_s30 = sld [smem:[#allocation34_spill]]  ;;  %s13205_s4 = sshll.u32 %s13219_s2, 6 }
  0x1a   : > { %s12912_s9 = scalar_lea.vmem %s12982_s25, %s13205_s4 }
  0x1b   : > { %v9033_v0 = vld [vmem:[%s13066_s7 + $0x234] ss:$40 sps:$4 sm:$0xff]   ;;  %v9037_v3 = vld [vmem:[%s13066_s7 + $0x230] ss:$40 sps:$4 sm:$0xff]   ;;  %v9039_v5 = vld [vmem:[%s13066_s7 + $0x1e4] ss:$40 sps:$4 sm:$0xff]  }
  0x1c   : > { %v9035_v1 = vld [vmem:[%s13066_s7 + $0x23c] ss:$40 sps:$4 sm:$0xff]   ;;  %1258 = vmatprep.subr.bf16.mxu0 %v9033_v0  ;;  %v9038_v4 = vld [vmem:[%s13066_s7 + $0x238] ss:$40 sps:$4 sm:$0xff]   ;;  %v9041_v6 = vld [vmem:[%s13066_s7 + $0x1ec] ss:$40 sps:$4 sm:$0xff]   ;;  %s9953_s6 = scalar_lea.vmem %s13067_s0, %s13021_s1 }
  0x1d   : > { %1331 = vmatprep.subr.bf16.mxu1 %v9035_v1  ;;  %1259 = vmatpush1.bf16.msra.mxu0 %v9037_v3  ;;  %v9043_v7 = vld [vmem:[%s13066_s7 + $0x1e0] ss:$40 sps:$4 sm:$0xff]   ;;  %v9045_v9 = vld [vmem:[%s13066_s7 + $0x194] ss:$40 sps:$4 sm:$0xff]   ;;  %v9049_v11 = vld [vmem:[%s13066_s7 + $0x190] ss:$40 sps:$4 sm:$0xff]  }
  0x1e   : > { %1332 = vmatpush1.bf16.msra.mxu1 %v9038_v4  ;;  %1260 = vmatprep.subr.bf16.mxu0 %v9039_v5  ;;  %v9044_v8 = vld [vmem:[%s13066_s7 + $0x1e8] ss:$40 sps:$4 sm:$0xff]   ;;  %v9047_v10 = vld [vmem:[%s13066_s7 + $0x19c] ss:$40 sps:$4 sm:$0xff]   ;;  %v9050_v12 = vld [vmem:[%s13066_s7 + $0x198] ss:$40 sps:$4 sm:$0xff]  }
  0x1f   : > { %1333 = vmatprep.subr.bf16.mxu1 %v9041_v6  ;;  %v9051_v13 = vld [vmem:[%s13066_s7 + $0x144] ss:$40 sps:$4 sm:$0xff]   ;;  %v9055_v15 = vld [vmem:[%s13066_s7 + $0x140] ss:$40 sps:$4 sm:$0xff]   ;;  %v9057_v17 = vld [vmem:[%s13066_s7 + $0xf4] ss:$40 sps:$4 sm:$0xff]  }
  0x20   : > { %v9053_v14 = vld [vmem:[%s13066_s7 + $0x14c] ss:$40 sps:$4 sm:$0xff]   ;;  %v9056_v16 = vld [vmem:[%s13066_s7 + $0x148] ss:$40 sps:$4 sm:$0xff]   ;;  %v9059_v18 = vld [vmem:[%s13066_s7 + $0xfc] ss:$40 sps:$4 sm:$0xff]  }
  0x21   : > { %1261 = vmatpush1.bf16.msra.mxu0 %v9043_v7  ;;  %v9061_v19 = vld [vmem:[%s13066_s7 + $0xf0] ss:$40 sps:$4 sm:$0xff]   ;;  %v9063_v21 = vld [vmem:[%s13066_s7 + $0xa4] ss:$40 sps:$4 sm:$0xff]   ;;  %v9067_v23 = vld [vmem:[%s13066_s7 + $0xa0] ss:$40 sps:$4 sm:$0xff]  }
  0x22   : > { %1334 = vmatpush1.bf16.msra.mxu1 %v9044_v8  ;;  %1262 = vmatprep.subr.bf16.mxu0 %v9045_v9  ;;  %v9062_v20 = vld [vmem:[%s13066_s7 + $0xf8] ss:$40 sps:$4 sm:$0xff]   ;;  %v9065_v22 = vld [vmem:[%s13066_s7 + $0xac] ss:$40 sps:$4 sm:$0xff]   ;;  %v9068_v24 = vld [vmem:[%s13066_s7 + $0xa8] ss:$40 sps:$4 sm:$0xff]  }
  0x23   : > { %1335 = vmatprep.subr.bf16.mxu1 %v9047_v10  ;;  %v9069_v25 = vld [vmem:[%s13066_s7 + $0x54] ss:$40 sps:$4 sm:$0xff]   ;;  %v9073_v27 = vld [vmem:[%s13066_s7 + $0x50] ss:$40 sps:$4 sm:$0xff]   ;;  %v9075_v29 = vld [vmem:[%s13066_s7 + $0x4] ss:$40 sps:$4 sm:$0xff]  }
  0x24   : > { %v9071_v26 = vld [vmem:[%s13066_s7 + $0x5c] ss:$40 sps:$4 sm:$0xff]   ;;  %v9074_v28 = vld [vmem:[%s13066_s7 + $0x58] ss:$40 sps:$4 sm:$0xff]   ;;  %v9077_v30 = vld [vmem:[%s13066_s7 + $0xc] ss:$40 sps:$4 sm:$0xff]  }
  0x25   : > { %1263 = vmatpush1.bf16.msra.mxu0 %v9049_v11  ;;  %v9079_v31 = vld [vmem:[%s13066_s7] ss:$40 sps:$4 sm:$0xff]   ;;  %v9083_v35 = vld [vmem:[%s13066_s7 + $0x244] ss:$40 sps:$4 sm:$0xff]   ;;  %v9089_v40 = vld [vmem:[%s13066_s7 + $0x1f4] ss:$40 sps:$4 sm:$0xff]  }
  0x26   : > { %1336 = vmatpush1.bf16.msra.mxu1 %v9050_v12  ;;  %1264 = vmatprep.subr.bf16.mxu0 %v9051_v13  ;;  %v9080_v32 = vld [vmem:[%s13066_s7 + $0x8] ss:$40 sps:$4 sm:$0xff]   ;;  %v766_v33 = vld [vmem:[%s9953_s6] sm:$0xff]  ;;  %v9086_v36 = vld [vmem:[%s13066_s7 + $0x24c] ss:$40 sps:$4 sm:$0xff]   ;;  %s13137_s0 = sld [smem:[#allocation32_spill]] }
  0x27   : > { %1337 = vmatprep.subr.bf16.mxu1 %v9053_v14  ;;  %v767_v34 = vld [vmem:[%s9953_s6 + $0x8] sm:$0xff]  ;;  %v9092_v41 = vld [vmem:[%s13066_s7 + $0x1fc] ss:$40 sps:$4 sm:$0xff]   ;;  %v9087_v42 = vld [vmem:[%s13066_s7 + $0x1f0] ss:$40 sps:$4 sm:$0xff]   ;;  %s13140_s1 = sld [smem:[#allocation33_spill]] }
  0x28   : > { %v9975_v37 = vpack.c.bf16 %v767_v34, %v766_v33  ;;  %v9081_v38 = vld [vmem:[%s13066_s7 + $0x240] ss:$40 sps:$4 sm:$0xff]   ;;  %v768_v44 = vld [vmem:[%s9953_s6 + $0x10] sm:$0xff]  ;;  %v769_v45 = vld [vmem:[%s9953_s6 + $0x18] sm:$0xff] }
  0x29   : > { %1265 = vmatpush1.bf16.msra.mxu0 %v9055_v15  ;;  %v9084_v39 = vld [vmem:[%s13066_s7 + $0x248] ss:$40 sps:$4 sm:$0xff]   ;;  %v9090_v43 = vld [vmem:[%s13066_s7 + $0x1f8] ss:$40 sps:$4 sm:$0xff]   ;;  %v9095_v46 = vld [vmem:[%s13066_s7 + $0x1a4] ss:$40 sps:$4 sm:$0xff]   ;;  %v10007_v48 = vpack.c.bf16 %v769_v45, %v768_v44 }
  0x2a   : > { %1338 = vmatpush1.bf16.msra.mxu1 %v9056_v16  ;;  %1266 = vmatprep.subr.bf16.mxu0 %v9057_v17  ;;  %v9098_v47 = vld [vmem:[%s13066_s7 + $0x1ac] ss:$40 sps:$4 sm:$0xff]   ;;  %v9093_v49 = vld [vmem:[%s13066_s7 + $0x1a0] ss:$40 sps:$4 sm:$0xff]   ;;  %v9104_v52 = vld [vmem:[%s13066_s7 + $0x15c] ss:$40 sps:$4 sm:$0xff]  }
  0x2b   : > { %1339 = vmatprep.subr.bf16.mxu1 %v9059_v18  ;;  %v9096_v50 = vld [vmem:[%s13066_s7 + $0x1a8] ss:$40 sps:$4 sm:$0xff]   ;;  %v9101_v51 = vld [vmem:[%s13066_s7 + $0x154] ss:$40 sps:$4 sm:$0xff]   ;;  %v9102_v54 = vld [vmem:[%s13066_s7 + $0x158] ss:$40 sps:$4 sm:$0xff]  }
  0x2c   : > { %v9099_v53 = vld [vmem:[%s13066_s7 + $0x150] ss:$40 sps:$4 sm:$0xff]   ;;  %v770_v55 = vld [vmem:[%s9953_s6 + $0x20] sm:$0xff]  ;;  %v771_v56 = vld [vmem:[%s9953_s6 + $0x28] sm:$0xff] }
  0x2d   : > { %1267 = vmatpush1.bf16.msra.mxu0 %v9061_v19  ;;  %v9107_v57 = vld [vmem:[%s13066_s7 + $0x104] ss:$40 sps:$4 sm:$0xff]   ;;  %v10039_v59 = vpack.c.bf16 %v771_v56, %v770_v55  ;;  %v9105_v60 = vld [vmem:[%s13066_s7 + $0x100] ss:$40 sps:$4 sm:$0xff]   ;;  %v9113_v62 = vld [vmem:[%s13066_s7 + $0xb4] ss:$40 sps:$4 sm:$0xff]  }
  0x2e   : > { %1340 = vmatpush1.bf16.msra.mxu1 %v9062_v20  ;;  %1268 = vmatprep.subr.bf16.mxu0 %v9063_v21  ;;  %v9110_v58 = vld [vmem:[%s13066_s7 + $0x10c] ss:$40 sps:$4 sm:$0xff]   ;;  %v9108_v61 = vld [vmem:[%s13066_s7 + $0x108] ss:$40 sps:$4 sm:$0xff]   ;;  %v9116_v63 = vld [vmem:[%s13066_s7 + $0xbc] ss:$40 sps:$4 sm:$0xff]  }
  0x2f   : > { %1341 = vmatprep.subr.bf16.mxu1 %v9065_v22  ;;  %v9111_v0 = vld [vmem:[%s13066_s7 + $0xb0] ss:$40 sps:$4 sm:$0xff]   ;;  %v9119_v5 = vld [vmem:[%s13066_s7 + $0x64] ss:$40 sps:$4 sm:$0xff]   ;;  %v9117_v7 = vld [vmem:[%s13066_s7 + $0x60] ss:$40 sps:$4 sm:$0xff]  }
  0x30   : > { %v9114_v1 = vld [vmem:[%s13066_s7 + $0xb8] ss:$40 sps:$4 sm:$0xff]   ;;  %v772_v3 = vld [vmem:[%s9953_s6 + $0x30] sm:$0xff]  ;;  %v9128_v11 = vld [vmem:[%s13066_s7 + $0x1c] ss:$40 sps:$4 sm:$0xff]  }
  0x31   : > { %1269 = vmatpush1.bf16.msra.mxu0 %v9067_v23  ;;  %v773_v4 = vld [vmem:[%s9953_s6 + $0x38] sm:$0xff]  ;;  %v9122_v6 = vld [vmem:[%s13066_s7 + $0x6c] ss:$40 sps:$4 sm:$0xff]   ;;  %v9120_v8 = vld [vmem:[%s13066_s7 + $0x68] ss:$40 sps:$4 sm:$0xff]   ;;  %s13068_s6 = sld [smem:[#allocation31_spill]] }
  0x32   : > { %1342 = vmatpush1.bf16.msra.mxu1 %v9068_v24  ;;  %1270 = vmatprep.subr.bf16.mxu0 %v9069_v25  ;;  %v10077_v9 = vpack.c.bf16 %v773_v4, %v772_v3  ;;  %v9125_v10 = vld [vmem:[%s13066_s7 + $0x14] ss:$40 sps:$4 sm:$0xff]   ;;  %v9123_v12 = vld [vmem:[%s13066_s7 + $0x10] ss:$40 sps:$4 sm:$0xff]   ;;  %v9134_v16 = vld [vmem:[%s13066_s7 + $0x204] ss:$40 sps:$4 sm:$0xff]  }
  0x33   : > { %1343 = vmatprep.subr.bf16.mxu1 %v9071_v26  ;;  %v9126_v13 = vld [vmem:[%s13066_s7 + $0x18] ss:$40 sps:$4 sm:$0xff]   ;;  %v9131_v14 = vld [vmem:[%s13066_s7 + $0x254] ss:$40 sps:$4 sm:$0xff]   ;;  %v9140_v20 = vld [vmem:[%s13066_s7 + $0x164] ss:$40 sps:$4 sm:$0xff]  }
  0x34   : > { %v9129_v15 = vld [vmem:[%s13066_s7 + $0x250] ss:$40 sps:$4 sm:$0xff]   ;;  %v9132_v17 = vld [vmem:[%s13066_s7 + $0x200] ss:$40 sps:$4 sm:$0xff]   ;;  %v9137_v18 = vld [vmem:[%s13066_s7 + $0x1b4] ss:$40 sps:$4 sm:$0xff]  }
  0x35   : > { %1271 = vmatpush1.bf16.msra.mxu0 %v9073_v27  ;;  %v9135_v19 = vld [vmem:[%s13066_s7 + $0x1b0] ss:$40 sps:$4 sm:$0xff]   ;;  %v9138_v21 = vld [vmem:[%s13066_s7 + $0x160] ss:$40 sps:$4 sm:$0xff]   ;;  %v9143_v22 = vld [vmem:[%s13066_s7 + $0x114] ss:$40 sps:$4 sm:$0xff]  }
  0x36   : > { %1344 = vmatpush1.bf16.msra.mxu1 %v9074_v28  ;;  %1272 = vmatprep.subr.bf16.mxu0 %v9075_v29  ;;  %v9141_v23 = vld [vmem:[%s13066_s7 + $0x110] ss:$40 sps:$4 sm:$0xff]   ;;  %v9146_v24 = vld [vmem:[%s13066_s7 + $0xc4] ss:$40 sps:$4 sm:$0xff]   ;;  %v9144_v25 = vld [vmem:[%s13066_s7 + $0xc0] ss:$40 sps:$4 sm:$0xff]  }
  0x37   : > { %1345 = vmatprep.subr.bf16.mxu1 %v9077_v30  ;;  %v9149_v26 = vld [vmem:[%s13066_s7 + $0x74] ss:$40 sps:$4 sm:$0xff]   ;;  %v9147_v27 = vld [vmem:[%s13066_s7 + $0x70] ss:$40 sps:$4 sm:$0xff]   ;;  %v9152_v28 = vld [vmem:[%s13066_s7 + $0x24] ss:$40 sps:$4 sm:$0xff]   ;;  %v1623_v30 = vlaneseq }
  0x38   : > { %v9150_v29 = vld [vmem:[%s13066_s7 + $0x20] ss:$40 sps:$4 sm:$0xff]   ;;  %v9161_v56 = vld [vmem:[%s13068_s6 + $0x30] sm:$0xff]   ;;  %s13150_s7 = sld [smem:[#allocation35_spill]] }
  0x39   : > { %1273 = vmatpush1.bf16.msra.mxu0 %v9079_v31  ;;  %v10166_v31 = vshrl.u32 %v1623_v30, 7  ;;  %v9167_v3 = vld [vmem:[%s13068_s6 + $0x60] sm:$0xff]  }
  0x3a   : > { %1346 = vmatpush1.bf16.msra.mxu1 %v9080_v32  ;;  %1404 = vmatprep.subr.bf16.mxu0 %v9083_v35 }
  0x3b   : > { %1477 = vmatprep.subr.bf16.mxu1 %v9086_v36  ;;  %vm1744_vm0 = vcmp.lt.s32.totalorder %v10166_v31, 2  ;;  %v1636_v30 = vand.u32 15, %v10166_v31  ;;  %vm1841_vm2 = vcmp.lt.s32.totalorder %v10166_v31, 1  ;;  %vm1938_vm10 = vcmp.lt.s32.totalorder %v10166_v31, 7 }
  0x3c   : > { %1291 = vmatmul.mubr.bf16.vlgmr.msra.gmra.mxu0 %v9975_v37  ;;  %vm2035_vm14 = vcmp.lt.s32.totalorder %v10166_v31, 6 }
  0x3d   : > { %1364 = vmatmul.mubr.bf16.vlgmr.msra.gmra.mxu1 %v9975_v37  ;;  %1405 = vmatpush1.bf16.msra.mxu0 %v9081_v38 }
  0x3e   : > { %1478 = vmatpush1.bf16.msra.mxu1 %v9084_v39  ;;  %1406 = vmatprep.subr.bf16.mxu0 %v9089_v40 }
  0x3f   : > { %1479 = vmatprep.subr.bf16.mxu1 %v9092_v41  ;;  %1300 = vmatprep.mubr.bf16.mxu0 %v12989_v2 }
  0x40   : > { %1373 = vmatprep.mubr.bf16.mxu1 %v12989_v2 }
  0x41   : > { %1407 = vmatpush1.bf16.msra.mxu0 %v9087_v42 }
  0x42   : > { %1480 = vmatpush1.bf16.msra.mxu1 %v9090_v43  ;;  %1408 = vmatprep.subr.bf16.mxu0 %v9095_v46 }
  0x43   : > { %1481 = vmatprep.subr.bf16.mxu1 %v9098_v47 }
  0x44   : > { %1301 = vmatmul.mubr.bf16.gmra.mxu0 %v10007_v48 }
  0x45   : > { %1374 = vmatmul.mubr.bf16.gmra.mxu1 %v10007_v48  ;;  %1409 = vmatpush1.bf16.msra.mxu0 %v9093_v49  ;;  %v9157_v49 = vld [vmem:[%s13068_s6 + $0x38] sm:$0xff]  }
  0x46   : > { %1482 = vmatpush1.bf16.msra.mxu1 %v9096_v50  ;;  %1410 = vmatprep.subr.bf16.mxu0 %v9101_v51  ;;  %v9159_v51 = vld [vmem:[%s13068_s6 + $0x70] sm:$0xff]  }
  0x47   : > { %1483 = vmatprep.subr.bf16.mxu1 %v9104_v52  ;;  %1310 = vmatprep.mubr.bf16.mxu0 %v12989_v2 }
  0x48   : > { %1383 = vmatprep.mubr.bf16.mxu1 %v12989_v2 }
  0x49   : > { %1411 = vmatpush1.bf16.msra.mxu0 %v9099_v53 }
  0x4a   : > { %1484 = vmatpush1.bf16.msra.mxu1 %v9102_v54  ;;  %1412 = vmatprep.subr.bf16.mxu0 %v9107_v57  ;;  %v10212_v54 = vadd.s32 16, %v10166_v31 }
  0x4b   : > { %1485 = vmatprep.subr.bf16.mxu1 %v9110_v58 }
  0x4c   : > { %1311 = vmatmul.mubr.bf16.gmra.mxu0 %v10039_v59  ;;  %13069 = vst [vmem:[#allocation2_spill] sm:$0xff] %v10212_v54 }
  0x4d   : > { %1384 = vmatmul.mubr.bf16.gmra.mxu1 %v10039_v59  ;;  %1413 = vmatpush1.bf16.msra.mxu0 %v9105_v60 }
  0x4e   : > { %1486 = vmatpush1.bf16.msra.mxu1 %v9108_v61  ;;  %1414 = vmatprep.subr.bf16.mxu0 %v9113_v62 }
  0x4f   : > { %1487 = vmatprep.subr.bf16.mxu1 %v9116_v63  ;;  %1320 = vmatprep.mubr.bf16.mxu0 %v12989_v2  ;;  %v1650_v63 = vand.u32 15, %v10212_v54 }
  0x50   : > { %1393 = vmatprep.mubr.bf16.mxu1 %v12989_v2 }
  0x51   : > { %1415 = vmatpush1.bf16.msra.mxu0 %v9111_v0  ;;  %v1628_v0 = vadd.s32 32, %v10166_v31 }
  0x52   : > { %1488 = vmatpush1.bf16.msra.mxu1 %v9114_v1  ;;  %1416 = vmatprep.subr.bf16.mxu0 %v9119_v5  ;;  %v9165_v1 = vld [vmem:[%s13068_s6 + $0x28] sm:$0xff]  }
  0x53   : > { %1489 = vmatprep.subr.bf16.mxu1 %v9122_v6 }
  0x54   : > { %1321 = vmatmul.mubr.bf16.gmra.mxu0 %v10077_v9 }
  0x55   : > { %1394 = vmatmul.mubr.bf16.gmra.mxu1 %v10077_v9  ;;  %1417 = vmatpush1.bf16.msra.mxu0 %v9117_v7 }
  0x56   : > { %1490 = vmatpush1.bf16.msra.mxu1 %v9120_v8  ;;  %1418 = vmatprep.subr.bf16.mxu0 %v9125_v10  ;;  %v10248_v10 = vadd.s32 4294967294, %v1650_v63 }
  0x57   : > { %1491 = vmatprep.subr.bf16.mxu1 %v9128_v11  ;;  %1436 = vmatprep.mubr.bf16.mxu0 %v12989_v2  ;;  %v1664_v11 = vand.u32 15, %v1628_v0  ;;  %v10319_v0 = vadd.s32 4294967294, %v1636_v30 }
  0x58   : > { %1509 = vmatprep.mubr.bf16.mxu1 %v12989_v2  ;;  %13071 = vst [vmem:[#allocation4_spill] sm:$0xff] %v10248_v10  ;;  %vm13037_vm1 = vcmp.ge.s32.totalorder %v10248_v10, 0 }
  0x59   : > { %1419 = vmatpush1.bf16.msra.mxu0 %v9123_v12  ;;  %v1630_v12 = vadd.s32 48, %v10166_v31  ;;  %13077 = vst [vmem:[#allocation10_spill] sm:$0xff] %v10319_v0  ;;  %vm13026_vm5 = vcmp.ge.s32.totalorder %v10319_v0, 0 }
  0x5a   : > { %1492 = vmatpush1.bf16.msra.mxu1 %v9126_v13  ;;  %1550 = vmatprep.subr.bf16.mxu0 %v9131_v14  ;;  %v9169_v13 = vld [vmem:[%s13068_s6 + $0x20] sm:$0xff]  }
  0x5c   : > { %1437 = vmatmul.mubr.bf16.vlgmr.msra.gmra.mxu0 %v9975_v37 }
  0x5d   : > { %1510 = vmatmul.mubr.bf16.vlgmr.msra.gmra.mxu1 %v9975_v37  ;;  %1551 = vmatpush1.bf16.msra.mxu0 %v9129_v15  ;;  %v10255_v15 = vadd.s32 8, %v10166_v31 }
  0x5e   : > { %1446 = vmatprep.mubr.bf16.mxu0 %v12989_v2  ;;  %1552 = vmatprep.subr.bf16.mxu0 %v9134_v16  ;;  %v10258_v16 = vadd.s32 24, %v10166_v31 }
  0x5f   : > { %1519 = vmatprep.mubr.bf16.mxu1 %v12989_v2  ;;  %13072 = vst [vmem:[#allocation5_spill] sm:$0xff] %v10255_v15 }
  0x60   : > { %13073 = vst [vmem:[#allocation6_spill] sm:$0xff] %v10258_v16 }
  0x61   : > { %1553 = vmatpush1.bf16.msra.mxu0 %v9132_v17 }
  0x62   : > { %1554 = vmatprep.subr.bf16.mxu0 %v9137_v18 }
  0x64   : > { %1447 = vmatmul.mubr.bf16.gmra.mxu0 %v10007_v48 }
  0x65   : > { %1520 = vmatmul.mubr.bf16.gmra.mxu1 %v10007_v48  ;;  %1555 = vmatpush1.bf16.msra.mxu0 %v9135_v19  ;;  %v10265_v19 = vadd.s32 40, %v10166_v31 }
  0x66   : > { %1456 = vmatprep.mubr.bf16.mxu0 %v12989_v2  ;;  %1556 = vmatprep.subr.bf16.mxu0 %v9140_v20  ;;  %v9171_v20 = vld [vmem:[%s13068_s6 + $0x58] sm:$0xff]  }
  0x67   : > { %1529 = vmatprep.mubr.bf16.mxu1 %v12989_v2 }
  0x69   : > { %1557 = vmatpush1.bf16.msra.mxu0 %v9138_v21 }
  0x6a   : > { %1558 = vmatprep.subr.bf16.mxu0 %v9143_v22  ;;  %v10275_v22 = vadd.s32 56, %v10166_v31 }
  0x6c   : > { %1457 = vmatmul.mubr.bf16.gmra.mxu0 %v10039_v59 }
  0x6d   : > { %1530 = vmatmul.mubr.bf16.gmra.mxu1 %v10039_v59  ;;  %1559 = vmatpush1.bf16.msra.mxu0 %v9141_v23  ;;  %v9173_v23 = vld [vmem:[%s13068_s6 + $0x18] sm:$0xff]  }
  0x6e   : > { %1466 = vmatprep.mubr.bf16.mxu0 %v12989_v2  ;;  %1560 = vmatprep.subr.bf16.mxu0 %v9146_v24 }
  0x6f   : > { %1539 = vmatprep.mubr.bf16.mxu1 %v12989_v2 }
  0x71   : > { %1561 = vmatpush1.bf16.msra.mxu0 %v9144_v25 }
  0x72   : > { %1562 = vmatprep.subr.bf16.mxu0 %v9149_v26 }
  0x74   : > { %1467 = vmatmul.mubr.bf16.gmra.mxu0 %v10077_v9 }
  0x75   : > { %1540 = vmatmul.mubr.bf16.gmra.mxu1 %v10077_v9  ;;  %1563 = vmatpush1.bf16.msra.mxu0 %v9147_v27  ;;  %v9175_v27 = vld [vmem:[%s13068_s6 + $0x50] sm:$0xff]  }
  0x76   : > { %1582 = vmatprep.mubr.bf16.mxu0 %v12989_v2  ;;  %1564 = vmatprep.subr.bf16.mxu0 %v9152_v28 }
  0x77   : > { %2301 = vmatprep.mubr.bf16.mxu1 %v12989_v2 }
  0x79   : > { %1565 = vmatpush1.bf16.msra.mxu0 %v9150_v29 }
  0x7c   : > { %1583 = vmatmul.mubr.bf16.vlgmr.msra.gmra.mxu0 %v9975_v37 }
  0x7d   : > { %1592 = vmatprep.mubr.bf16.mxu0 %v12989_v2 }
  0x84   : > { %1593 = vmatmul.mubr.bf16.gmra.mxu0 %v10007_v48  ;;  %v9155_v48 = vld [vmem:[%s13068_s6 + $0x78] sm:$0xff]  }
  0x85   : > { %1602 = vmatprep.mubr.bf16.mxu0 %v12989_v2  ;;  %8604 = vmatprep.subr.bf16.mxu0 %v9155_v48  ;;  %v10303_v48 = vadd.s32 4294967295, %v1650_v63  ;;  %v1685_v63 = vand.u32 15, %v10275_v22 }
  0x86   : > { %8605 = vmatpush3.bf16.msra.mxu0 %v9157_v49  ;;  %v1643_v49 = vand.u32 15, %v10255_v15  ;;  %v13088_v15 = vsub.s32 1, %v10166_v31 }
  0x87   : > { %8606 = vmatprep.subr.bf16.mxu0 %v9159_v51  ;;  %13075 = vst [vmem:[#allocation8_spill] sm:$0xff] %v10303_v48  ;;  %v1657_v51 = vand.u32 15, %v10258_v16  ;;  %vm13035_vm3 = vcmp.ge.s32.totalorder %v10303_v48, 0 }
  0x89   : > { %v10340_v22 = vadd.s32 1, %v1657_v51 }
  0x8a   : > { %8607 = vmatpush3.bf16.msra.mxu0 %v9161_v56 }
  0x8b   : > { %13082 = vst [vmem:[#allocation14_spill] sm:$0xff] %v10340_v22  ;;  %vm13012_vm12 = vcmp.lt.s32.totalorder %v10340_v22, 16 }
  0x8c   : > { %1603 = vmatmul.mubr.bf16.gmra.mxu0 %v10039_v59  ;;  %v9163_v59 = vld [vmem:[%s13068_s6 + $0x68] sm:$0xff]  }
  0x8d   : > { %1612 = vmatprep.mubr.bf16.mxu0 %v12989_v2  ;;  %8608 = vmatprep.subr.bf16.mxu0 %v9163_v59 }
  0x8e   : > { %8609 = vmatpush3.bf16.msra.mxu0 %v9165_v1  ;;  %v10321_v1 = vadd.s32 4294967295, %v1636_v30 }
  0x8f   : > { %8610 = vmatprep.subr.bf16.mxu0 %v9167_v3 }
  0x90   : > { %13078 = vst [vmem:[#allocation11_spill] sm:$0xff] %v10321_v1  ;;  %vm13013_vm7 = vcmp.ge.s32.totalorder %v10321_v1, 0 }
  0x92   : > { %8611 = vmatpush3.bf16.msra.mxu0 %v9169_v13  ;;  %v10332_v13 = vadd.s32 4294967295, %v1664_v11 }
  0x93   : > { %8612 = vmatprep.subr.bf16.mxu0 %v9171_v20  ;;  %v10338_v20 = vadd.s32 1, %v1643_v49 }
  0x94   : > { %1613 = vmatmul.mubr.bf16.gmra.mxu0 %v10077_v9  ;;  %13080 = vst [vmem:[#allocation13_spill] sm:$0xff] %v10332_v13  ;;  %vm13020_vm6 = vcmp.ge.s32.totalorder %v10332_v13, 0 }
  0x95   : > { %vm13033_vm11 = vcmp.lt.s32.totalorder %v10338_v20, 16 }
  0x96   : > { %8613 = vmatpush3.bf16.msra.mxu0 %v9173_v23 }
  0x97   : > { %8614 = vmatprep.subr.bf16.mxu0 %v9175_v27 }
  0xfc   : > { %v10168_v32 = vpop.f32.mrf.mxu0 }
  0xfd   : > { %v10170_v33 = vpop.f32.mrf.mxu1  ;;  %v12992_v38 = vrot.slane %v10168_v32, 6 }
  0xfe   : > { %v10172_v34 = vpop.f32.mrf.mxu0 }
  0xff   : > { %v10174_v35 = vpop.f32.mrf.mxu1 }
 0x100   : > { %v1296_v36 = vpop.f32.mrf.mxu0 }
 0x101   : > { %v10176_v37 = vpop.f32.mrf.mxu1  ;;  %v1730_v39 = vrot.slane %v1296_v36, 6  ;;  %v1678_v36 = vand.u32 15, %v1630_v12 }
 0x102   : > { %v10180_v40 = vpop.f32.mrf.mxu0 }
 0x103   : > { %v10182_v41 = vpop.f32.mrf.mxu1  ;;  %v10188_v42 = vsel %vm1744_vm0, %v12992_v38, %v1730_v39  ;;  %v10323_v3 = vadd.s32 4294967294, %v1678_v36  ;;  %v10342_v23 = vadd.s32 4294967295, %v1678_v36 }
 0x104   : > { %v1302_v43 = vpop.f32.mrf.mxu0 }
 0x105   : > { %v10190_v44 = vpop.f32.mrf.mxu1  ;;  %v1732_v45 = vrot.slane %v1302_v43, 6  ;;  %13079 = vst [vmem:[#allocation12_spill] sm:$0xff] %v10323_v3  ;;  %13083 = vst [vmem:[#allocation15_spill] sm:$0xff] %v10342_v23  ;;  %vm13016_vm8 = vcmp.ge.s32.totalorder %v10323_v3, 0  ;;  %vm13010_vm9 = vcmp.ge.s32.totalorder %v10342_v23, 0 }
 0x106   : > { %v10192_v46 = vpop.f32.mrf.mxu0  ;;  %v1829_v2 = vrot.slane %v10190_v44, 7 }
 0x107   : > { %v10194_v47 = vpop.f32.mrf.mxu1  ;;  %v10204_v50 = vsel %vm1744_vm0, %v1730_v39, %v1732_v45  ;;  %v1733_v36 = vrot.slane %v10192_v46, 6  ;;  %v10372_v46 = vadd.s32 2, %v1657_v51 }
 0x108   : > { %v1306_v52 = vpop.f32.mrf.mxu0 }
 0x109   : > { %v10209_v53 = vpop.f32.mrf.mxu1  ;;  %v1734_v55 = vrot.slane %v1306_v52, 6  ;;  %v1671_v52 = vand.u32 15, %v10265_v19  ;;  %v10353_v19 = vadd.s32 1, %v1685_v63  ;;  %13091 = vst [vmem:[#allocation21_spill] sm:$0xff] %v10372_v46 }
 0x10a   : > { %v10217_v57 = vpop.f32.mrf.mxu0 }
 0x10b   : > { %v10219_v58 = vpop.f32.mrf.mxu1  ;;  %v10226_v60 = vsel %vm1744_vm0, %v1732_v45, %v1734_v55  ;;  %v10344_v27 = vadd.s32 1, %v1671_v52  ;;  %13085 = vst [vmem:[#allocation17_spill] sm:$0xff] %v10353_v19  ;;  %v10374_v16 = vadd.s32 2, %v1671_v52  ;;  %v1729_v19 = vrot.slane %v10172_v34, 6 }
 0x10c   : > { %13070 = vst [vmem:[#allocation3_spill] sm:$0xff] %v10226_v60  ;;  %v1312_v61 = vpop.f32.mrf.mxu0  ;;  %v13096_v60 = vrot.slane %v10174_v35, 7 }
 0x10d   : > { %v10228_v62 = vpop.f32.mrf.mxu1  ;;  %v1736_v4 = vrot.slane %v1312_v61, 6  ;;  %v10316_v61 = vadd.s32 4294967294, %v1664_v11  ;;  %13084 = vst [vmem:[#allocation16_spill] sm:$0xff] %v10344_v27  ;;  %v1827_v11 = vrot.slane %v10176_v37, 7  ;;  %13092 = vst [vmem:[#allocation22_spill] sm:$0xff] %v10374_v16  ;;  %vm13011_vm13 = vcmp.lt.s32.totalorder %v10344_v27, 16 }
 0x10e   : > { %v10238_v5 = vpop.f32.mrf.mxu0 }
 0x10f   : > { %v10240_v6 = vpop.f32.mrf.mxu1  ;;  %v10244_v7 = vsel %vm1744_vm0, %v1734_v55, %v1736_v4  ;;  %v9177_v55 = vld [vmem:[%s13068_s6 + $0x10] sm:$0xff]   ;;  %13076 = vst [vmem:[#allocation9_spill] sm:$0xff] %v10316_v61  ;;  %vm13027_vm4 = vcmp.ge.s32.totalorder %v10316_v61, 0 }
 0x110   : > { %v1316_v8 = vpop.f32.mrf.mxu0  ;;  %8615 = vmatpush3.bf16.msra.mxu0 %v9177_v55  ;;  %v13086_v55 = vsub.s32 0, %v10166_v31 }
 0x111   : > { %v10246_v9 = vpop.f32.mrf.mxu1  ;;  %v1738_v14 = vrot.slane %v1316_v8, 6 }
 0x112   : > { %v10260_v17 = vpop.f32.mrf.mxu0 }
 0x113   : > { %v10262_v18 = vpop.f32.mrf.mxu1  ;;  %v10272_v21 = vsel %vm1744_vm0, %v1736_v4, %v1738_v14  ;;  %v1828_v4 = vrot.slane %v10182_v41, 7  ;;  %v10370_v41 = vadd.s32 2, %v1643_v49  ;;  %v13094_v49 = vrot.slane %v10170_v33, 7 }
 0x114   : > { %13074 = vst [vmem:[#allocation7_spill] sm:$0xff] %v10272_v21  ;;  %v10280_v24 = vpop.f32.mrf.mxu0  ;;  %v10380_v21 = vadd.s32 2, %v1685_v63 }
 0x115   : > { %v10282_v25 = vpop.f32.mrf.mxu1  ;;  %v12991_v26 = vrot.slane %v10280_v24, 6  ;;  %13090 = vst [vmem:[#allocation20_spill] sm:$0xff] %v10370_v41  ;;  %v1854_v51 = vsel %vm1841_vm2, %v13094_v49, %v1827_v11  ;;  %v1833_v49 = vrot.slane %v10228_v62, 7 }
 0x116   : > { %v10288_v28 = vpop.f32.mrf.mxu0  ;;  %13093 = vst [vmem:[#allocation23_spill] sm:$0xff] %v10380_v21  ;;  %v10422_v21 = vsel %vm1841_vm2, %v13096_v60, %v1828_v4 }
 0x117   : > { %v10290_v29 = vpop.f32.mrf.mxu1  ;;  %v10297_v39 = vsel %vm1744_vm0, %v1738_v14, %v12991_v26  ;;  %v2116_v14 = vld [vmem:[%s13081_s28] sm:$0x3] }
 0x118   : > { %v10299_v43 = vpop.f32.mrf.mxu0  ;;  %v10361_v30 = vrot.slane %v2116_v14, %v13086_v55  ;;  %v10368_v54 = vrot.slane %v2116_v14, %v13088_v15  ;;  %v1731_v55 = vrot.slane %v10180_v40, 6  ;;  %v1831_v15 = vrot.slane %v10209_v53, 7 }
 0x119   : > { %v10301_v45 = vpop.f32.mrf.mxu1  ;;  %v1852_v40 = vsel %vm1841_vm2, %v1827_v11, %v1829_v2  ;;  %v13095_v53 = vrot.slane %v10194_v47, 7  ;;  %v1832_v11 = vrot.slane %v10219_v58, 7 }
 0x11a   : > { %v10311_v56 = vpop.f32.mrf.mxu0  ;;  %13087 = vst [vmem:[#allocation18_spill] sm:$0xff] %v10361_v30  ;;  %13089 = vst [vmem:[#allocation19_spill] sm:$0xff] %v10368_v54  ;;  %v1756_v14 = vsel %vm1744_vm0, %v1731_v55, %v1733_v36  ;;  %v10416_v62 = vsel %vm1744_vm0, %v1729_v19, %v1731_v55 }
 0x11b   : > { %v10313_v59 = vpop.f32.mrf.mxu1  ;;  %v10430_v58 = vsel %vm13037_vm1, %v1756_v14, 0.0 }
 0x11c   : > { %v10326_v8 = vpop.f32.mrf.mxu0 }
 0x11d   : > { %v10329_v12 = vpop.f32.mrf.mxu1 }
 0x11e   : > { %v10349_v26 = vpop.f32.mrf.mxu0 }
 0x11f   : > { %v10351_v38 = vpop.f32.mrf.mxu1 }
 0x120   : > { %v1442_v37 = vpop.f32.mrf.mxu0 }
 0x121   : > { %v10364_v44 = vpop.f32.mrf.mxu1  ;;  %v1811_v30 = vadd.f32 %v10188_v42, %v1442_v37  ;;  %v1735_v42 = vrot.slane %v10217_v57, 6  ;;  %v1853_v37 = vsel %vm1841_vm2, %v1828_v4, %v13095_v53  ;;  %v1797_v57 = vsel %vm13037_vm1, %v10204_v50, 0.0 }
 0x122   : > { %v10388_v52 = vpop.f32.mrf.mxu0  ;;  %v1894_v50 = vsel %vm13035_vm3, %v1852_v40, 0.0  ;;  %v10434_v55 = vsel %vm13035_vm3, %v1853_v37, 0.0  ;;  %v10445_v40 = vsel %vm1841_vm2, %v1829_v2, %v1831_v15  ;;  %v1835_v37 = vrot.slane %v10246_v9, 7 }
 0x123   : > { %v10390_v34 = vpop.f32.mrf.mxu1  ;;  %v10395_v63 = vadd.f32 %v1854_v51, %v1811_v30  ;;  %v10449_v14 = vsel %vm1744_vm0, %v1733_v36, %v1735_v42  ;;  %v13098_v51 = vrot.slane %v10299_v43, 6  ;;  %v1848_v2 = vsel %vm1841_vm2, %v1831_v15, %v1833_v49 }
 0x124   : > { %v1448_v16 = vpop.f32.mrf.mxu0  ;;  %v13099_v36 = vrot.slane %v10238_v5, 6  ;;  %v1836_v15 = vrot.slane %v10262_v18, 7  ;;  %v1840_v18 = vrot.slane %v10313_v59, 7  ;;  %v10520_v59 = vsel %vm1841_vm2, %v1833_v49, %v1835_v37 }
 0x125   : > { %v10409_v30 = vpop.f32.mrf.mxu1  ;;  %v1813_v53 = vadd.f32 %v1797_v57, %v1448_v16  ;;  %v13097_v57 = vrot.slane %v10168_v32, 6  ;;  %v10492_v32 = vsel %vm13027_vm4, %v10244_v7, 0.0  ;;  %13105 = vst [vmem:[#allocation26_spill] sm:$0xff] %v10520_v59 }
 0x126   : > { %v10426_v54 = vpop.f32.mrf.mxu0  ;;  %v1752_v9 = vsel %vm1744_vm0, %v1735_v42, %v13099_v36  ;;  %v13101_v42 = vrot.slane %v10194_v47, 7  ;;  %v13102_v47 = vrot.slane %v10311_v56, 6 }
 0x127   : > { %v10436_v16 = vpop.f32.mrf.mxu1  ;;  %v10441_v4 = vadd.f32 %v1894_v50, %v1813_v53  ;;  %v1759_v48 = vsel %vm1744_vm0, %v13098_v51, %v13097_v57  ;;  %v13100_v57 = vrot.slane %v10240_v6, 7  ;;  %v10506_v51 = vsel %vm13020_vm6, %v1848_v2, 0.0 }
 0x128   : > { %v10459_v53 = vpop.f32.mrf.mxu0  ;;  %v10485_v36 = vsel %vm1841_vm2, %v13101_v42, %v1832_v11  ;;  %v1793_v46 = vsel %vm13026_vm5, %v1759_v48, 0.0  ;;  %13103 = vst [vmem:[#allocation24_spill] sm:$0xff] %v10506_v51  ;;  %v1926_v51 = vrot.slane %v10409_v30, 1  ;;  %v13110_v30 = vrot.slane %v10290_v29, 7 }
 0x129   : > { %v10461_v50 = vpop.f32.mrf.mxu1  ;;  %v1849_v10 = vsel %vm1841_vm2, %v1832_v11, %v13100_v57  ;;  %v1739_v57 = vrot.slane %v10260_v17, 6  ;;  %v1760_v11 = vsel %vm1744_vm0, %v13102_v47, %v1729_v19  ;;  %v10512_v17 = vsel %vm13027_vm4, %v1752_v9, 0.0 }
 0x12a   : > { %v10479_v41 = vpop.f32.mrf.mxu0  ;;  %v10516_v48 = vsel %vm13020_vm6, %v1849_v10, 0.0  ;;  %v13106_v19 = vrot.slane %v10170_v33, 7  ;;  %v13107_v47 = vrot.slane %v10301_v45, 7  ;;  %v13108_v9 = vrot.slane %v10282_v25, 7 }
 0x12b   : > { %v10487_v60 = vpop.f32.mrf.mxu1  ;;  %13104 = vst [vmem:[#allocation25_spill] sm:$0xff] %v10516_v48  ;;  %v13109_v10 = vrot.slane %v10288_v28, 6  ;;  %v1809_v61 = vadd.f32 %v1793_v46, %v10326_v8  ;;  %v1794_v59 = vsel %vm13026_vm5, %v1760_v11, 0.0  ;;  %v1924_v46 = vrot.slane %v10364_v44, 1 }
 0x12c   : > { %v10502_v42 = vpop.f32.mrf.mxu0  ;;  %v1856_v2 = vsel %vm1841_vm2, %v13107_v47, %v13106_v19  ;;  %v1844_v13 = vsel %vm1841_vm2, %v1835_v37, %v13108_v9  ;;  %v1845_v37 = vsel %vm1841_vm2, %v1836_v15, %v13110_v30  ;;  %v13111_v9 = vrot.slane %v10174_v35, 7 }
 0x12d   : > { %v10508_v7 = vpop.f32.mrf.mxu1  ;;  %v1748_v49 = vsel %vm1744_vm0, %v1739_v57, %v13109_v10  ;;  %v1925_v33 = vrot.slane %v10390_v34, 1  ;;  %v1890_v11 = vsel %vm13013_vm7, %v1856_v2, 0.0  ;;  %v1927_v0 = vrot.slane %v10436_v16, 1 }
 0x12e   : > { %v1460_v19 = vpop.f32.mrf.mxu0  ;;  %v1857_v10 = vsel %vm1841_vm2, %v1840_v18, %v13111_v9  ;;  %v13112_v35 = vrot.slane %v10238_v5, 6  ;;  %v13113_v8 = vrot.slane %v10240_v6, 7  ;;  %v1810_v34 = vadd.f32 %v1794_v59, %v10349_v26 }
 0x12f   : > { %v10541_v47 = vpop.f32.mrf.mxu1  ;;  %v1949_v16 = vsel %vm1938_vm10, %v1924_v46, %v1926_v51  ;;  %v10576_v2 = vsel %vm13016_vm8, %v10297_v39, 0.0  ;;  %v10580_v5 = vsel %vm13010_vm9, %v1844_v13, 0.0  ;;  %v1891_v6 = vsel %vm13013_vm7, %v1857_v10, 0.0 }
 0x130   : > { %v1462_v48 = vpop.f32.mrf.mxu0  ;;  %v1750_v9 = vsel %vm1744_vm0, %v13112_v35, %v1739_v57  ;;  %v10568_v44 = vsel %vm1841_vm2, %v13113_v8, %v1836_v15  ;;  %v10588_v26 = vsel %vm13016_vm8, %v1748_v49, 0.0  ;;  %v10592_v59 = vsel %vm13010_vm9, %v1845_v37, 0.0 }
 0x131   : > { %v10558_v30 = vpop.f32.mrf.mxu1  ;;  %v13114_v39 = vrot.slane %v10299_v43, 6  ;;  %v13115_v8 = vrot.slane %v10280_v24, 6  ;;  %v1906_v10 = vadd.f32 %v1890_v11, %v1809_v61  ;;  %v13116_v35 = vrot.slane %v10329_v12, 1 }
 0x132   : > { %v1464_v57 = vpop.f32.mrf.mxu0  ;;  %v1812_v49 = vadd.f32 %v10416_v62, %v10388_v52  ;;  %v13117_v37 = vrot.slane %v10351_v38, 1  ;;  %v1989_v24 = vsel %vm13033_vm11, %v1949_v16, 0.0  ;;  %v1950_v61 = vsel %vm1938_vm10, %v1925_v33, %v1927_v0 }
 0x133   : > { %v10584_v15 = vpop.f32.mrf.mxu1  ;;  %v10600_v13 = vsel %vm1744_vm0, %v13115_v8, %v13114_v39  ;;  %v1951_v1 = vsel %vm1938_vm10, %v13116_v35, %v1924_v46  ;;  %v1814_v39 = vadd.f32 %v10430_v58, %v10426_v54  ;;  %v1930_v11 = vrot.slane %v10508_v7, 1 }
 0x134   : > { %v1952_v43 = vsel %vm1938_vm10, %v13117_v37, %v1925_v33  ;;  %v1468_v46 = vpop.f32.mrf.mxu0  ;;  %v1907_v52 = vadd.f32 %v1891_v6, %v1810_v34  ;;  %v1928_v62 = vrot.slane %v10461_v50, 1  ;;  %v1931_v35 = vrot.slane %v10541_v47, 1 }
 0x135   : > { %v10619_v8 = vpop.f32.mrf.mxu1  ;;  %v13118_v37 = vrot.slane %v10301_v45, 7  ;;  %v13119_v16 = vrot.slane %v10282_v25, 7  ;;  %v10631_v58 = vadd.f32 %v1951_v1, %v1906_v10  ;;  %v1929_v7 = vrot.slane %v10487_v60, 1 }
 0x136   : > { %v1470_v33 = vpop.f32.mrf.mxu0  ;;  %v13120_v34 = vrot.slane %v10311_v56, 6  ;;  %v13121_v50 = vrot.slane %v10288_v28, 6  ;;  %v13122_v25 = vrot.slane %v10290_v29, 7  ;;  %v1909_v1 = vadd.f32 %v10422_v21, %v1812_v49  ;;  %v13123_v29 = vld [vmem:[#allocation3_spill] sm:$0xff] }
 0x137   : > { %v10629_v54 = vsel %vm1841_vm2, %v13119_v16, %v13118_v37  ;;  %v10648_v6 = vadd.f32 %v1952_v43, %v1907_v52  ;;  %v10651_v60 = vadd.f32 %v1989_v24, %v10395_v63  ;;  %v1990_v56 = vsel %vm13033_vm11, %v1950_v61, 0.0  ;;  %v10655_v28 = vpop.f32.mrf.mxu1  ;;  %v13124_v52 = vld [vmem:[#allocation7_spill] sm:$0xff] }
 0x138   : > { %v1746_v45 = vsel %vm1744_vm0, %v13121_v50, %v13120_v34  ;;  %v10645_v47 = vsel %vm1841_vm2, %v13122_v25, %v1840_v18  ;;  %v1911_v10 = vadd.f32 %v10434_v55, %v1814_v39  ;;  %v1815_v37 = vadd.f32 %v13123_v29, %v10459_v53  ;;  %v1472_v49 = vpop.f32.mrf.mxu0  ;;  %v13127_v25 = vld [vmem:[#allocation20_spill] sm:$0xff] }
 0x139   : > { %v1816_v18 = vadd.f32 %v10449_v14, %v10479_v41  ;;  %v1945_v21 = vsel %vm1938_vm10, %v1928_v62, %v1930_v11  ;;  %v1947_v63 = vsel %vm1938_vm10, %v1926_v51, %v1928_v62  ;;  %v1817_v43 = vadd.f32 %v10492_v32, %v10502_v42 }
 0x13a   : > { %v1946_v55 = vsel %vm1938_vm10, %v1929_v7, %v1931_v35  ;;  %v1932_v53 = vrot.slane %v10558_v30, 1  ;;  %v10672_v24 = vadd.f32 %v1990_v56, %v1909_v1  ;;  %v1948_v41 = vsel %vm1938_vm10, %v1927_v0, %v1929_v7  ;;  %v1474_v61 = vpop.f32.mrf.mxu0  ;;  %v1545_v30 = vpop.f32.mrf.mxu1  ;;  %v13128_v1 = vld [vmem:[#allocation25_spill] sm:$0xff] }
 0x13b   : > { %v1818_v14 = vadd.f32 %v10512_v17, %v1460_v19  ;;  %v1934_v39 = vrot.slane %v10619_v8, 1  ;;  %v1993_v51 = vsel %vm13012_vm12, %v1945_v21, 0.0  ;;  %v1819_v32 = vadd.f32 %v13124_v52, %v1462_v48  ;;  %v13125_v19 = vld [vmem:[#allocation17_spill] sm:$0xff] }
 0x13c   : > { %v1933_v42 = vrot.slane %v10584_v15, 1  ;;  %v1935_v62 = vrot.slane %v10655_v28, 1  ;;  %v1912_v16 = vadd.f32 %v10445_v40, %v1815_v37  ;;  %v10685_v34 = vadd.f32 %v1947_v63, %v10441_v4  ;;  %v10690_v8 = vpop.f32.mrf.mxu0  ;;  %v13126_v15 = vld [vmem:[#allocation24_spill] sm:$0xff]  ;;  %v1547_v21 = vpop.f32.mrf.mxu1 }
 0x13d   : > { %v1994_v0 = vsel %vm13012_vm12, %v1946_v55, 0.0  ;;  %v1820_v17 = vadd.f32 %v1750_v9, %v1464_v57  ;;  %vm13014_vm15 = vcmp.lt.s32.totalorder %v13125_v19, 16  ;;  %v1913_v48 = vadd.f32 %v10485_v36, %v1816_v18 }
 0x13e   : > { %v10693_v7 = vadd.f32 %v1948_v41, %v1911_v10  ;;  %v1914_v50 = vadd.f32 %v13126_v15, %v1817_v43  ;;  %v1943_v40 = vsel %vm1938_vm10, %v1930_v11, %v1932_v53  ;;  %vm13015_vm9 = vcmp.lt.s32.totalorder %v13127_v25, 16  ;;  %v10705_v29 = vpop.f32.mrf.mxu0  ;;  %v13129_v10 = vld [vmem:[#allocation26_spill] sm:$0xff] }
 0x13f   : > { %v10699_v4 = vadd.f32 %v1993_v51, %v1912_v16  ;;  %v1915_v56 = vadd.f32 %v13128_v1, %v1818_v14  ;;  %v1821_v9 = vadd.f32 %v10576_v2, %v1468_v46  ;;  %v1941_v57 = vsel %vm1938_vm10, %v1932_v53, %v1934_v39  ;;  %v13133_v1 = vld [vmem:[#allocation18_spill] sm:$0xff] }
 0x140   : > { %v10707_v36 = vadd.f32 %v1994_v0, %v1913_v48  ;;  %v1916_v37 = vadd.f32 %v13129_v10, %v1819_v32  ;;  %v1944_v11 = vsel %vm1938_vm10, %v1931_v35, %v1933_v42  ;;  %v1942_v18 = vsel %vm1938_vm10, %v1933_v42, %v1935_v62  ;;  %v1588_v55 = vpop.f32.mrf.mxu0 }
 0x141   : > { %v10716_v63 = vadd.f32 %v1943_v40, %v1914_v50  ;;  %v1917_v2 = vadd.f32 %v10568_v44, %v1820_v17  ;;  %v1822_v46 = vadd.f32 %v10588_v26, %v1470_v33  ;;  %v1936_v43 = vrot.slane %v1545_v30, 1  ;;  %v13131_v40 = vld [vmem:[#allocation21_spill] sm:$0xff] }
 0x142   : > { %v1997_v53 = vsel %vm13011_vm13, %v1941_v57, 0.0  ;;  %v1823_v41 = vadd.f32 %v10600_v13, %v1472_v49  ;;  %v2019_v35 = vrot.slane %v10690_v8, 2  ;;  %v2021_v14 = vrot.slane %v1588_v55, 2  ;;  %v1590_v42 = vpop.f32.mrf.mxu0 }
 0x143   : > { %v10724_v51 = vadd.f32 %v1944_v11, %v1915_v56  ;;  %v1918_v52 = vadd.f32 %v10580_v5, %v1821_v9  ;;  %v1998_v32 = vsel %vm13011_vm13, %v1942_v18, 0.0  ;;  %v1937_v44 = vrot.slane %v1547_v21, 1 }
 0x144   : > { %v1824_v26 = vadd.f32 %v1746_v45, %v1474_v61  ;;  %v2020_v33 = vrot.slane %v10705_v29, 2  ;;  %v2048_v13 = vsel %vm2035_vm14, %v2019_v35, %v2021_v14  ;;  %v2022_v49 = vrot.slane %v1590_v42, 2  ;;  %v1594_v45 = vpop.f32.mrf.mxu0 }
 0x145   : > { %v10734_v30 = vadd.f32 %v1997_v53, %v1916_v37  ;;  %v1919_v16 = vadd.f32 %v10592_v59, %v1822_v46  ;;  %v13130_v5 = vrot.slane %v10329_v12, 1  ;;  %v2100_v17 = vadd.f32 %v2048_v13, %v10631_v58 }
 0x146   : > { %v10742_v61 = vadd.f32 %v1998_v32, %v1917_v2  ;;  %v1920_v48 = vadd.f32 %v10629_v54, %v1823_v41  ;;  %v2049_v15 = vsel %vm2035_vm14, %v2020_v33, %v2022_v49  ;;  %v2023_v50 = vrot.slane %v1594_v45, 2  ;;  %v1596_v9 = vpop.f32.mrf.mxu0  ;;  %v13135_v45 = vld [vmem:[#allocation22_spill] sm:$0xff] }
 0x147   : > { %v1953_v0 = vsel %vm1938_vm10, %v1936_v43, %v13130_v5  ;;  %vm13017_vm13 = vcmp.lt.s32.totalorder %v13131_v40, 16  ;;  %v1939_v12 = vsel %vm1938_vm10, %v1934_v39, %v1936_v43  ;;  %v13132_v59 = vrot.slane %v10351_v38, 1  ;;  %v13134_v38 = vld [vmem:[#allocation19_spill] sm:$0xff] }
 0x148   : > { %v2128_v56 = vadd.f32 %v13133_v1, %v2100_v17  ;;  %v2101_v54 = vadd.f32 %v2049_v15, %v10648_v6  ;;  %v2001_v57 = vsel %vm13014_vm15, %v1953_v0, 0.0  ;;  %v1921_v10 = vadd.f32 %v10645_v47, %v1824_v26  ;;  %v1598_v2 = vpop.f32.mrf.mxu0 }
 0x149   : > { %v1954_v58 = vsel %vm1938_vm10, %v1937_v44, %v13132_v59  ;;  %v2046_v37 = vsel %vm2035_vm14, %v2021_v14, %v2023_v50  ;;  %v2024_v11 = vrot.slane %v1596_v9, 2  ;;  %v1940_v6 = vsel %vm1938_vm10, %v1935_v62, %v1937_v44 }
 0x14a   : > { %vm2144_vm12 = vcmp.ge.f32.partialorder %v2128_v56, 0.0  ;;  %v2160_v39 = vmul.f32 0.01, %v2128_v56  ;;  %v2129_v18 = vadd.f32 %v13134_v38, %v2101_v54  ;;  %v2086_v21 = vsel %vm13015_vm9, %v2046_v37, 0.0  ;;  %v1600_v32 = vpop.f32.mrf.mxu0 }
 0x14b   : > { %v2002_v47 = vsel %vm13014_vm15, %v1954_v58, 0.0  ;;  %v2047_v46 = vsel %vm2035_vm14, %v2022_v49, %v2024_v11  ;;  %v2025_v43 = vrot.slane %v1598_v2, 2  ;;  %v2102_v41 = vadd.f32 %v2086_v21, %v10651_v60 }
 0x14c   : > { %v10774_v55 = vsel %vm2144_vm12, %v2128_v56, %v2160_v39  ;;  %v2161_v53 = vmul.f32 0.01, %v2129_v18  ;;  %v2087_v14 = vsel %vm13015_vm9, %v2047_v46, 0.0  ;;  %v10779_v28 = vadd.f32 %v1939_v12, %v1918_v52  ;;  %v1604_v60 = vpop.f32.mrf.mxu0 }
 0x14d   : > { %vm2145_vm7 = vcmp.ge.f32.partialorder %v2129_v18, 0.0  ;;  %v2103_v62 = vadd.f32 %v2087_v14, %v10672_v24  ;;  %v2044_v44 = vsel %vm2035_vm14, %v2023_v50, %v2025_v43  ;;  %v10784_v42 = vadd.f32 %v2001_v57, %v1920_v48 }
 0x14e   : > { %v10786_v26 = vadd.f32 %v1940_v6, %v1919_v16  ;;  %v2104_v13 = vadd.f32 %v2044_v44, %v10685_v34  ;;  %v2026_v49 = vrot.slane %v1600_v32, 2  ;;  %v10789_v5 = vadd.f32 %v2002_v47, %v1921_v10  ;;  %v1606_v15 = vpop.f32.mrf.mxu0 }
 0x14f   : > { %v2192_v0 = vrot.slane %v10774_v55, 1  ;;  %v2131_v52 = vadd.f32 %v13134_v38, %v2103_v62  ;;  %v2027_v17 = vrot.slane %v1604_v60, 2  ;;  %vm13018_vm12 = vcmp.lt.s32.totalorder %v13135_v45, 16 }
 0x150   : > { %v2130_v24 = vadd.f32 %v13133_v1, %v2102_v41  ;;  %v2132_v48 = vadd.f32 %v13133_v1, %v2104_v13  ;;  %v2045_v16 = vsel %vm2035_vm14, %v2024_v11, %v2026_v49  ;;  %v10799_v34 = vsel %vm2145_vm7, %v2129_v18, %v2161_v53  ;;  %v1608_v54 = vpop.f32.mrf.mxu0  ;;  %v13136_v11 = vld [vmem:[#allocation23_spill] sm:$0xff] }
 0x151   : > { %v2105_v50 = vadd.f32 %v2045_v16, %v10693_v7  ;;  %v2042_v12 = vsel %vm2035_vm14, %v2025_v43, %v2027_v17  ;;  %v2028_v59 = vrot.slane %v1606_v15, 2  ;;  %vm2147_vm15 = vcmp.ge.f32.partialorder %v2131_v52, 0.0 }
 0x152   : > { %vm2148_vm9 = vcmp.ge.f32.partialorder %v2132_v48, 0.0  ;;  %v2164_v58 = vmul.f32 0.01, %v2132_v48  ;;  %v2090_v56 = vsel %vm13017_vm13, %v2042_v12, 0.0  ;;  %v2163_v9 = vmul.f32 0.01, %v2131_v52  ;;  %v1610_v21 = vpop.f32.mrf.mxu0 }
 0x153   : > { %v2133_v57 = vadd.f32 %v13134_v38, %v2105_v50  ;;  %v2106_v10 = vadd.f32 %v2090_v56, %v10699_v4  ;;  %v2043_v37 = vsel %vm2035_vm14, %v2026_v49, %v2028_v59  ;;  %v2029_v7 = vrot.slane %v1608_v54, 2 }
 0x154   : > { %vm13019_vm7 = vcmp.lt.s32.totalorder %v13136_v11, 16  ;;  %v2162_v39 = vmul.f32 0.01, %v2130_v24  ;;  %v2091_v18 = vsel %vm13017_vm13, %v2043_v37, 0.0  ;;  %v2193_v2 = vrot.slane %v10799_v34, 1  ;;  %v1614_v53 = vpop.f32.mrf.mxu0 }
 0x155   : > { %vm2146_vm8 = vcmp.ge.f32.partialorder %v2130_v24, 0.0  ;;  %v10815_v6 = vadd.f32 %v13133_v1, %v2106_v10  ;;  %v2107_v47 = vadd.f32 %v2091_v18, %v10707_v36  ;;  %v2040_v4 = vsel %vm2035_vm14, %v2027_v17, %v2029_v7 }
 0x156   : > { %v2030_v46 = vrot.slane %v1610_v21, 2  ;;  %v2108_v43 = vadd.f32 %v2040_v4, %v10716_v63  ;;  %v2165_v41 = vmul.f32 0.01, %v2133_v57  ;;  %v10822_v14 = vsel %vm2148_vm9, %v2132_v48, %v2164_v58  ;;  %v1616_v60 = vpop.f32.mrf.mxu0 }
 0x157   : > { %v10825_v32 = vsel %vm2147_vm15, %v2131_v52, %v2163_v9  ;;  %v2135_v62 = vadd.f32 %v13134_v38, %v2107_v47  ;;  %v2031_v36 = vrot.slane %v1614_v53, 2  ;;  %vm2149_vm13 = vcmp.ge.f32.partialorder %v2133_v57, 0.0 }
 0x158   : > { %v2041_v44 = vsel %vm2035_vm14, %v2028_v59, %v2030_v46  ;;  %v10831_v13 = vmul.f32 0.01, %v10815_v6  ;;  %v2136_v63 = vadd.f32 %v13133_v1, %v2108_v43  ;;  %v10836_v17 = vsel %vm2146_vm8, %v2130_v24, %v2162_v39  ;;  %v1618_v59 = vpop.f32.mrf.mxu0 }
 0x159   : > { %v2109_v49 = vadd.f32 %v2041_v44, %v10724_v51  ;;  %v2038_v52 = vsel %vm2035_vm14, %v2029_v7, %v2031_v36  ;;  %v2032_v48 = vrot.slane %v1616_v60, 2  ;;  %vm2151_vm9 = vcmp.ge.f32.partialorder %v2135_v62, 0.0 }
 0x15a   : > { %v2167_v16 = vmul.f32 0.01, %v2135_v62  ;;  %v2168_v15 = vmul.f32 0.01, %v2136_v63  ;;  %v2094_v12 = vsel %vm13018_vm12, %v2038_v52, 0.0  ;;  %v10843_v58 = vsel %vm2149_vm13, %v2133_v57, %v2165_v41  ;;  %v1620_v9 = vpop.f32.mrf.mxu0 }
 0x15b   : > { %v2137_v50 = vadd.f32 %v13134_v38, %v2109_v49  ;;  %vm2152_vm15 = vcmp.ge.f32.partialorder %v2136_v63, 0.0  ;;  %v2110_v51 = vadd.f32 %v2094_v12, %v10734_v30  ;;  %v2039_v24 = vsel %vm2035_vm14, %v2030_v46, %v2032_v48 }
 0x15c   : > { %v2033_v56 = vrot.slane %v1618_v59, 2  ;;  %v2095_v54 = vsel %vm13018_vm12, %v2039_v24, 0.0  ;;  %v10850_v37 = vsel %vm2151_vm9, %v2135_v62, %v2167_v16  ;;  %v2034_v47 = vrot.slane %v1620_v9, 2 }
 0x15d   : > { %vm2153_vm8 = vcmp.ge.f32.partialorder %v2137_v50, 0.0  ;;  %v2169_v10 = vmul.f32 0.01, %v2137_v50  ;;  %v2138_v7 = vadd.f32 %v13133_v1, %v2110_v51  ;;  %v2111_v57 = vadd.f32 %v2095_v54, %v10742_v61 }
 0x15e   : > { %v2036_v39 = vsel %vm2035_vm14, %v2031_v36, %v2033_v56  ;;  %v2050_v30 = vsel %vm2035_vm14, %v2033_v56, %v2019_v35  ;;  %v10864_v4 = vsel %vm2152_vm15, %v2136_v63, %v2168_v15  ;;  %v2037_v35 = vsel %vm2035_vm14, %v2032_v48, %v2034_v47 }
 0x15f   : > { %v2098_v18 = vsel %vm13019_vm7, %v2050_v30, 0.0  ;;  %v2112_v21 = vadd.f32 %v2036_v39, %v10779_v28  ;;  %v2170_v46 = vmul.f32 0.01, %v2138_v7  ;;  %v2139_v61 = vadd.f32 %v13134_v38, %v2111_v57 }
 0x160   : > { %v2114_v43 = vadd.f32 %v2098_v18, %v10784_v42  ;;  %v10868_v53 = vsel %vm2153_vm8, %v2137_v50, %v2169_v10  ;;  %v2051_v28 = vsel %vm2035_vm14, %v2034_v47, %v2020_v33  ;;  %vm2154_vm13 = vcmp.ge.f32.partialorder %v2138_v7, 0.0 }
 0x161   : > { %v2140_v8 = vadd.f32 %v13133_v1, %v2112_v21  ;;  %v2099_v62 = vsel %vm13019_vm7, %v2051_v28, 0.0  ;;  %v2113_v42 = vadd.f32 %v2037_v35, %v10786_v26  ;;  %vm2155_vm9 = vcmp.ge.f32.partialorder %v2139_v61, 0.0 }
 0x162   : > { %v2142_v41 = vadd.f32 %v13133_v1, %v2114_v43  ;;  %v2115_v36 = vadd.f32 %v2099_v62, %v10789_v5  ;;  %v2171_v63 = vmul.f32 0.01, %v2139_v61  ;;  %vm2150_vm8 = vcmp.ge.f32.partialorder %v10815_v6, 0.0 }
 0x163   : > { %vm2156_vm15 = vcmp.ge.f32.partialorder %v2140_v8, 0.0  ;;  %v2172_v44 = vmul.f32 0.01, %v2140_v8  ;;  %v2141_v49 = vadd.f32 %v13134_v38, %v2113_v42  ;;  %v2201_v33 = vrot.slane %v10868_v53, 1 }
 0x164   : > { %v2174_v29 = vmul.f32 0.01, %v2142_v41  ;;  %vm2158_vm12 = vcmp.ge.f32.partialorder %v2142_v41, 0.0  ;;  %v2143_v1 = vadd.f32 %v13134_v38, %v2115_v36  ;;  %v2187_v52 = vsel %vm2155_vm9, %v2139_v61, %v2171_v63 }
 0x165   : > { %v2188_v60 = vsel %vm2156_vm15, %v2140_v8, %v2172_v44  ;;  %v2186_v26 = vsel %vm2154_vm13, %v2138_v7, %v2170_v46  ;;  %vm2157_vm7 = vcmp.ge.f32.partialorder %v2141_v49, 0.0  ;;  %v2173_v48 = vmul.f32 0.01, %v2141_v49 }
 0x166   : > { %v2190_v16 = vsel %vm2158_vm12, %v2142_v41, %v2174_v29  ;;  %v2204_v15 = vrot.slane %v2188_v60, 1  ;;  %vm2159_vm6 = vcmp.ge.f32.partialorder %v2143_v1, 0.0  ;;  %v2175_v5 = vmul.f32 0.01, %v2143_v1 }
 0x167   : > { %v2206_v50 = vrot.slane %v2190_v16, 1  ;;  %v2203_v12 = vrot.slane %v2187_v52, 1  ;;  %v2189_v59 = vsel %vm2157_vm7, %v2141_v49, %v2173_v48  ;;  %v2200_v51 = vrot.slane %v10864_v4, 1 }
 0x168   : > { %v2202_v24 = vrot.slane %v2186_v26, 1  ;;  %v2197_v56 = vrot.slane %v10843_v58, 1  ;;  %v2191_v54 = vsel %vm2159_vm6, %v2143_v1, %v2175_v5  ;;  %v2205_v38 = vrot.slane %v2189_v59, 1 }
 0x169   : > { %v2208_v9 = vsel %vm1938_vm10, %v2204_v15, %v2206_v50  ;;  %v2222_v10 = vsel %vm1938_vm10, %v2206_v50, %v2192_v0  ;;  %v2207_v7 = vrot.slane %v2191_v54, 1  ;;  %v2199_v30 = vrot.slane %v10850_v37, 1 }
 0x16a   : > { %v2236_v57 = vmax.f32 %v2188_v60, %v2208_v9  ;;  %v2238_v39 = vmax.f32 %v2190_v16, %v2222_v10  ;;  %v2211_v18 = vsel %vm1938_vm10, %v2203_v12, %v2205_v38  ;;  %v2213_v21 = vsel %vm1938_vm10, %v2201_v33, %v2203_v12  ;;  %v9164_v9 = vld [vmem:[%s13137_s0 + $0x68] sm:$0xff]  }
 0x16b   : > { %v2210_v47 = vsel %vm1938_vm10, %v2202_v24, %v2204_v15  ;;  %v2212_v46 = vsel %vm1938_vm10, %v2200_v51, %v2202_v24  ;;  %v2209_v61 = vsel %vm1938_vm10, %v2205_v38, %v2207_v7  ;;  %v2223_v43 = vsel %vm1938_vm10, %v2207_v7, %v2193_v2  ;;  %v9162_v38 = vld [vmem:[%s13137_s0 + $0x30] sm:$0xff]   ;;  %v9154_v10 = vld [vmem:[%s13138_s26 + $0x8] sm:$0xff]  }
 0x16c   : > { %v2250_v8 = vpack.c.bf16 %v2238_v39, %v2236_v57  ;;  %v2235_v35 = vmax.f32 %v2187_v52, %v2211_v18  ;;  %v2237_v28 = vmax.f32 %v2189_v59, %v2209_v61  ;;  %v2239_v41 = vmax.f32 %v2191_v54, %v2223_v43  ;;  %v9166_v7 = vld [vmem:[%s13137_s0 + $0x28] sm:$0xff]   ;;  %v9168_v57 = vld [vmem:[%s13137_s0 + $0x60] sm:$0xff]   ;;  %v9174_v18 = vld [vmem:[%s13137_s0 + $0x18] sm:$0xff]  }
 0x16d   : > { %v2232_v62 = vmax.f32 %v10864_v4, %v2212_v46  ;;  %v2234_v42 = vmax.f32 %v2186_v26, %v2210_v47  ;;  %v2233_v44 = vmax.f32 %v10868_v53, %v2213_v21  ;;  %v2215_v36 = vsel %vm1938_vm10, %v2199_v30, %v2201_v33  ;;  %v9170_v39 = vld [vmem:[%s13137_s0 + $0x20] sm:$0xff]   ;;  %v9176_v21 = vld [vmem:[%s13137_s0 + $0x50] sm:$0xff]   ;;  %v9179_v46 = vld [vmem:[%s13068_s6 + $0x48] sm:$0xff]  }
 0x16e   : > { %v2217_v63 = vsel %vm1938_vm10, %v2197_v56, %v2199_v30  ;;  %v2182_v29 = vsel %vm2150_vm8, %v10815_v6, %v10831_v13  ;;  %v2251_v49 = vpack.c.bf16 %v2239_v41, %v2237_v28  ;;  %v2231_v4 = vmax.f32 %v10850_v37, %v2215_v36  ;;  %v9172_v30 = vld [vmem:[%s13137_s0 + $0x58] sm:$0xff]   ;;  %v9178_v47 = vld [vmem:[%s13137_s0 + $0x10] sm:$0xff]   ;;  %v9180_v61 = vld [vmem:[%s13137_s0 + $0x48] sm:$0xff]   ;;  %8616 = vmatprep.subr.bf16.mxu0 %v9179_v46 }
 0x16f   : > { %v2248_v1 = vpack.c.bf16 %v2234_v42, %v2232_v62  ;;  %v2229_v60 = vmax.f32 %v10843_v58, %v2217_v63  ;;  %v2196_v52 = vrot.slane %v10822_v14, 1  ;;  %v2198_v53 = vrot.slane %v2182_v29, 1  ;;  %v9181_v43 = vld [vmem:[%s13068_s6 + $0x8] sm:$0xff]   ;;  %v9184_v28 = vld [vmem:[%s13137_s0 + $0x40] sm:$0xff]   ;;  %v9189_v42 = vld [vmem:[%s13140_s1 + $0x234] ss:$40 sps:$4 sm:$0xff]  }
 0x170   : > { %v2195_v26 = vrot.slane %v10825_v32, 1  ;;  %v2194_v33 = vrot.slane %v10836_v17, 1  ;;  %2277 = vmatprep.subr.bf16.mxu1 %v2251_v49  ;;  %v2249_v48 = vpack.c.bf16 %v2235_v35, %v2233_v44  ;;  %vm2262_vm6 = vcmask 523264   ;;  %8617 = vmatpush3.bf16.msra.mxu0 %v9181_v43  ;;  %v9183_v35 = vld [vmem:[%s13068_s6 + $0x40] sm:$0xff]  }
 0x171   : > { %v2247_v16 = vpack.c.bf16 %v2231_v4, %v2229_v60  ;;  %2278 = vmatpush1.bf16.msra.mxu1 %v2250_v8  ;;  %v2214_v6 = vsel %vm1938_vm10, %v2198_v53, %v2200_v51  ;;  %v2216_v13 = vsel %vm1938_vm10, %v2196_v52, %v2198_v53  ;;  %v9182_v8 = vld [vmem:[%s13137_s0 + $0x8] sm:$0xff]   ;;  %v9185_v41 = vld [vmem:[%s13068_s6] sm:$0xff]   ;;  %8618 = vmatprep.subr.bf16.mxu0 %v9183_v35  ;;  %v9187_v60 = vld [vmem:[%s13140_s1 + $0x230] ss:$40 sps:$4 sm:$0xff]  }
 0x172   : > { %v2219_v58 = vsel %vm1938_vm10, %v2195_v26, %v2197_v56  ;;  %v2221_v37 = vsel %vm1938_vm10, %v2193_v2, %v2195_v26  ;;  %2279 = vmatprep.subr.bf16.mxu1 %v2249_v48  ;;  %v2228_v15 = vmax.f32 %v10822_v14, %v2216_v13  ;;  %v2230_v5 = vmax.f32 %v2182_v29, %v2214_v6  ;;  %v9186_v62 = vld [vmem:[%s13137_s0] sm:$0xff]   ;;  %v9196_v6 = vld [vmem:[%s13140_s1 + $0x1e8] ss:$40 sps:$4 sm:$0xff]  }
 0x173   : > { %v2225_v50 = vmax.f32 %v10799_v34, %v2221_v37  ;;  %v2227_v12 = vmax.f32 %v10825_v32, %v2219_v58  ;;  %v2218_v59 = vsel %vm1938_vm10, %v2194_v33, %v2196_v52  ;;  %v2220_v51 = vsel %vm1938_vm10, %v2192_v0, %v2194_v33  ;;  %v9156_v34 = vld [vmem:[%s13137_s0 + $0x78] sm:$0xff]   ;;  %v9153_v32 = vld [vmem:[%s13138_s26] sm:$0xff]   ;;  %v9160_v0 = vld [vmem:[%s13137_s0 + $0x70] sm:$0xff]   ;;  %s13149_s26 = sld [smem:[#allocation36_spill]] }
 0x174   : > { %v2246_v24 = vpack.c.bf16 %v2230_v5, %v2228_v15  ;;  %v2224_v2 = vmax.f32 %v10774_v55, %v2220_v51  ;;  %v2226_v54 = vmax.f32 %v10836_v17, %v2218_v59  ;;  %v9158_v55 = vld [vmem:[%s13137_s0 + $0x38] sm:$0xff]   ;;  %v13139_v17 = vmov 0   ;;  %8619 = vmatpush3.bf16.msra.mxu0 %v9185_v41  ;;  %v9195_v26 = vld [vmem:[%s13140_s1 + $0x1e4] ss:$40 sps:$4 sm:$0xff]  }
 0x175   : > { %v2245_v56 = vpack.c.bf16 %v2227_v12, %v2225_v50  ;;  %2280 = vmatpush1.bf16.msra.mxu1 %v2248_v1  ;;  %v9192_v44 = vld [vmem:[%s13140_s1 + $0x23c] ss:$40 sps:$4 sm:$0xff]   ;;  %3166 = vmatprep.subr.bf16.mxu0 %v9189_v42  ;;  %v9190_v4 = vld [vmem:[%s13140_s1 + $0x238] ss:$40 sps:$4 sm:$0xff]   ;;  %v9198_v33 = vld [vmem:[%s13140_s1 + $0x1ec] ss:$40 sps:$4 sm:$0xff]  }
 0x176   : > { %2281 = vmatprep.subr.bf16.mxu1 %v2247_v16  ;;  %v2244_v14 = vpack.c.bf16 %v2226_v54, %v2224_v2  ;;  %v9193_v16 = vld [vmem:[%s13140_s1 + $0x1e0] ss:$40 sps:$4 sm:$0xff]   ;;  %v9201_v58 = vld [vmem:[%s13140_s1 + $0x194] ss:$40 sps:$4 sm:$0xff]   ;;  %v9199_v12 = vld [vmem:[%s13140_s1 + $0x190] ss:$40 sps:$4 sm:$0xff]  }
 0x177   : > { %v9204_v37 = vld [vmem:[%s13140_s1 + $0x19c] ss:$40 sps:$4 sm:$0xff]   ;;  %v9202_v59 = vld [vmem:[%s13140_s1 + $0x198] ss:$40 sps:$4 sm:$0xff]   ;;  %v9208_v2 = vld [vmem:[%s13140_s1 + $0x148] ss:$40 sps:$4 sm:$0xff]  }
 0x178   : > { %v9207_v51 = vld [vmem:[%s13140_s1 + $0x144] ss:$40 sps:$4 sm:$0xff]   ;;  %v9213_v54 = vld [vmem:[%s13140_s1 + $0xf4] ss:$40 sps:$4 sm:$0xff]  }
 0x179   : > { %2282 = vmatpush1.bf16.msra.mxu1 %v2246_v24  ;;  %v9210_v24 = vld [vmem:[%s13140_s1 + $0x14c] ss:$40 sps:$4 sm:$0xff]  }
 0x17a   : > { %2283 = vmatprep.subr.bf16.mxu1 %v2245_v56  ;;  %v9205_v56 = vld [vmem:[%s13140_s1 + $0x140] ss:$40 sps:$4 sm:$0xff]   ;;  %v9237_v46 = vld [vmem:[%s13140_s1 + $0x244] ss:$40 sps:$4 sm:$0xff]  }
 0x17d   : > { %2284 = vmatpush1.bf16.msra.mxu1 %v2244_v14  ;;  %v9216_v14 = vld [vmem:[%s13140_s1 + $0xfc] ss:$40 sps:$4 sm:$0xff]  }
 0x17e   : > { %8632 = vmatprep.subr.bf16.mxu1 %v9156_v34  ;;  %v9211_v34 = vld [vmem:[%s13140_s1 + $0xf0] ss:$40 sps:$4 sm:$0xff]  }
 0x180   : > { %8098 = vmatmul.mubr.msk.bf16.vlgmr.msra.gmra.mxu1 %vm2262_vm6, %v9153_v32  ;;  %v9214_v32 = vld [vmem:[%s13140_s1 + $0xf8] ss:$40 sps:$4 sm:$0xff]  }
 0x181   : > { %2311 = vmatprep.mubr.bf16.mxu1 %v13139_v17  ;;  %8633 = vmatpush3.bf16.msra.mxu1 %v9158_v55  ;;  %v9217_v55 = vld [vmem:[%s13140_s1 + $0xa0] ss:$40 sps:$4 sm:$0xff]  }
 0x182   : > { %8634 = vmatprep.subr.bf16.mxu1 %v9160_v0  ;;  %v9219_v0 = vld [vmem:[%s13140_s1 + $0xa4] ss:$40 sps:$4 sm:$0xff]  }
 0x185   : > { %8635 = vmatpush3.bf16.msra.mxu1 %v9162_v38  ;;  %v9220_v38 = vld [vmem:[%s13140_s1 + $0xa8] ss:$40 sps:$4 sm:$0xff]  }
 0x186   : > { %8636 = vmatprep.subr.bf16.mxu1 %v9164_v9  ;;  %v9222_v9 = vld [vmem:[%s13140_s1 + $0xac] ss:$40 sps:$4 sm:$0xff]  }
 0x188   : > { %8099 = vmatmul.mubr.msk.bf16.gmra.mxu1 %vm2262_vm6, %v9154_v10  ;;  %v9223_v10 = vld [vmem:[%s13140_s1 + $0x50] ss:$40 sps:$4 sm:$0xff]  }
 0x189   : > { %8637 = vmatpush3.bf16.msra.mxu1 %v9166_v7  ;;  %v9225_v7 = vld [vmem:[%s13140_s1 + $0x54] ss:$40 sps:$4 sm:$0xff]  }
 0x18a   : > { %8638 = vmatprep.subr.bf16.mxu1 %v9168_v57  ;;  %v9226_v57 = vld [vmem:[%s13140_s1 + $0x58] ss:$40 sps:$4 sm:$0xff]  }
 0x18d   : > { %8639 = vmatpush3.bf16.msra.mxu1 %v9170_v39  ;;  %v9228_v39 = vld [vmem:[%s13140_s1 + $0x5c] ss:$40 sps:$4 sm:$0xff]  }
 0x18e   : > { %8640 = vmatprep.subr.bf16.mxu1 %v9172_v30  ;;  %v9229_v30 = vld [vmem:[%s13140_s1] ss:$40 sps:$4 sm:$0xff]  }
 0x191   : > { %8641 = vmatpush3.bf16.msra.mxu1 %v9174_v18  ;;  %v9231_v18 = vld [vmem:[%s13140_s1 + $0x4] ss:$40 sps:$4 sm:$0xff]  }
 0x192   : > { %8642 = vmatprep.subr.bf16.mxu1 %v9176_v21  ;;  %v9232_v21 = vld [vmem:[%s13140_s1 + $0x8] ss:$40 sps:$4 sm:$0xff]  }
 0x195   : > { %8643 = vmatpush3.bf16.msra.mxu1 %v9178_v47  ;;  %v9234_v47 = vld [vmem:[%s13140_s1 + $0xc] ss:$40 sps:$4 sm:$0xff]  }
 0x196   : > { %8644 = vmatprep.subr.bf16.mxu1 %v9180_v61  ;;  %v9240_v61 = vld [vmem:[%s13140_s1 + $0x24c] ss:$40 sps:$4 sm:$0xff]  }
 0x199   : > { %8645 = vmatpush3.bf16.msra.mxu1 %v9182_v8 }
 0x19a   : > { %8646 = vmatprep.subr.bf16.mxu1 %v9184_v28 }
 0x19d   : > { %8647 = vmatpush3.bf16.msra.mxu1 %v9186_v62 }
 0x19e   : > { %3219 = vmatprep.subr.bf16.mxu1 %v9192_v44 }
 0x240   : > { %v2303_v36 = vpop.f32.mrf.mxu1 }
 0x242   : > { %v2305_v63 = vpop.f32.mrf.mxu1 }
 0x244   : > { %v2307_v29 = vpop.f32.mrf.mxu1 }
 0x245   : > { %v2322_v52 = vpack.c.bf16 %v2307_v29, %v2303_v36 }
 0x246   : > { %v2309_v49 = vpop.f32.mrf.mxu1 }
 0x247   : > { %v2323_v1 = vpack.c.bf16 %v2309_v49, %v2305_v63 }
 0x248   : > { %v2313_v53 = vpop.f32.mrf.mxu1 }
 0x249   : > { %2486 = vmatprep.mubr.bf16.mxu0 %v2323_v1  ;;  %2663 = vmatprep.mubr.bf16.mxu1 %v2323_v1 }
 0x24a   : > { %v2315_v48 = vpop.f32.mrf.mxu1  ;;  %2487 = vmatmul.mubr.bf16.vlgmr.msra.gmra.mxu0 %v2322_v52  ;;  %2664 = vmatmul.mubr.bf16.vlgmr.msra.gmra.mxu1 %v2322_v52 }
 0x24b   : > { %3167 = vmatpush1.bf16.msra.mxu0 %v9187_v60  ;;  %3220 = vmatpush1.bf16.msra.mxu1 %v9190_v4 }
 0x24c   : > { %v2317_v13 = vpop.f32.mrf.mxu1  ;;  %3168 = vmatprep.subr.bf16.mxu0 %v9195_v26  ;;  %3221 = vmatprep.subr.bf16.mxu1 %v9198_v33  ;;  %v9235_v33 = vld [vmem:[%s13140_s1 + $0x240] ss:$40 sps:$4 sm:$0xff]  }
 0x24d   : > { %v2324_v15 = vpack.c.bf16 %v2317_v13, %v2313_v53 }
 0x24e   : > { %v2319_v5 = vpop.f32.mrf.mxu1 }
 0x24f   : > { %v2325_v50 = vpack.c.bf16 %v2319_v5, %v2315_v48  ;;  %3169 = vmatpush1.bf16.msra.mxu0 %v9193_v16  ;;  %3222 = vmatpush1.bf16.msra.mxu1 %v9196_v6  ;;  %v9238_v48 = vld [vmem:[%s13140_s1 + $0x248] ss:$40 sps:$4 sm:$0xff]  }
 0x250   : > { %3170 = vmatprep.subr.bf16.mxu0 %v9201_v58  ;;  %3223 = vmatprep.subr.bf16.mxu1 %v9204_v37  ;;  %v9243_v58 = vld [vmem:[%s13140_s1 + $0x1f4] ss:$40 sps:$4 sm:$0xff]  }
 0x251   : > { %2494 = vmatprep.mubr.bf16.mxu0 %v2325_v50  ;;  %2671 = vmatprep.mubr.bf16.mxu1 %v2325_v50  ;;  %v9246_v37 = vld [vmem:[%s13140_s1 + $0x1fc] ss:$40 sps:$4 sm:$0xff]  }
 0x252   : > { %2495 = vmatmul.mubr.bf16.gmra.mxu0 %v2324_v15  ;;  %2672 = vmatmul.mubr.bf16.gmra.mxu1 %v2324_v15 }
 0x253   : > { %3171 = vmatpush1.bf16.msra.mxu0 %v9199_v12  ;;  %3224 = vmatpush1.bf16.msra.mxu1 %v9202_v59  ;;  %v9241_v59 = vld [vmem:[%s13140_s1 + $0x1f0] ss:$40 sps:$4 sm:$0xff]  }
 0x254   : > { %3172 = vmatprep.subr.bf16.mxu0 %v9207_v51  ;;  %3225 = vmatprep.subr.bf16.mxu1 %v9210_v24  ;;  %v9244_v51 = vld [vmem:[%s13140_s1 + $0x1f8] ss:$40 sps:$4 sm:$0xff]  }
 0x255   : > { %3198 = vmatprep.mubr.bf16.mxu0 %v13139_v17  ;;  %3251 = vmatprep.mubr.bf16.mxu1 %v13139_v17 }
 0x257   : > { %3173 = vmatpush1.bf16.msra.mxu0 %v9205_v56  ;;  %3226 = vmatpush1.bf16.msra.mxu1 %v9208_v2 }
 0x258   : > { %3174 = vmatprep.subr.bf16.mxu0 %v9213_v54  ;;  %3227 = vmatprep.subr.bf16.mxu1 %v9216_v14  ;;  %v9249_v54 = vld [vmem:[%s13140_s1 + $0x1a4] ss:$40 sps:$4 sm:$0xff]  }
 0x259   : > { %v9252_v14 = vld [vmem:[%s13140_s1 + $0x1ac] ss:$40 sps:$4 sm:$0xff]  }
 0x25b   : > { %3175 = vmatpush1.bf16.msra.mxu0 %v9211_v34  ;;  %3228 = vmatpush1.bf16.msra.mxu1 %v9214_v32  ;;  %v9247_v32 = vld [vmem:[%s13140_s1 + $0x1a0] ss:$40 sps:$4 sm:$0xff]  }
 0x25c   : > { %3176 = vmatprep.subr.bf16.mxu0 %v9219_v0  ;;  %3229 = vmatprep.subr.bf16.mxu1 %v9222_v9  ;;  %v9258_v9 = vld [vmem:[%s13140_s1 + $0x15c] ss:$40 sps:$4 sm:$0xff]  }
 0x25f   : > { %3177 = vmatpush1.bf16.msra.mxu0 %v9217_v55  ;;  %3230 = vmatpush1.bf16.msra.mxu1 %v9220_v38  ;;  %v9250_v55 = vld [vmem:[%s13140_s1 + $0x1a8] ss:$40 sps:$4 sm:$0xff]   ;;  %v9255_v38 = vld [vmem:[%s13140_s1 + $0x154] ss:$40 sps:$4 sm:$0xff]  }
 0x260   : > { %3178 = vmatprep.subr.bf16.mxu0 %v9225_v7  ;;  %3231 = vmatprep.subr.bf16.mxu1 %v9228_v39  ;;  %v9256_v7 = vld [vmem:[%s13140_s1 + $0x158] ss:$40 sps:$4 sm:$0xff]   ;;  %v9264_v39 = vld [vmem:[%s13140_s1 + $0x10c] ss:$40 sps:$4 sm:$0xff]  }
 0x263   : > { %3179 = vmatpush1.bf16.msra.mxu0 %v9223_v10  ;;  %3232 = vmatpush1.bf16.msra.mxu1 %v9226_v57  ;;  %v9253_v10 = vld [vmem:[%s13140_s1 + $0x150] ss:$40 sps:$4 sm:$0xff]   ;;  %v9261_v57 = vld [vmem:[%s13140_s1 + $0x104] ss:$40 sps:$4 sm:$0xff]  }
 0x264   : > { %3180 = vmatprep.subr.bf16.mxu0 %v9231_v18  ;;  %3233 = vmatprep.subr.bf16.mxu1 %v9234_v47  ;;  %v9262_v18 = vld [vmem:[%s13140_s1 + $0x108] ss:$40 sps:$4 sm:$0xff]   ;;  %v9270_v47 = vld [vmem:[%s13140_s1 + $0xbc] ss:$40 sps:$4 sm:$0xff]  }
 0x267   : > { %3181 = vmatpush1.bf16.msra.mxu0 %v9229_v30  ;;  %3234 = vmatpush1.bf16.msra.mxu1 %v9232_v21  ;;  %v9259_v30 = vld [vmem:[%s13140_s1 + $0x100] ss:$40 sps:$4 sm:$0xff]   ;;  %v9267_v21 = vld [vmem:[%s13140_s1 + $0xb4] ss:$40 sps:$4 sm:$0xff]  }
 0x268   : > { %3272 = vmatprep.subr.bf16.mxu0 %v9237_v46  ;;  %3325 = vmatprep.subr.bf16.mxu1 %v9240_v61  ;;  %v9265_v46 = vld [vmem:[%s13140_s1 + $0xb0] ss:$40 sps:$4 sm:$0xff]  }
 0x269   : > { %v9268_v61 = vld [vmem:[%s13140_s1 + $0xb8] ss:$40 sps:$4 sm:$0xff]  }
 0x30a   : > { %v8620_v43 = vpop.f32.mrf.mxu0  ;;  %v8648_v8 = vpop.f32.mrf.mxu1 }
 0x30c   : > { %v8621_v35 = vpop.f32.mrf.mxu0  ;;  %v8649_v28 = vpop.f32.mrf.mxu1 }
 0x30d   : > { %v8622_v42 = vadd.f32 %v8621_v35, %v8620_v43  ;;  %v8650_v44 = vadd.f32 %v8649_v28, %v8648_v8  ;;  %v9273_v43 = vld [vmem:[%s13140_s1 + $0x64] ss:$40 sps:$4 sm:$0xff]   ;;  %v9271_v35 = vld [vmem:[%s13140_s1 + $0x60] ss:$40 sps:$4 sm:$0xff]  }
 0x30e   : > { %v8623_v41 = vpop.f32.mrf.mxu0  ;;  %v8651_v62 = vpop.f32.mrf.mxu1  ;;  %v9276_v8 = vld [vmem:[%s13140_s1 + $0x6c] ss:$40 sps:$4 sm:$0xff]   ;;  %v9274_v28 = vld [vmem:[%s13140_s1 + $0x68] ss:$40 sps:$4 sm:$0xff]  }
 0x30f   : > { %v2680_v4 = vmax.f32 %v8622_v42, %v8650_v44  ;;  %v9277_v42 = vld [vmem:[%s13140_s1 + $0x10] ss:$40 sps:$4 sm:$0xff]  }
 0x310   : > { %v8624_v36 = vpop.f32.mrf.mxu0  ;;  %v8652_v63 = vpop.f32.mrf.mxu1  ;;  %v9280_v44 = vld [vmem:[%s13140_s1 + $0x18] ss:$40 sps:$4 sm:$0xff]  }
 0x311   : > { %v8625_v29 = vadd.f32 %v8624_v36, %v8623_v41  ;;  %v8653_v49 = vadd.f32 %v8652_v63, %v8651_v62  ;;  %v9279_v41 = vld [vmem:[%s13140_s1 + $0x14] ss:$40 sps:$4 sm:$0xff]   ;;  %v9283_v63 = vld [vmem:[%s13140_s1 + $0x250] ss:$40 sps:$4 sm:$0xff]  }
 0x312   : > { %v8626_v1 = vpop.f32.mrf.mxu0  ;;  %v8654_v60 = vpop.f32.mrf.mxu1  ;;  %v9282_v62 = vld [vmem:[%s13140_s1 + $0x1c] ss:$40 sps:$4 sm:$0xff]  }
 0x313   : > { %v2681_v52 = vmax.f32 %v8625_v29, %v8653_v49  ;;  %v9285_v36 = vld [vmem:[%s13140_s1 + $0x254] ss:$40 sps:$4 sm:$0xff]   ;;  %v9288_v29 = vld [vmem:[%s13140_s1 + $0x204] ss:$40 sps:$4 sm:$0xff]   ;;  %v9286_v49 = vld [vmem:[%s13140_s1 + $0x200] ss:$40 sps:$4 sm:$0xff]  }
 0x314   : > { %v8627_v53 = vpop.f32.mrf.mxu0  ;;  %v8655_v26 = vpop.f32.mrf.mxu1 }
 0x315   : > { %v11123_v16 = vpack.c.bf16 %v2681_v52, %v2680_v4  ;;  %v8628_v6 = vadd.f32 %v8627_v53, %v8626_v1  ;;  %v8656_v13 = vadd.f32 %v8655_v26, %v8654_v60  ;;  %v9291_v1 = vld [vmem:[%s13140_s1 + $0x1b4] ss:$40 sps:$4 sm:$0xff]   ;;  %v9289_v60 = vld [vmem:[%s13140_s1 + $0x1b0] ss:$40 sps:$4 sm:$0xff]   ;;  %v9294_v4 = vld [vmem:[%s13140_s1 + $0x164] ss:$40 sps:$4 sm:$0xff]  }
 0x316   : > { %v8629_v15 = vpop.f32.mrf.mxu0  ;;  %v8657_v5 = vpop.f32.mrf.mxu1  ;;  %v9292_v52 = vld [vmem:[%s13140_s1 + $0x160] ss:$40 sps:$4 sm:$0xff]   ;;  %v9297_v53 = vld [vmem:[%s13140_s1 + $0x114] ss:$40 sps:$4 sm:$0xff]   ;;  %v9295_v26 = vld [vmem:[%s13140_s1 + $0x110] ss:$40 sps:$4 sm:$0xff]  }
 0x317   : > { %3199 = vmatmul.mubr.bf16.vlgmr.msra.gmra.mxu0 %v11123_v16  ;;  %3252 = vmatmul.mubr.bf16.vlgmr.msra.gmra.mxu1 %v11123_v16  ;;  %v2682_v24 = vmax.f32 %v8628_v6, %v8656_v13  ;;  %v9303_v6 = vld [vmem:[%s13140_s1 + $0x74] ss:$40 sps:$4 sm:$0xff]   ;;  %v9301_v13 = vld [vmem:[%s13140_s1 + $0x70] ss:$40 sps:$4 sm:$0xff]  }
 0x318   : > { %3273 = vmatpush1.bf16.msra.mxu0 %v9235_v33  ;;  %3326 = vmatpush1.bf16.msra.mxu1 %v9238_v48  ;;  %v8630_v50 = vpop.f32.mrf.mxu0  ;;  %v8658_v12 = vpop.f32.mrf.mxu1  ;;  %v9300_v33 = vld [vmem:[%s13140_s1 + $0xc4] ss:$40 sps:$4 sm:$0xff]   ;;  %v9298_v48 = vld [vmem:[%s13140_s1 + $0xc0] ss:$40 sps:$4 sm:$0xff]  }
 0x319   : > { %v8631_v56 = vadd.f32 %v8630_v50, %v8629_v15  ;;  %v8659_v2 = vadd.f32 %v8658_v12, %v8657_v5  ;;  %3274 = vmatprep.subr.bf16.mxu0 %v9243_v58  ;;  %3327 = vmatprep.subr.bf16.mxu1 %v9246_v37  ;;  %v9306_v58 = vld [vmem:[%s13140_s1 + $0x24] ss:$40 sps:$4 sm:$0xff]   ;;  %v9304_v37 = vld [vmem:[%s13140_s1 + $0x20] ss:$40 sps:$4 sm:$0xff]   ;;  %v9309_v15 = vld [vmem:[%s12967_s10 + $0x78] sm:$0xff]  }
 0x31a   : > { %3208 = vmatprep.mubr.bf16.mxu0 %v13139_v17  ;;  %3261 = vmatprep.mubr.bf16.mxu1 %v13139_v17  ;;  %v9311_v5 = vld [vmem:[%s12967_s10 + $0x38] sm:$0xff]   ;;  %v9313_v50 = vld [vmem:[%s12967_s10 + $0x70] sm:$0xff]   ;;  %v9317_v12 = vld [vmem:[%s12967_s10 + $0x68] sm:$0xff]  }
 0x31b   : > { %v2683_v34 = vmax.f32 %v8631_v56, %v8659_v2  ;;  %v9325_v56 = vld [vmem:[%s12967_s10 + $0x58] sm:$0xff]  }
 0x31c   : > { %3275 = vmatpush1.bf16.msra.mxu0 %v9241_v59  ;;  %3328 = vmatpush1.bf16.msra.mxu1 %v9244_v51  ;;  %v9319_v59 = vld [vmem:[%s12967_s10 + $0x28] sm:$0xff]   ;;  %v9321_v51 = vld [vmem:[%s12967_s10 + $0x60] sm:$0xff]   ;;  %v9327_v2 = vld [vmem:[%s12967_s10 + $0x18] sm:$0xff]  }
 0x31d   : > { %v11153_v0 = vpack.c.bf16 %v2683_v34, %v2682_v24  ;;  %3276 = vmatprep.subr.bf16.mxu0 %v9249_v54  ;;  %3329 = vmatprep.subr.bf16.mxu1 %v9252_v14  ;;  %v9323_v24 = vld [vmem:[%s12967_s10 + $0x20] sm:$0xff]   ;;  %v9329_v54 = vld [vmem:[%s12967_s10 + $0x50] sm:$0xff]  }
 0x31e   : > { %v9331_v14 = vld [vmem:[%s12967_s10 + $0x10] sm:$0xff]  }
 0x31f   : > { %3209 = vmatmul.mubr.bf16.gmra.mxu0 %v11153_v0  ;;  %3262 = vmatmul.mubr.bf16.gmra.mxu1 %v11153_v0 }
 0x320   : > { %3277 = vmatpush1.bf16.msra.mxu0 %v9247_v32  ;;  %3330 = vmatpush1.bf16.msra.mxu1 %v9250_v55 }
 0x321   : > { %3278 = vmatprep.subr.bf16.mxu0 %v9255_v38  ;;  %3331 = vmatprep.subr.bf16.mxu1 %v9258_v9 }
 0x322   : > { %3304 = vmatprep.mubr.bf16.mxu0 %v13139_v17  ;;  %3357 = vmatprep.mubr.bf16.mxu1 %v13139_v17 }
 0x324   : > { %3279 = vmatpush1.bf16.msra.mxu0 %v9253_v10  ;;  %3332 = vmatpush1.bf16.msra.mxu1 %v9256_v7 }
 0x325   : > { %3280 = vmatprep.subr.bf16.mxu0 %v9261_v57  ;;  %3333 = vmatprep.subr.bf16.mxu1 %v9264_v39 }
 0x328   : > { %3281 = vmatpush1.bf16.msra.mxu0 %v9259_v30  ;;  %3334 = vmatpush1.bf16.msra.mxu1 %v9262_v18 }
 0x329   : > { %3282 = vmatprep.subr.bf16.mxu0 %v9267_v21  ;;  %3335 = vmatprep.subr.bf16.mxu1 %v9270_v47 }
 0x32c   : > { %3283 = vmatpush1.bf16.msra.mxu0 %v9265_v46  ;;  %3336 = vmatpush1.bf16.msra.mxu1 %v9268_v61 }
 0x32d   : > { %3284 = vmatprep.subr.bf16.mxu0 %v9273_v43  ;;  %3337 = vmatprep.subr.bf16.mxu1 %v9276_v8 }
 0x330   : > { %3285 = vmatpush1.bf16.msra.mxu0 %v9271_v35  ;;  %3338 = vmatpush1.bf16.msra.mxu1 %v9274_v28  ;;  %v13141_v28 = vld [vmem:[#allocation2_spill] sm:$0xff] }
 0x331   : > { %3286 = vmatprep.subr.bf16.mxu0 %v9279_v41  ;;  %3339 = vmatprep.subr.bf16.mxu1 %v9282_v62  ;;  %v3449_v41 = vand.u32 7, %v13141_v28  ;;  %v13142_v62 = vld [vmem:[#allocation5_spill] sm:$0xff] }
 0x334   : > { %3287 = vmatpush1.bf16.msra.mxu0 %v9277_v42  ;;  %3340 = vmatpush1.bf16.msra.mxu1 %v9280_v44  ;;  %v3442_v42 = vand.u32 7, %v13142_v62  ;;  %v3435_v44 = vand.u32 7, %v10166_v31 }
 0x335   : > { %3378 = vmatprep.subr.bf16.mxu0 %v9285_v36 }
 0x337   : > { %3305 = vmatmul.mubr.bf16.vlgmr.msra.gmra.mxu0 %v11123_v16  ;;  %3358 = vmatmul.mubr.bf16.vlgmr.msra.gmra.mxu1 %v11123_v16 }
 0x338   : > { %3379 = vmatpush1.bf16.msra.mxu0 %v9283_v63  ;;  %3314 = vmatprep.mubr.bf16.mxu0 %v13139_v17 }
 0x339   : > { %3380 = vmatprep.subr.bf16.mxu0 %v9288_v29  ;;  %3367 = vmatprep.mubr.bf16.mxu1 %v13139_v17  ;;  %v11359_v29 = vadd.s32 4294967294, %v3442_v42 }
 0x33b   : > { %vm13054_vm12 = vcmp.ge.s32.totalorder %v11359_v29, 0 }
 0x33c   : > { %3381 = vmatpush1.bf16.msra.mxu0 %v9286_v49  ;;  %v11361_v49 = vadd.s32 4294967295, %v3442_v42 }
 0x33d   : > { %3382 = vmatprep.subr.bf16.mxu0 %v9291_v1  ;;  %v11363_v1 = vadd.s32 4294967294, %v3449_v41 }
 0x33e   : > { %vm13039_vm7 = vcmp.ge.s32.totalorder %v11361_v49, 0 }
 0x33f   : > { %3315 = vmatmul.mubr.bf16.gmra.mxu0 %v11153_v0  ;;  %3368 = vmatmul.mubr.bf16.gmra.mxu1 %v11153_v0  ;;  %vm13053_vm13 = vcmp.ge.s32.totalorder %v11363_v1, 0 }
 0x340   : > { %3383 = vmatpush1.bf16.msra.mxu0 %v9289_v60  ;;  %3410 = vmatprep.mubr.bf16.mxu0 %v13139_v17  ;;  %v11365_v60 = vadd.s32 4294967295, %v3449_v41 }
 0x341   : > { %3384 = vmatprep.subr.bf16.mxu0 %v9294_v4  ;;  %3770 = vmatprep.mubr.bf16.mxu1 %v13139_v17  ;;  %v13143_v4 = vld [vmem:[#allocation6_spill] sm:$0xff] }
 0x342   : > { %vm13038_vm9 = vcmp.ge.s32.totalorder %v11365_v60, 0 }
 0x344   : > { %3385 = vmatpush1.bf16.msra.mxu0 %v9292_v52  ;;  %v3456_v52 = vand.u32 7, %v13143_v4 }
 0x345   : > { %3386 = vmatprep.subr.bf16.mxu0 %v9297_v53  ;;  %v11368_v53 = vadd.s32 4294967294, %v3435_v44 }
 0x347   : > { %vm13055_vm15 = vcmp.ge.s32.totalorder %v11368_v53, 0 }
 0x348   : > { %3387 = vmatpush1.bf16.msra.mxu0 %v9295_v26  ;;  %v11370_v26 = vadd.s32 4294967295, %v3435_v44 }
 0x349   : > { %3388 = vmatprep.subr.bf16.mxu0 %v9300_v33 }
 0x34a   : > { %vm13051_vm8 = vcmp.ge.s32.totalorder %v11370_v26, 0 }
 0x34c   : > { %3389 = vmatpush1.bf16.msra.mxu0 %v9298_v48 }
 0x34d   : > { %3390 = vmatprep.subr.bf16.mxu0 %v9303_v6  ;;  %v11378_v6 = vadd.s32 1, %v3435_v44 }
 0x34f   : > { %vm13040_vm5 = vcmp.lt.s32.totalorder %v11378_v6, 8 }
 0x350   : > { %3391 = vmatpush1.bf16.msra.mxu0 %v9301_v13  ;;  %v3671_v13 = vld [vmem:[%s13144_s30] sm:$0x3] }
 0x351   : > { %3392 = vmatprep.subr.bf16.mxu0 %v9306_v58 }
 0x354   : > { %3393 = vmatpush1.bf16.msra.mxu0 %v9304_v37  ;;  %v11386_v37 = vadd.s32 4294967294, %v3456_v52 }
 0x355   : > { %8682 = vmatprep.subr.bf16.mxu0 %v9309_v15  ;;  %v11388_v15 = vadd.s32 4294967295, %v3456_v52 }
 0x356   : > { %vm3502_vm6 = vcmp.ge.s32.totalorder %v11386_v37, 0 }
 0x357   : > { %3411 = vmatmul.mubr.bf16.vlgmr.msra.gmra.mxu0 %v11123_v16  ;;  %v9315_v16 = vld [vmem:[%s12967_s10 + $0x30] sm:$0xff]   ;;  %vm13052_vm4 = vcmp.ge.s32.totalorder %v11388_v15, 0 }
 0x358   : > { %3420 = vmatprep.mubr.bf16.mxu0 %v13139_v17  ;;  %8683 = vmatpush3.bf16.msra.mxu0 %v9311_v5 }
 0x359   : > { %8684 = vmatprep.subr.bf16.mxu0 %v9313_v50  ;;  %v11393_v50 = vadd.s32 1, %v3442_v42 }
 0x35b   : > { %vm13049_vm11 = vcmp.lt.s32.totalorder %v11393_v50, 8 }
 0x35c   : > { %8685 = vmatpush3.bf16.msra.mxu0 %v9315_v16  ;;  %v11395_v16 = vadd.s32 1, %v3449_v41 }
 0x35d   : > { %8686 = vmatprep.subr.bf16.mxu0 %v9317_v12  ;;  %v11397_v12 = vadd.s32 1, %v3456_v52 }
 0x35e   : > { %vm13050_vm1 = vcmp.lt.s32.totalorder %v11395_v16, 8 }
 0x35f   : > { %3421 = vmatmul.mubr.bf16.gmra.mxu0 %v11153_v0 }
 0x360   : > { %8687 = vmatpush3.bf16.msra.mxu0 %v9319_v59 }
 0x361   : > { %8688 = vmatprep.subr.bf16.mxu0 %v9321_v51 }
 0x364   : > { %8689 = vmatpush3.bf16.msra.mxu0 %v9323_v24 }
 0x365   : > { %8690 = vmatprep.subr.bf16.mxu0 %v9325_v56 }
 0x368   : > { %8691 = vmatpush3.bf16.msra.mxu0 %v9327_v2  ;;  %v11405_v2 = vadd.s32 2, %v3435_v44 }
 0x369   : > { %8692 = vmatprep.subr.bf16.mxu0 %v9329_v54  ;;  %v13145_v54 = vsub.s32 0, %v10166_v31 }
 0x36a   : > { %vm13041_vm3 = vcmp.lt.s32.totalorder %v11405_v2, 8 }
 0x36c   : > { %8693 = vmatpush3.bf16.msra.mxu0 %v9331_v14  ;;  %v11409_v14 = vrot.slane %v3671_v13, %v13145_v54 }
 0x3d7   : > { %v11314_v34 = vpop.f32.mrf.mxu0  ;;  %v11316_v32 = vpop.f32.mrf.mxu1 }
 0x3d8   : > { %v3479_v59 = vrot.slane %v11314_v34, 6  ;;  %v3527_v51 = vrot.slane %v11316_v32, 7 }
 0x3d9   : > { %v11318_v55 = vpop.f32.mrf.mxu0  ;;  %v11320_v0 = vpop.f32.mrf.mxu1 }
 0x3da   : > { %v3528_v32 = vrot.slane %v11320_v0, 7 }
 0x3db   : > { %v11322_v38 = vpop.f32.mrf.mxu0  ;;  %v11324_v9 = vpop.f32.mrf.mxu1 }
 0x3dc   : > { %v3481_v58 = vrot.slane %v11322_v38, 6  ;;  %v3529_v5 = vrot.slane %v11324_v9, 7  ;;  %v3480_v38 = vrot.slane %v11318_v55, 6 }
 0x3dd   : > { %v11326_v10 = vpop.f32.mrf.mxu0  ;;  %v11328_v7 = vpop.f32.mrf.mxu1 }
 0x3de   : > { %v3482_v9 = vrot.slane %v11326_v10, 6  ;;  %v3530_v28 = vrot.slane %v11328_v7, 7  ;;  %v3491_v44 = vsel %vm1744_vm0, %v3479_v59, %v3481_v58  ;;  %v3539_v10 = vsel %vm1841_vm2, %v3527_v51, %v3529_v5 }
 0x3df   : > { %v11330_v57 = vpop.f32.mrf.mxu0  ;;  %v11332_v39 = vpop.f32.mrf.mxu1 }
 0x3e0   : > { %v3483_v34 = vrot.slane %v11330_v57, 6  ;;  %v3531_v4 = vrot.slane %v11332_v39, 7  ;;  %v13146_v57 = vsub.s32 1, %v10166_v31  ;;  %v3492_v40 = vsel %vm1744_vm0, %v3480_v38, %v3482_v9 }
 0x3e1   : > { %v11334_v30 = vpop.f32.mrf.mxu0  ;;  %v11336_v18 = vpop.f32.mrf.mxu1  ;;  %v3540_v27 = vsel %vm1841_vm2, %v3528_v32, %v3530_v28 }
 0x3e2   : > { %v3484_v45 = vrot.slane %v11334_v30, 6  ;;  %v3532_v54 = vrot.slane %v11336_v18, 7  ;;  %v11434_v39 = vrot.slane %v3671_v13, %v13146_v57  ;;  %v11436_v30 = vadd.s32 2, %v3442_v42 }
 0x3e3   : > { %v11338_v21 = vpop.f32.mrf.mxu0  ;;  %v11340_v47 = vpop.f32.mrf.mxu1  ;;  %v11438_v18 = vadd.s32 2, %v3449_v41  ;;  %v3489_v19 = vsel %vm1744_vm0, %v3481_v58, %v3483_v34  ;;  %v3513_v13 = vsel %vm13054_vm12, %v3491_v44, 0.0  ;;  %v3561_v41 = vsel %vm13039_vm7, %v3539_v10, 0.0 }
 0x3e4   : > { %v3485_v11 = vrot.slane %v11338_v21, 6  ;;  %v3533_v55 = vrot.slane %v11340_v47, 7  ;;  %v11440_v21 = vadd.s32 2, %v3456_v52  ;;  %v3537_v42 = vsel %vm1841_vm2, %v3529_v5, %v3531_v4 }
 0x3e5   : > { %v11342_v46 = vpop.f32.mrf.mxu0  ;;  %v11346_v43 = vpop.f32.mrf.mxu1  ;;  %v3538_v44 = vsel %vm1841_vm2, %v3530_v28, %v3532_v54  ;;  %v3514_v10 = vsel %vm13054_vm12, %v3492_v40, 0.0  ;;  %v3562_v5 = vsel %vm13039_vm7, %v3540_v27, 0.0  ;;  %vm13042_vm7 = vcmp.lt.s32.totalorder %v11436_v30, 8 }
 0x3e6   : > { %v3486_v47 = vrot.slane %v11342_v46, 6  ;;  %v3490_v46 = vsel %vm1744_vm0, %v3482_v9, %v3484_v45  ;;  %v3534_v52 = vrot.slane %v11346_v43, 7  ;;  %v3493_v57 = vsel %vm1744_vm0, %v3485_v11, %v3479_v59 }
 0x3e7   : > { %v3541_v58 = vsel %vm1841_vm2, %v3533_v55, %v3527_v51  ;;  %v3515_v43 = vsel %vm13053_vm13, %v3489_v19, 0.0  ;;  %v3516_v40 = vsel %vm13053_vm13, %v3490_v46, 0.0  ;;  %v3511_v27 = vsel %vm13055_vm15, %v3493_v57, 0.0 }
 0x3e8   : > { %v3494_v51 = vsel %vm1744_vm0, %v3486_v47, %v3480_v38  ;;  %v3559_v19 = vsel %vm13051_vm8, %v3541_v58, 0.0  ;;  %v3564_v38 = vsel %vm13038_vm9, %v3538_v44, 0.0  ;;  %v3487_v22 = vsel %vm1744_vm0, %v3483_v34, %v3485_v11 }
 0x3e9   : > { %v3535_v46 = vsel %vm1841_vm2, %v3531_v4, %v3533_v55  ;;  %v3517_v3 = vsel %vm3502_vm6, %v3487_v22, 0.0 }
 0x3f7   : > { %v11344_v61 = vpop.f32.mrf.mxu0  ;;  %v11348_v8 = vpop.f32.mrf.mxu1 }
 0x3f8   : > { %v3575_v28 = vrot.slane %v11348_v8, 1  ;;  %v3519_v57 = vadd.f32 %v3511_v27, %v11344_v61  ;;  %v3512_v8 = vsel %vm13055_vm15, %v3494_v51, 0.0 }
 0x3f9   : > { %v11350_v35 = vpop.f32.mrf.mxu0  ;;  %v11355_v36 = vpop.f32.mrf.mxu1 }
 0x3fa   : > { %v3520_v11 = vadd.f32 %v3512_v8, %v11350_v35  ;;  %v13147_v4 = vrot.slane %v11355_v36, 1 }
 0x3fb   : > { %v11357_v63 = vpop.f32.mrf.mxu0  ;;  %v11372_v33 = vpop.f32.mrf.mxu1 }
 0x3fc   : > { %v3577_v25 = vrot.slane %v11372_v33, 1  ;;  %v3563_v33 = vsel %vm13038_vm9, %v3537_v42, 0.0  ;;  %v3488_v42 = vsel %vm1744_vm0, %v3484_v45, %v3486_v47  ;;  %v3521_v34 = vadd.f32 %v3513_v13, %v11357_v63 }
 0x3fd   : > { %v11374_v48 = vpop.f32.mrf.mxu0  ;;  %v11401_v24 = vpop.f32.mrf.mxu1  ;;  %v3536_v45 = vsel %vm1841_vm2, %v3532_v54, %v3534_v52  ;;  %vm13048_vm9 = vcmp.lt.s32.totalorder %v11397_v12, 8  ;;  %v3518_v22 = vsel %vm3502_vm6, %v3488_v42, 0.0  ;;  %v3567_v47 = vadd.f32 %v3559_v19, %v3519_v57 }
 0x3fe   : > { %v3578_v23 = vrot.slane %v11401_v24, 1  ;;  %v3542_v24 = vsel %vm1841_vm2, %v3534_v52, %v3528_v32  ;;  %v3587_v58 = vsel %vm1938_vm10, %v3575_v28, %v3577_v25  ;;  %v3522_v51 = vadd.f32 %v3514_v10, %v11374_v48 }
 0x3ff   : > { %v11403_v56 = vpop.f32.mrf.mxu0  ;;  %v11427_v0 = vpop.f32.mrf.mxu1  ;;  %v3560_v63 = vsel %vm13051_vm8, %v3542_v24, 0.0  ;;  %v3565_v48 = vsel %vm13052_vm4, %v3535_v46, 0.0  ;;  %v3569_v46 = vadd.f32 %v3561_v41, %v3521_v34  ;;  %v3566_v42 = vsel %vm13052_vm4, %v3536_v45, 0.0 }
 0x400   : > { %v3588_v61 = vsel %vm1938_vm10, %v13147_v4, %v3578_v23  ;;  %v3579_v55 = vrot.slane %v11427_v0, 1  ;;  %v3607_v0 = vsel %vm13040_vm5, %v3587_v58, 0.0  ;;  %v3523_v13 = vadd.f32 %v3515_v43, %v11403_v56 }
 0x401   : > { %v11429_v7 = vpop.f32.mrf.mxu0  ;;  %v11471_v9 = vpop.f32.mrf.mxu1  ;;  %v3608_v54 = vsel %vm13040_vm5, %v3588_v61, 0.0  ;;  %v3568_v24 = vadd.f32 %v3560_v63, %v3520_v11  ;;  %v3615_v58 = vadd.f32 %v3607_v0, %v3567_v47  ;;  %v3570_v19 = vadd.f32 %v3562_v5, %v3522_v51 }
 0x402   : > { %v3580_v27 = vrot.slane %v11471_v9, 1  ;;  %v3524_v52 = vadd.f32 %v3516_v40, %v11429_v7  ;;  %v3585_v8 = vsel %vm1938_vm10, %v3577_v25, %v3579_v55  ;;  %v3571_v11 = vadd.f32 %v3563_v33, %v3523_v13 }
 0x403   : > { %v3320_v59 = vpop.f32.mrf.mxu0  ;;  %v3373_v44 = vpop.f32.mrf.mxu1  ;;  %v3616_v43 = vadd.f32 %v3608_v54, %v3568_v24  ;;  %v3609_v41 = vsel %vm13049_vm11, %v3585_v8, 0.0  ;;  %vm13047_vm5 = vcmp.lt.s32.totalorder %v11438_v18, 8 }
 0x404   : > { %v3586_v57 = vsel %vm1938_vm10, %v3578_v23, %v3580_v27  ;;  %v3581_v4 = vrot.slane %v3373_v44, 1  ;;  %v3572_v25 = vadd.f32 %v3564_v38, %v3524_v52  ;;  %v3525_v34 = vadd.f32 %v3517_v3, %v3320_v59 }
 0x405   : > { %v3322_v32 = vpop.f32.mrf.mxu0  ;;  %v3375_v10 = vpop.f32.mrf.mxu1  ;;  %v3610_v5 = vsel %vm13049_vm11, %v3586_v57, 0.0  ;;  %v3617_v13 = vadd.f32 %v3609_v41, %v3569_v46 }
 0x406   : > { %v3582_v7 = vrot.slane %v3375_v10, 1  ;;  %v3583_v33 = vsel %vm1938_vm10, %v3579_v55, %v3581_v4  ;;  %v3589_v45 = vsel %vm1938_vm10, %v3581_v4, %v3575_v28  ;;  %v3526_v38 = vadd.f32 %v3518_v22, %v3322_v32 }
 0x407   : > { %v3618_v52 = vadd.f32 %v3610_v5, %v3570_v19  ;;  %v13148_v55 = vrot.slane %v11355_v36, 1  ;;  %v3573_v10 = vadd.f32 %v3565_v48, %v3525_v34  ;;  %v3613_v46 = vsel %vm13048_vm9, %v3589_v45, 0.0 }
 0x408   : > { %v3574_v8 = vadd.f32 %v3566_v42, %v3526_v38 }
 0x409   : > { %v3590_v28 = vsel %vm1938_vm10, %v3582_v7, %v13148_v55  ;;  %v3621_v34 = vadd.f32 %v3613_v46, %v3573_v10 }
 0x40a   : > { %v3614_v48 = vsel %vm13048_vm9, %v3590_v28, 0.0 }
 0x417   : > { %v11517_v35 = vpop.f32.mrf.mxu0 }
 0x418   : > { %v3623_v40 = vrot.slane %v11517_v35, 2  ;;  %v3584_v35 = vsel %vm1938_vm10, %v3580_v27, %v3582_v7  ;;  %v3611_v27 = vsel %vm13050_vm1, %v3583_v33, 0.0  ;;  %v3622_v33 = vadd.f32 %v3614_v48, %v3574_v8 }
 0x419   : > { %v11533_v9 = vpop.f32.mrf.mxu0  ;;  %v3612_v36 = vsel %vm13050_vm1, %v3584_v35, 0.0  ;;  %v3619_v7 = vadd.f32 %v3611_v27, %v3571_v11 }
 0x41a   : > { %v3624_v23 = vrot.slane %v11533_v9, 2 }
 0x41b   : > { %v3416_v56 = vpop.f32.mrf.mxu0 }
 0x41c   : > { %v3625_v61 = vrot.slane %v3416_v56, 2 }
 0x41d   : > { %v3418_v63 = vpop.f32.mrf.mxu0 }
 0x41e   : > { %v3635_v44 = vsel %vm2035_vm14, %v3623_v40, %v3625_v61  ;;  %v3626_v51 = vrot.slane %v3418_v63, 2  ;;  %v3620_v63 = vadd.f32 %v3612_v36, %v3572_v25 }
 0x41f   : > { %v3655_v3 = vsel %vm13041_vm3, %v3635_v44, 0.0  ;;  %v3422_v59 = vpop.f32.mrf.mxu0 }
 0x420   : > { %v3663_v0 = vadd.f32 %v3655_v3, %v3615_v58  ;;  %v3636_v47 = vsel %vm2035_vm14, %v3624_v23, %v3626_v51  ;;  %v3627_v54 = vrot.slane %v3422_v59, 2 }
 0x421   : > { %v3656_v32 = vsel %vm13041_vm3, %v3636_v47, 0.0  ;;  %v3424_v22 = vpop.f32.mrf.mxu0  ;;  %vm13046_vm3 = vcmp.lt.s32.totalorder %v11440_v21, 8 }
 0x422   : > { %v3633_v9 = vsel %vm2035_vm14, %v3625_v61, %v3627_v54  ;;  %v3628_v24 = vrot.slane %v3424_v22, 2  ;;  %v11579_v57 = vadd.f32 %v11409_v14, %v3663_v0  ;;  %v3664_v4 = vadd.f32 %v3656_v32, %v3616_v43 }
 0x423   : > { %v3657_v58 = vsel %vm13042_vm7, %v3633_v9, 0.0  ;;  %v3426_v19 = vpop.f32.mrf.mxu0 }
 0x424   : > { %v3634_v56 = vsel %vm2035_vm14, %v3626_v51, %v3628_v24  ;;  %v3629_v61 = vrot.slane %v3426_v19, 2  ;;  %v3665_v5 = vadd.f32 %v3657_v58, %v3617_v13  ;;  %v3691_v11 = vmax.f32 %v11579_v57, 0.0 }
 0x425   : > { %v3658_v42 = vsel %vm13042_vm7, %v3634_v56, 0.0  ;;  %v3428_v41 = vpop.f32.mrf.mxu0  ;;  %v3684_v38 = vadd.f32 %v11434_v39, %v3664_v4  ;;  %vm13044_vm7 = vcmask 261120  }
 0x426   : > { %v3666_v44 = vadd.f32 %v3658_v42, %v3618_v52  ;;  %v3631_v45 = vsel %vm2035_vm14, %v3627_v54, %v3629_v61  ;;  %v3637_v43 = vsel %vm2035_vm14, %v3629_v61, %v3623_v40  ;;  %v3630_v51 = vrot.slane %v3428_v41, 2 }
 0x427   : > { %v3659_v3 = vsel %vm13047_vm5, %v3631_v45, 0.0  ;;  %v3661_v25 = vsel %vm13046_vm3, %v3637_v43, 0.0  ;;  %v3685_v40 = vadd.f32 %v11409_v14, %v3665_v5  ;;  %v3692_v10 = vmax.f32 %v3684_v38, 0.0 }
 0x428   : > { %v3667_v59 = vadd.f32 %v3659_v3, %v3619_v7  ;;  %v3669_v35 = vadd.f32 %v3661_v25, %v3621_v34  ;;  %v3632_v0 = vsel %vm2035_vm14, %v3628_v24, %v3630_v51  ;;  %v3638_v47 = vsel %vm2035_vm14, %v3630_v51, %v3624_v23 }
 0x429   : > { %v3660_v54 = vsel %vm13047_vm5, %v3632_v0, 0.0  ;;  %v3662_v13 = vsel %vm13046_vm3, %v3638_v47, 0.0  ;;  %v3686_v52 = vadd.f32 %v11434_v39, %v3666_v44  ;;  %v3699_v8 = vrot.slane %v3691_v11, 1 }
 0x42a   : > { %v3687_v55 = vadd.f32 %v11409_v14, %v3667_v59  ;;  %v3689_v28 = vadd.f32 %v11409_v14, %v3669_v35  ;;  %v3668_v32 = vadd.f32 %v3660_v54, %v3620_v63  ;;  %v3670_v22 = vadd.f32 %v3662_v13, %v3622_v33  ;;  %v9308_v54 = vld [vmem:[%s13149_s26 + $0x78] sm:$0xff]  }
 0x42b   : > { %v3694_v27 = vmax.f32 %v3686_v52, 0.0  ;;  %v3693_v36 = vmax.f32 %v3685_v40, 0.0  ;;  %v3700_v56 = vrot.slane %v3692_v10, 1  ;;  %v9307_v52 = vld [vmem:[%s13150_s7] sm:$0xff]  }
 0x42c   : > { %v3695_v9 = vmax.f32 %v3687_v55, 0.0  ;;  %v3697_v23 = vmax.f32 %v3689_v28, 0.0  ;;  %v3688_v24 = vadd.f32 %v11434_v39, %v3668_v32  ;;  %v3690_v46 = vadd.f32 %v11434_v39, %v3670_v22  ;;  %v9310_v55 = vld [vmem:[%s13149_s26 + $0x38] sm:$0xff]   ;;  %v9314_v28 = vld [vmem:[%s13149_s26 + $0x30] sm:$0xff]   ;;  %v9316_v32 = vld [vmem:[%s13149_s26 + $0x68] sm:$0xff]  }
 0x42d   : > { %v3702_v58 = vrot.slane %v3694_v27, 1  ;;  %v3701_v41 = vrot.slane %v3693_v36, 1  ;;  %v9318_v22 = vld [vmem:[%s13149_s26 + $0x28] sm:$0xff]  }
 0x42e   : > { %v3703_v19 = vrot.slane %v3695_v9, 1  ;;  %v3705_v48 = vrot.slane %v3697_v23, 1  ;;  %v3696_v57 = vmax.f32 %v3688_v24, 0.0  ;;  %v3698_v4 = vmax.f32 %v3690_v46, 0.0  ;;  %v9328_v24 = vld [vmem:[%s13149_s26 + $0x50] sm:$0xff]  }
 0x42f   : > { %v3712_v39 = vsel %vm1938_vm10, %v3700_v56, %v3702_v58  ;;  %v3711_v59 = vsel %vm1938_vm10, %v3699_v8, %v3701_v41  ;;  %v9330_v46 = vld [vmem:[%s13149_s26 + $0x10] sm:$0xff]  }
 0x430   : > { %v3704_v7 = vrot.slane %v3696_v57, 1  ;;  %v3706_v14 = vrot.slane %v3698_v4, 1  ;;  %v3707_v42 = vsel %vm1938_vm10, %v3703_v19, %v3705_v48  ;;  %v3713_v61 = vsel %vm1938_vm10, %v3705_v48, %v3699_v8  ;;  %v9332_v8 = vld [vmem:[%s13149_s26 + $0x48] sm:$0xff]   ;;  %v9336_v48 = vld [vmem:[%s13149_s26 + $0x40] sm:$0xff]  }
 0x431   : > { %v3719_v34 = vmax.f32 %v3695_v9, %v3707_v42  ;;  %v3721_v44 = vmax.f32 %v3697_v23, %v3713_v61  ;;  %v3709_v38 = vsel %vm1938_vm10, %v3701_v41, %v3703_v19  ;;  %v3716_v25 = vmax.f32 %v3692_v10, %v3712_v39  ;;  %v9320_v10 = vld [vmem:[%s13149_s26 + $0x60] sm:$0xff]   ;;  %v9324_v9 = vld [vmem:[%s13149_s26 + $0x58] sm:$0xff]   ;;  %v9335_v19 = vld [vmem:[%s12967_s10 + $0x8] sm:$0xff]  }
 0x432   : > { %v3708_v63 = vsel %vm1938_vm10, %v3704_v7, %v3706_v14  ;;  %v3714_v5 = vsel %vm1938_vm10, %v3706_v14, %v3700_v56  ;;  %v3710_v33 = vsel %vm1938_vm10, %v3702_v58, %v3704_v7  ;;  %v3717_v0 = vmax.f32 %v3693_v36, %v3709_v38  ;;  %v9326_v23 = vld [vmem:[%s13149_s26 + $0x18] sm:$0xff]   ;;  %v9333_v36 = vld [vmem:[%s12967_s10 + $0x48] sm:$0xff]   ;;  %v9339_v56 = vld [vmem:[%s12967_s10] sm:$0xff]  }
 0x433   : > { %v3720_v45 = vmax.f32 %v3696_v57, %v3708_v63  ;;  %v3722_v43 = vmax.f32 %v3698_v4, %v3714_v5  ;;  %v3718_v51 = vmax.f32 %v3694_v27, %v3710_v33  ;;  %v3727_v35 = vpack.c.bf16 %v3721_v44, %v3719_v34  ;;  %v9322_v27 = vld [vmem:[%s13149_s26 + $0x20] sm:$0xff]   ;;  %v9334_v58 = vld [vmem:[%s13149_s26 + $0x8] sm:$0xff]   ;;  %8694 = vmatprep.subr.bf16.mxu0 %v9333_v36  ;;  %v9342_v7 = vld [vmem:[%s12968_s11 + $0x11c] ss:$20 sps:$4 sm:$0xff]  }
 0x434   : > { %v3715_v40 = vmax.f32 %v3691_v11, %v3711_v59  ;;  %v9312_v11 = vld [vmem:[%s13149_s26 + $0x70] sm:$0xff]   ;;  %8695 = vmatpush3.bf16.msra.mxu0 %v9335_v19  ;;  %v9337_v57 = vld [vmem:[%s12967_s10 + $0x40] sm:$0xff]   ;;  %v9340_v63 = vld [vmem:[%s12968_s11 + $0x118] ss:$20 sps:$4 sm:$0xff]  }
 0x435   : > { %v3728_v3 = vpack.c.bf16 %v3722_v43, %v3720_v45  ;;  %v3726_v47 = vpack.c.bf16 %v3718_v51, %v3716_v25  ;;  %v9338_v4 = vld [vmem:[%s13149_s26] sm:$0xff]   ;;  %8696 = vmatprep.subr.bf16.mxu0 %v9337_v57  ;;  %v9348_v33 = vld [vmem:[%s12968_s11 + $0xf4] ss:$20 sps:$4 sm:$0xff]   ;;  %v9351_v45 = vld [vmem:[%s12968_s11 + $0xfc] ss:$20 sps:$4 sm:$0xff]  }
 0x436   : > { %v3725_v13 = vpack.c.bf16 %v3717_v0, %v3715_v40  ;;  %v9345_v14 = vld [vmem:[%s12968_s11 + $0x124] ss:$20 sps:$4 sm:$0xff]   ;;  %v9343_v5 = vld [vmem:[%s12968_s11 + $0x120] ss:$20 sps:$4 sm:$0xff]   ;;  %v9352_v25 = vld [vmem:[%s12968_s11 + $0xc8] ss:$20 sps:$4 sm:$0xff]  }
 0x437   : > { %3750 = vmatprep.subr.bf16.mxu1 %v3728_v3  ;;  %v9346_v43 = vld [vmem:[%s12968_s11 + $0xf0] ss:$20 sps:$4 sm:$0xff]   ;;  %v9349_v51 = vld [vmem:[%s12968_s11 + $0xf8] ss:$20 sps:$4 sm:$0xff]   ;;  %v9357_v3 = vld [vmem:[%s12968_s11 + $0xd4] ss:$20 sps:$4 sm:$0xff]  }
 0x438   : > { %3751 = vmatpush1.bf16.msra.mxu1 %v3727_v35  ;;  %8697 = vmatpush3.bf16.msra.mxu0 %v9339_v56  ;;  %v9354_v38 = vld [vmem:[%s12968_s11 + $0xcc] ss:$20 sps:$4 sm:$0xff]   ;;  %v9355_v59 = vld [vmem:[%s12968_s11 + $0xd0] ss:$20 sps:$4 sm:$0xff]   ;;  %v9361_v40 = vld [vmem:[%s12968_s11 + $0xa8] ss:$20 sps:$4 sm:$0xff]  }
 0x439   : > { %3752 = vmatprep.subr.bf16.mxu1 %v3726_v47  ;;  %4423 = vmatprep.subr.bf16.mxu0 %v9345_v14  ;;  %v9360_v35 = vld [vmem:[%s12968_s11 + $0xa4] ss:$20 sps:$4 sm:$0xff]   ;;  %v9363_v0 = vld [vmem:[%s12968_s11 + $0xac] ss:$20 sps:$4 sm:$0xff]  }
 0x43a   : > { %v9358_v47 = vld [vmem:[%s12968_s11 + $0xa0] ss:$20 sps:$4 sm:$0xff]  }
 0x43b   : > { %v9387_v36 = vld [vmem:[%s12968_s11 + $0xc] ss:$20 sps:$4 sm:$0xff]  }
 0x43c   : > { %3753 = vmatpush1.bf16.msra.mxu1 %v3725_v13  ;;  %v9369_v13 = vld [vmem:[%s12968_s11 + $0x84] ss:$20 sps:$4 sm:$0xff]  }
 0x43d   : > { %8660 = vmatprep.subr.bf16.mxu1 %v9308_v54  ;;  %v9366_v54 = vld [vmem:[%s12968_s11 + $0x7c] ss:$20 sps:$4 sm:$0xff]  }
 0x43f   : > { %8213 = vmatmul.mubr.msk.bf16.vlgmr.msra.gmra.mxu1 %vm13044_vm7, %v9307_v52  ;;  %v9364_v52 = vld [vmem:[%s12968_s11 + $0x78] ss:$20 sps:$4 sm:$0xff]   ;;  %vm9716_vm7 = vmmov 0  }
 0x440   : > { %8661 = vmatpush3.bf16.msra.mxu1 %v9310_v55  ;;  %v9367_v55 = vld [vmem:[%s12968_s11 + $0x80] ss:$20 sps:$4 sm:$0xff]  }
 0x441   : > { %8662 = vmatprep.subr.bf16.mxu1 %v9312_v11  ;;  %v9370_v11 = vld [vmem:[%s12968_s11 + $0x50] ss:$20 sps:$4 sm:$0xff]  }
 0x444   : > { %8663 = vmatpush3.bf16.msra.mxu1 %v9314_v28  ;;  %v9372_v28 = vld [vmem:[%s12968_s11 + $0x54] ss:$20 sps:$4 sm:$0xff]  }
 0x445   : > { %8664 = vmatprep.subr.bf16.mxu1 %v9316_v32  ;;  %v9373_v32 = vld [vmem:[%s12968_s11 + $0x58] ss:$20 sps:$4 sm:$0xff]  }
 0x448   : > { %8665 = vmatpush3.bf16.msra.mxu1 %v9318_v22  ;;  %v9375_v22 = vld [vmem:[%s12968_s11 + $0x5c] ss:$20 sps:$4 sm:$0xff]  }
 0x449   : > { %8666 = vmatprep.subr.bf16.mxu1 %v9320_v10  ;;  %v9376_v10 = vld [vmem:[%s12968_s11 + $0x28] ss:$20 sps:$4 sm:$0xff]  }
 0x44c   : > { %8667 = vmatpush3.bf16.msra.mxu1 %v9322_v27  ;;  %v9378_v27 = vld [vmem:[%s12968_s11 + $0x2c] ss:$20 sps:$4 sm:$0xff]  }
 0x44d   : > { %8668 = vmatprep.subr.bf16.mxu1 %v9324_v9  ;;  %v9379_v9 = vld [vmem:[%s12968_s11 + $0x30] ss:$20 sps:$4 sm:$0xff]  }
 0x450   : > { %8669 = vmatpush3.bf16.msra.mxu1 %v9326_v23  ;;  %v9381_v23 = vld [vmem:[%s12968_s11 + $0x34] ss:$20 sps:$4 sm:$0xff]  }
 0x451   : > { %8670 = vmatprep.subr.bf16.mxu1 %v9328_v24  ;;  %v9382_v24 = vld [vmem:[%s12968_s11] ss:$20 sps:$4 sm:$0xff]  }
 0x454   : > { %8671 = vmatpush3.bf16.msra.mxu1 %v9330_v46  ;;  %v9384_v46 = vld [vmem:[%s12968_s11 + $0x4] ss:$20 sps:$4 sm:$0xff]  }
 0x455   : > { %8672 = vmatprep.subr.bf16.mxu1 %v9332_v8  ;;  %v9385_v8 = vld [vmem:[%s12968_s11 + $0x8] ss:$20 sps:$4 sm:$0xff]  }
 0x458   : > { %8673 = vmatpush3.bf16.msra.mxu1 %v9334_v58  ;;  %v9715_v58 = vmov 0.0  }
 0x459   : > { %8674 = vmatprep.subr.bf16.mxu1 %v9336_v48 }
 0x45c   : > { %8675 = vmatpush3.bf16.msra.mxu1 %v9338_v4 }
 0x45d   : > { %4380 = vmatprep.subr.bf16.mxu1 %v9342_v7 }
 0x4ff   : > { %v3772_v42 = vpop.f32.mrf.mxu1 }
 0x501   : > { %v3774_v61 = vpop.f32.mrf.mxu1 }
 0x503   : > { %v3776_v41 = vpop.f32.mrf.mxu1 }
 0x504   : > { %v3781_v44 = vpack.c.bf16 %v3776_v41, %v3772_v42 }
 0x505   : > { %v3778_v34 = vpop.f32.mrf.mxu1 }
 0x506   : > { %v3782_v39 = vpack.c.bf16 %v3778_v34, %v3774_v61 }
 0x508   : > { %3943 = vmatprep.mubr.bf16.mxu1 %v3782_v39  ;;  %4112 = vmatprep.mubr.bf16.mxu0 %v3782_v39 }
 0x509   : > { %3944 = vmatmul.mubr.bf16.vlgmr.msra.gmra.mxu1 %v3781_v44  ;;  %4113 = vmatmul.mubr.bf16.vlgmr.msra.gmra.mxu0 %v3781_v44  ;;  %v9388_v44 = vld [vmem:[%s12968_s11 + $0x128] ss:$20 sps:$4 sm:$0xff]  }
 0x50a   : > { %4381 = vmatpush1.bf16.msra.mxu1 %v9340_v63  ;;  %4424 = vmatpush1.bf16.msra.mxu0 %v9343_v5 }
 0x50b   : > { %4382 = vmatprep.subr.bf16.mxu1 %v9348_v33  ;;  %4425 = vmatprep.subr.bf16.mxu0 %v9351_v45  ;;  %v9389_v45 = vld [vmem:[%s12968_s11 + $0x100] ss:$20 sps:$4 sm:$0xff]  }
 0x50c   : > { %4412 = vmatprep.mubr.bf16.mxu1 %v13139_v17  ;;  %4455 = vmatprep.mubr.bf16.mxu0 %v13139_v17 }
 0x50e   : > { %4383 = vmatpush1.bf16.msra.mxu1 %v9346_v43  ;;  %4426 = vmatpush1.bf16.msra.mxu0 %v9349_v51  ;;  %v9390_v43 = vld [vmem:[%s12968_s11 + $0xd8] ss:$20 sps:$4 sm:$0xff]   ;;  %v9391_v51 = vld [vmem:[%s12968_s11 + $0xb0] ss:$20 sps:$4 sm:$0xff]  }
 0x50f   : > { %4384 = vmatprep.subr.bf16.mxu1 %v9354_v38  ;;  %4427 = vmatprep.subr.bf16.mxu0 %v9357_v3  ;;  %v9392_v38 = vld [vmem:[%s12968_s11 + $0x88] ss:$20 sps:$4 sm:$0xff]   ;;  %v9393_v3 = vld [vmem:[%s12968_s11 + $0x60] ss:$20 sps:$4 sm:$0xff]  }
 0x512   : > { %4385 = vmatpush1.bf16.msra.mxu1 %v9352_v25  ;;  %4428 = vmatpush1.bf16.msra.mxu0 %v9355_v59  ;;  %v9394_v25 = vld [vmem:[%s12968_s11 + $0x38] ss:$20 sps:$4 sm:$0xff]   ;;  %v9395_v59 = vld [vmem:[%s12968_s11 + $0x10] ss:$20 sps:$4 sm:$0xff]  }
 0x513   : > { %4386 = vmatprep.subr.bf16.mxu1 %v9360_v35  ;;  %4429 = vmatprep.subr.bf16.mxu0 %v9363_v0  ;;  %v9396_v35 = vld [vmem:[%s12970_s13 + $0x118] ss:$20 sps:$4 sm:$0xff]   ;;  %v9398_v0 = vld [vmem:[%s12970_s13 + $0x11c] ss:$20 sps:$4 sm:$0xff]  }
 0x516   : > { %4387 = vmatpush1.bf16.msra.mxu1 %v9358_v47  ;;  %4430 = vmatpush1.bf16.msra.mxu0 %v9361_v40  ;;  %v9399_v47 = vld [vmem:[%s12970_s13 + $0x120] ss:$20 sps:$4 sm:$0xff]   ;;  %v9401_v40 = vld [vmem:[%s12970_s13 + $0x124] ss:$20 sps:$4 sm:$0xff]  }
 0x517   : > { %4388 = vmatprep.subr.bf16.mxu1 %v9366_v54  ;;  %4431 = vmatprep.subr.bf16.mxu0 %v9369_v13  ;;  %v9404_v54 = vld [vmem:[%s12970_s13 + $0xf4] ss:$20 sps:$4 sm:$0xff]   ;;  %v9407_v13 = vld [vmem:[%s12970_s13 + $0xfc] ss:$20 sps:$4 sm:$0xff]  }
 0x51a   : > { %4389 = vmatpush1.bf16.msra.mxu1 %v9364_v52  ;;  %4432 = vmatpush1.bf16.msra.mxu0 %v9367_v55  ;;  %v9402_v52 = vld [vmem:[%s12970_s13 + $0xf0] ss:$20 sps:$4 sm:$0xff]   ;;  %v9405_v55 = vld [vmem:[%s12970_s13 + $0xf8] ss:$20 sps:$4 sm:$0xff]  }
 0x51b   : > { %4390 = vmatprep.subr.bf16.mxu1 %v9372_v28  ;;  %4433 = vmatprep.subr.bf16.mxu0 %v9375_v22  ;;  %v9413_v28 = vld [vmem:[%s12970_s13 + $0xd4] ss:$20 sps:$4 sm:$0xff]   ;;  %v9411_v22 = vld [vmem:[%s12970_s13 + $0xd0] ss:$20 sps:$4 sm:$0xff]  }
 0x51e   : > { %4391 = vmatpush1.bf16.msra.mxu1 %v9370_v11  ;;  %4434 = vmatpush1.bf16.msra.mxu0 %v9373_v32  ;;  %v9410_v11 = vld [vmem:[%s12970_s13 + $0xcc] ss:$20 sps:$4 sm:$0xff]   ;;  %v9408_v32 = vld [vmem:[%s12970_s13 + $0xc8] ss:$20 sps:$4 sm:$0xff]  }
 0x51f   : > { %4392 = vmatprep.subr.bf16.mxu1 %v9378_v27  ;;  %4435 = vmatprep.subr.bf16.mxu0 %v9381_v23  ;;  %v9419_v27 = vld [vmem:[%s12970_s13 + $0xac] ss:$20 sps:$4 sm:$0xff]   ;;  %v9417_v23 = vld [vmem:[%s12970_s13 + $0xa8] ss:$20 sps:$4 sm:$0xff]  }
 0x522   : > { %4393 = vmatpush1.bf16.msra.mxu1 %v9376_v10  ;;  %4436 = vmatpush1.bf16.msra.mxu0 %v9379_v9  ;;  %v9416_v10 = vld [vmem:[%s12970_s13 + $0xa4] ss:$20 sps:$4 sm:$0xff]   ;;  %v9414_v9 = vld [vmem:[%s12970_s13 + $0xa0] ss:$20 sps:$4 sm:$0xff]  }
 0x523   : > { %4394 = vmatprep.subr.bf16.mxu1 %v9384_v46  ;;  %4437 = vmatprep.subr.bf16.mxu0 %v9387_v36  ;;  %v9422_v46 = vld [vmem:[%s12970_s13 + $0x7c] ss:$20 sps:$4 sm:$0xff]   ;;  %v9425_v36 = vld [vmem:[%s12970_s13 + $0x84] ss:$20 sps:$4 sm:$0xff]  }
 0x526   : > { %4395 = vmatpush1.bf16.msra.mxu1 %v9382_v24  ;;  %4438 = vmatpush1.bf16.msra.mxu0 %v9385_v8  ;;  %v9420_v24 = vld [vmem:[%s12970_s13 + $0x78] ss:$20 sps:$4 sm:$0xff]   ;;  %v9423_v8 = vld [vmem:[%s12970_s13 + $0x80] ss:$20 sps:$4 sm:$0xff]  }
 0x527   : > { %8808 = vmatprep.subr.bf16.mxu1 %v9715_v58  ;;  %4867 = vmatprep.subr.bf16.mxu0 %v9398_v0 }
 0x5c9   : > { %v8676_v19 = vpop.f32.mrf.mxu1  ;;  %v8698_v48 = vpop.f32.mrf.mxu0 }
 0x5cb   : > { %v8677_v57 = vpop.f32.mrf.mxu1  ;;  %v8699_v4 = vpop.f32.mrf.mxu0 }
 0x5cc   : > { %v8678_v14 = vadd.f32 %v8677_v57, %v8676_v19  ;;  %v8700_v42 = vadd.f32 %v8699_v4, %v8698_v48  ;;  %v9426_v19 = vld [vmem:[%s12970_s13 + $0x50] ss:$20 sps:$4 sm:$0xff]   ;;  %v9428_v48 = vld [vmem:[%s12970_s13 + $0x54] ss:$20 sps:$4 sm:$0xff]   ;;  %v9429_v57 = vld [vmem:[%s12970_s13 + $0x58] ss:$20 sps:$4 sm:$0xff]  }
 0x5cd   : > { %v8679_v56 = vpop.f32.mrf.mxu1  ;;  %v8701_v7 = vpop.f32.mrf.mxu0  ;;  %v9431_v4 = vld [vmem:[%s12970_s13 + $0x5c] ss:$20 sps:$4 sm:$0xff]  }
 0x5ce   : > { %v4121_v63 = vmax.f32 %v8678_v14, %v8700_v42  ;;  %v9432_v14 = vld [vmem:[%s12970_s13 + $0x28] ss:$20 sps:$4 sm:$0xff]   ;;  %v9435_v42 = vld [vmem:[%s12970_s13 + $0x30] ss:$20 sps:$4 sm:$0xff]  }
 0x5cf   : > { %v8680_v61 = vpop.f32.mrf.mxu1  ;;  %v8702_v41 = vpop.f32.mrf.mxu0 }
 0x5d0   : > { %v8681_v34 = vadd.f32 %v8680_v61, %v8679_v56  ;;  %v8703_v39 = vadd.f32 %v8702_v41, %v8701_v7  ;;  %v9434_v56 = vld [vmem:[%s12970_s13 + $0x2c] ss:$20 sps:$4 sm:$0xff]   ;;  %v9437_v7 = vld [vmem:[%s12970_s13 + $0x34] ss:$20 sps:$4 sm:$0xff]   ;;  %v9440_v61 = vld [vmem:[%s12970_s13 + $0x4] ss:$20 sps:$4 sm:$0xff]  }
 0x5d1   : > { %v9443_v41 = vld [vmem:[%s12970_s13 + $0xc] ss:$20 sps:$4 sm:$0xff]  }
 0x5d2   : > { %v4122_v5 = vmax.f32 %v8681_v34, %v8703_v39  ;;  %v9438_v34 = vld [vmem:[%s12970_s13] ss:$20 sps:$4 sm:$0xff]   ;;  %v9441_v39 = vld [vmem:[%s12970_s13 + $0x8] ss:$20 sps:$4 sm:$0xff]  }
 0x5d4   : > { %v4123_v33 = vpack.c.bf16 %v4122_v5, %v4121_v63 }
 0x5d6   : > { %4413 = vmatmul.mubr.bf16.vlgmr.msra.gmra.mxu1 %v4123_v33  ;;  %4456 = vmatmul.mubr.bf16.vlgmr.msra.gmra.mxu0 %v4123_v33 }
 0x5d7   : > { %8809 = vmatpush3.bf16.msra.mxu1 %v9388_v44  ;;  %8824 = vmatprep.mubr.msk.bf16.mxu1 %vm9716_vm7, %v9715_v58 }
 0x5d8   : > { %8810 = vmatprep.subr.bf16.mxu1 %v9715_v58  ;;  %4899 = vmatprep.mubr.bf16.mxu0 %v13139_v17 }
 0x5d9   : > { %4868 = vmatpush1.bf16.msra.mxu0 %v9396_v35 }
 0x5da   : > { %4869 = vmatprep.subr.bf16.mxu0 %v9404_v54 }
 0x5db   : > { %8811 = vmatpush3.bf16.msra.mxu1 %v9389_v45  ;;  %v4518_v45 = vand.u32 3, %v13142_v62 }
 0x5dc   : > { %8812 = vmatprep.subr.bf16.mxu1 %v9715_v58 }
 0x5dd   : > { %4870 = vmatpush1.bf16.msra.mxu0 %v9402_v52 }
 0x5de   : > { %4871 = vmatprep.subr.bf16.mxu0 %v9410_v11 }
 0x5df   : > { %8813 = vmatpush3.bf16.msra.mxu1 %v9390_v43 }
 0x5e0   : > { %8814 = vmatprep.subr.bf16.mxu1 %v9715_v58 }
 0x5e1   : > { %4872 = vmatpush1.bf16.msra.mxu0 %v9408_v32 }
 0x5e2   : > { %4873 = vmatprep.subr.bf16.mxu0 %v9416_v10 }
 0x5e3   : > { %8815 = vmatpush3.bf16.msra.mxu1 %v9391_v51 }
 0x5e4   : > { %8816 = vmatprep.subr.bf16.mxu1 %v9715_v58 }
 0x5e5   : > { %4874 = vmatpush1.bf16.msra.mxu0 %v9414_v9 }
 0x5e6   : > { %4875 = vmatprep.subr.bf16.mxu0 %v9422_v46 }
 0x5e7   : > { %8817 = vmatpush3.bf16.msra.mxu1 %v9392_v38 }
 0x5e8   : > { %8818 = vmatprep.subr.bf16.mxu1 %v9715_v58 }
 0x5e9   : > { %4876 = vmatpush1.bf16.msra.mxu0 %v9420_v24 }
 0x5ea   : > { %4877 = vmatprep.subr.bf16.mxu0 %v9428_v48 }
 0x5eb   : > { %8819 = vmatpush3.bf16.msra.mxu1 %v9393_v3 }
 0x5ec   : > { %8820 = vmatprep.subr.bf16.mxu1 %v9715_v58 }
 0x5ed   : > { %4878 = vmatpush1.bf16.msra.mxu0 %v9426_v19 }
 0x5ee   : > { %4879 = vmatprep.subr.bf16.mxu0 %v9434_v56 }
 0x5ef   : > { %8821 = vmatpush3.bf16.msra.mxu1 %v9394_v25  ;;  %v11925_v25 = vadd.s32 4294967294, %v4518_v45 }
 0x5f0   : > { %8822 = vmatprep.subr.bf16.mxu1 %v9715_v58 }
 0x5f1   : > { %4880 = vmatpush1.bf16.msra.mxu0 %v9432_v14  ;;  %vm4538_vm5 = vcmp.ge.s32.totalorder %v11925_v25, 0 }
 0x5f2   : > { %4881 = vmatprep.subr.bf16.mxu0 %v9440_v61 }
 0x5f3   : > { %8823 = vmatpush3.bf16.msra.mxu1 %v9395_v59 }
 0x5f4   : > { %4910 = vmatprep.subr.bf16.mxu1 %v9401_v40  ;;  %v11930_v40 = vadd.s32 4294967295, %v4518_v45 }
 0x5f5   : > { %4882 = vmatpush1.bf16.msra.mxu0 %v9438_v34 }
 0x5f6   : > { %8825 = vmatmul.mubr.bf16.vlgmr.msra.gmra.mxu1 %v4123_v33  ;;  %8828 = vmatprep.subr.bf16.mxu0 %v9715_v58  ;;  %v4511_v33 = vand.u32 3, %v10166_v31  ;;  %vm4554_vm11 = vcmp.ge.s32.totalorder %v11930_v40, 0 }
 0x5f7   : > { %4942 = vmatprep.mubr.bf16.mxu1 %v13139_v17  ;;  %4911 = vmatpush1.bf16.msra.mxu1 %v9399_v47 }
 0x5f8   : > { %4912 = vmatprep.subr.bf16.mxu1 %v9407_v13  ;;  %v11923_v38 = vadd.s32 4294967294, %v4511_v33  ;;  %v11928_v47 = vadd.s32 4294967295, %v4511_v33  ;;  %v11947_v10 = vadd.s32 1, %v4511_v33  ;;  %v11955_v48 = vadd.s32 2, %v4511_v33 }
 0x5fa   : > { %vm4537_vm3 = vcmp.ge.s32.totalorder %v11923_v38, 0  ;;  %vm4553_vm9 = vcmp.ge.s32.totalorder %v11928_v47, 0  ;;  %vm4571_vm1 = vcmp.lt.s32.totalorder %v11947_v10, 4  ;;  %vm4587_vm4 = vcmp.lt.s32.totalorder %v11955_v48, 4  ;;  %v8327_v10 = vld [vmem:[%s12971_s14] ss:$0 sm:$0xff] }
 0x5fb   : > { %4913 = vmatpush1.bf16.msra.mxu1 %v9405_v55  ;;  %v9500_v48 = vld [vmem:[%s12972_s15 + $0x128] ss:$20 sps:$4 sm:$0xff]  }
 0x5fc   : > { %4914 = vmatprep.subr.bf16.mxu1 %v9413_v28 }
 0x5ff   : > { %4915 = vmatpush1.bf16.msra.mxu1 %v9411_v22 }
 0x600   : > { %4916 = vmatprep.subr.bf16.mxu1 %v9419_v27  ;;  %v11949_v27 = vadd.s32 1, %v4518_v45 }
 0x602   : > { %vm4572_vm8 = vcmp.lt.s32.totalorder %v11949_v27, 4 }
 0x603   : > { %4917 = vmatpush1.bf16.msra.mxu1 %v9417_v23 }
 0x604   : > { %4918 = vmatprep.subr.bf16.mxu1 %v9425_v36 }
 0x607   : > { %4919 = vmatpush1.bf16.msra.mxu1 %v9423_v8 }
 0x608   : > { %4920 = vmatprep.subr.bf16.mxu1 %v9431_v4 }
 0x60b   : > { %4921 = vmatpush1.bf16.msra.mxu1 %v9429_v57  ;;  %v11957_v57 = vadd.s32 2, %v4518_v45 }
 0x60c   : > { %4922 = vmatprep.subr.bf16.mxu1 %v9437_v7 }
 0x60d   : > { %vm4588_vm13 = vcmp.lt.s32.totalorder %v11957_v57, 4 }
 0x60f   : > { %4923 = vmatpush1.bf16.msra.mxu1 %v9435_v42 }
 0x610   : > { %4924 = vmatprep.subr.bf16.mxu1 %v9443_v41 }
 0x613   : > { %4925 = vmatpush1.bf16.msra.mxu1 %v9441_v39 }
 0x696   : > { %v4414_v63 = vpop.f32.mrf.mxu1  ;;  %v4457_v44 = vpop.f32.mrf.mxu0 }
 0x697   : > { %v4531_v35 = vrot.slane %v4414_v63, 6 }
 0x698   : > { %v4416_v5 = vpop.f32.mrf.mxu1  ;;  %v4459_v51 = vpop.f32.mrf.mxu0 }
 0x699   : > { %v4547_v52 = vrot.slane %v4416_v5, 7  ;;  %v4563_v19 = vrot.slane %v4459_v51, 1 }
 0x69a   : > { %v4418_v43 = vpop.f32.mrf.mxu1  ;;  %v4461_v0 = vpop.f32.mrf.mxu0 }
 0x69b   : > { %v4532_v3 = vrot.slane %v4418_v43, 6 }
 0x69c   : > { %v4420_v59 = vpop.f32.mrf.mxu1  ;;  %v4463_v28 = vpop.f32.mrf.mxu0 }
 0x69d   : > { %v4534_v54 = vsel %vm1744_vm0, %v4532_v3, %v4531_v35  ;;  %v4533_v62 = vsel %vm1744_vm0, %v4531_v35, %v4532_v3  ;;  %v4548_v13 = vrot.slane %v4420_v59, 7  ;;  %v4564_v24 = vrot.slane %v4463_v28, 1  ;;  %v8286_v59 = vld [vmem:[%s12969_s12] ss:$0 sm:$0xff]  ;;  %v9444_v28 = vld [vmem:[%s12970_s13 + $0x128] ss:$20 sps:$4 sm:$0xff]  }
 0x69e   : > { %v4543_v55 = vsel %vm4537_vm3, %v4534_v54, 0.0  ;;  %v4544_v11 = vsel %vm4538_vm5, %v4533_v62, 0.0 }
 0x69f   : > { %v4549_v32 = vsel %vm1841_vm2, %v4547_v52, %v4548_v13  ;;  %v4550_v22 = vsel %vm1841_vm2, %v4548_v13, %v4547_v52  ;;  %v4545_v9 = vadd.f32 %v4543_v55, %v4457_v44  ;;  %v4546_v23 = vadd.f32 %v4544_v11, %v4461_v0 }
 0x6a0   : > { %v4559_v46 = vsel %vm4553_vm9, %v4550_v22, 0.0  ;;  %v4560_v8 = vsel %vm4554_vm11, %v4549_v32, 0.0  ;;  %v4565_v14 = vsel %vm1938_vm10, %v4563_v19, %v4564_v24  ;;  %v4566_v42 = vsel %vm1938_vm10, %v4564_v24, %v4563_v19  ;;  %v9445_v22 = vld [vmem:[%s12970_s13 + $0x100] ss:$20 sps:$4 sm:$0xff]   ;;  %v9448_v24 = vld [vmem:[%s12970_s13 + $0x88] ss:$20 sps:$4 sm:$0xff]  }
 0x6a1   : > { %v4561_v56 = vadd.f32 %v4559_v46, %v4545_v9  ;;  %v4562_v7 = vadd.f32 %v4560_v8, %v4546_v23  ;;  %v4575_v39 = vsel %vm4571_vm1, %v4565_v14, 0.0  ;;  %v4576_v63 = vsel %vm4572_vm8, %v4566_v42, 0.0  ;;  %v9446_v9 = vld [vmem:[%s12970_s13 + $0xd8] ss:$20 sps:$4 sm:$0xff]   ;;  %v9447_v23 = vld [vmem:[%s12970_s13 + $0xb0] ss:$20 sps:$4 sm:$0xff]  }
 0x6a2   : > { %v9449_v46 = vld [vmem:[%s12970_s13 + $0x60] ss:$20 sps:$4 sm:$0xff]   ;;  %v9450_v8 = vld [vmem:[%s12970_s13 + $0x38] ss:$20 sps:$4 sm:$0xff]   ;;  %v9463_v42 = vld [vmem:[%s12972_s15 + $0xfc] ss:$20 sps:$4 sm:$0xff]  }
 0x6a3   : > { %v4577_v44 = vadd.f32 %v4575_v39, %v4561_v56  ;;  %v4578_v33 = vadd.f32 %v4576_v63, %v4562_v7  ;;  %v9452_v19 = vld [vmem:[%s12972_s15 + $0x118] ss:$20 sps:$4 sm:$0xff]   ;;  %v9455_v56 = vld [vmem:[%s12972_s15 + $0x120] ss:$20 sps:$4 sm:$0xff]   ;;  %v9464_v63 = vld [vmem:[%s12972_s15 + $0xc8] ss:$20 sps:$4 sm:$0xff]  }
 0x6a4   : > { %v9457_v7 = vld [vmem:[%s12972_s15 + $0x124] ss:$20 sps:$4 sm:$0xff]   ;;  %v9460_v14 = vld [vmem:[%s12972_s15 + $0xf4] ss:$20 sps:$4 sm:$0xff]  }
 0x6a5   : > { %v9469_v39 = vld [vmem:[%s12972_s15 + $0xd4] ss:$20 sps:$4 sm:$0xff]  }
 0x6b6   : > { %v4500_v36 = vpop.f32.mrf.mxu1 }
 0x6b7   : > { %v4579_v41 = vrot.slane %v4500_v36, 2  ;;  %v9451_v36 = vld [vmem:[%s12970_s13 + $0x10] ss:$20 sps:$4 sm:$0xff]  }
 0x6b8   : > { %v8826_v4 = vpop.f32.mrf.mxu1 }
 0x6b9   : > { %v9454_v4 = vld [vmem:[%s12972_s15 + $0x11c] ss:$20 sps:$4 sm:$0xff]  }
 0x6ba   : > { %v4503_v61 = vpop.f32.mrf.mxu1  ;;  %5298 = vmatprep.subr.bf16.mxu1 %v9454_v4 }
 0x6bb   : > { %v4580_v34 = vrot.slane %v4503_v61, 2  ;;  %v9458_v61 = vld [vmem:[%s12972_s15 + $0xf0] ss:$20 sps:$4 sm:$0xff]  }
 0x6bc   : > { %v8827_v5 = vpop.f32.mrf.mxu1 }
 0x6bd   : > { %v4581_v45 = vsel %vm2035_vm14, %v4579_v41, %v4580_v34  ;;  %v4582_v43 = vsel %vm2035_vm14, %v4580_v34, %v4579_v41  ;;  %v9461_v41 = vld [vmem:[%s12972_s15 + $0xf8] ss:$20 sps:$4 sm:$0xff]   ;;  %v9467_v5 = vld [vmem:[%s12972_s15 + $0xd0] ss:$20 sps:$4 sm:$0xff]  }
 0x6be   : > { %v4591_v51 = vsel %vm4587_vm4, %v4581_v45, 0.0  ;;  %v4592_v3 = vsel %vm4588_vm13, %v4582_v43, 0.0  ;;  %v9466_v34 = vld [vmem:[%s12972_s15 + $0xcc] ss:$20 sps:$4 sm:$0xff]   ;;  %v9473_v43 = vld [vmem:[%s12972_s15 + $0xa8] ss:$20 sps:$4 sm:$0xff]  }
 0x6bf   : > { %v4593_v35 = vadd.f32 %v4591_v51, %v4577_v44  ;;  %v4594_v0 = vadd.f32 %v4592_v3, %v4578_v33  ;;  %v9472_v44 = vld [vmem:[%s12972_s15 + $0xa4] ss:$20 sps:$4 sm:$0xff]   ;;  %v9475_v33 = vld [vmem:[%s12972_s15 + $0xac] ss:$20 sps:$4 sm:$0xff]   ;;  %v9478_v3 = vld [vmem:[%s12972_s15 + $0x7c] ss:$20 sps:$4 sm:$0xff]  }
 0x6c0   : > { %v9470_v45 = vld [vmem:[%s12972_s15 + $0xa0] ss:$20 sps:$4 sm:$0xff]   ;;  %v9476_v51 = vld [vmem:[%s12972_s15 + $0x78] ss:$20 sps:$4 sm:$0xff]  }
 0x6c1   : > { %v4602_v54 = vadd.f32 %v8286_v59, %v4593_v35  ;;  %v4603_v62 = vadd.f32 %v8286_v59, %v4594_v0  ;;  %v9479_v59 = vld [vmem:[%s12972_s15 + $0x80] ss:$20 sps:$4 sm:$0xff]   ;;  %v9481_v35 = vld [vmem:[%s12972_s15 + $0x84] ss:$20 sps:$4 sm:$0xff]  }
 0x6c2   : > { %v9482_v0 = vld [vmem:[%s12972_s15 + $0x50] ss:$20 sps:$4 sm:$0xff]  }
 0x6c3   : > { %vm4604_vm12 = vcmp.ge.f32.partialorder %v4602_v54, 0.0  ;;  %vm4605_vm15 = vcmp.ge.f32.partialorder %v4603_v62, 0.0  ;;  %v4606_v13 = vmul.f32 0.01, %v4602_v54  ;;  %v4607_v52 = vmul.f32 0.01, %v4603_v62 }
 0x6c5   : > { %v4608_v55 = vsel %vm4604_vm12, %v4602_v54, %v4606_v13  ;;  %v4609_v11 = vsel %vm4605_vm15, %v4603_v62, %v4607_v52  ;;  %v9484_v54 = vld [vmem:[%s12972_s15 + $0x54] ss:$20 sps:$4 sm:$0xff]   ;;  %v9485_v62 = vld [vmem:[%s12972_s15 + $0x58] ss:$20 sps:$4 sm:$0xff]   ;;  %v9487_v13 = vld [vmem:[%s12972_s15 + $0x5c] ss:$20 sps:$4 sm:$0xff]  }
 0x6c6   : > { %v4610_v32 = vpack.c.bf16 %v4609_v11, %v4608_v55  ;;  %v9490_v52 = vld [vmem:[%s12972_s15 + $0x2c] ss:$20 sps:$4 sm:$0xff]   ;;  %v9493_v55 = vld [vmem:[%s12972_s15 + $0x34] ss:$20 sps:$4 sm:$0xff]   ;;  %vm13153_vm15 = vcmp.ge.s32.totalorder %v11363_v1, 0 }
 0x6c7   : > { %v9488_v11 = vld [vmem:[%s12972_s15 + $0x28] ss:$20 sps:$4 sm:$0xff]  }
 0x6c8   : > { %4900 = vmatmul.mubr.bf16.vlgmr.msra.gmra.mxu0 %v4610_v32  ;;  %4943 = vmatmul.mubr.bf16.vlgmr.msra.gmra.mxu1 %v4610_v32 }
 0x6c9   : > { %8829 = vmatpush3.bf16.msra.mxu0 %v9444_v28  ;;  %8844 = vmatprep.mubr.msk.bf16.mxu0 %vm9716_vm7, %v9715_v58  ;;  %v9491_v28 = vld [vmem:[%s12972_s15 + $0x30] ss:$20 sps:$4 sm:$0xff]  }
 0x6ca   : > { %8830 = vmatprep.subr.bf16.mxu0 %v9715_v58  ;;  %5330 = vmatprep.mubr.bf16.mxu1 %v13139_v17 }
 0x6cb   : > { %5299 = vmatpush1.bf16.msra.mxu1 %v9452_v19 }
 0x6cc   : > { %5300 = vmatprep.subr.bf16.mxu1 %v9460_v14 }
 0x6cd   : > { %8831 = vmatpush3.bf16.msra.mxu0 %v9445_v22  ;;  %v9499_v22 = vld [vmem:[%s12972_s15 + $0xc] ss:$20 sps:$4 sm:$0xff]  }
 0x6ce   : > { %8832 = vmatprep.subr.bf16.mxu0 %v9715_v58 }
 0x6cf   : > { %5301 = vmatpush1.bf16.msra.mxu1 %v9458_v61 }
 0x6d0   : > { %5302 = vmatprep.subr.bf16.mxu1 %v9466_v34 }
 0x6d1   : > { %8833 = vmatpush3.bf16.msra.mxu0 %v9446_v9  ;;  %v9494_v9 = vld [vmem:[%s12972_s15] ss:$20 sps:$4 sm:$0xff]  }
 0x6d2   : > { %8834 = vmatprep.subr.bf16.mxu0 %v9715_v58 }
 0x6d3   : > { %5303 = vmatpush1.bf16.msra.mxu1 %v9464_v63 }
 0x6d4   : > { %5304 = vmatprep.subr.bf16.mxu1 %v9472_v44 }
 0x6d5   : > { %8835 = vmatpush3.bf16.msra.mxu0 %v9447_v23  ;;  %v9497_v23 = vld [vmem:[%s12972_s15 + $0x8] ss:$20 sps:$4 sm:$0xff]  }
 0x6d6   : > { %8836 = vmatprep.subr.bf16.mxu0 %v9715_v58 }
 0x6d7   : > { %5305 = vmatpush1.bf16.msra.mxu1 %v9470_v45 }
 0x6d8   : > { %5306 = vmatprep.subr.bf16.mxu1 %v9478_v3 }
 0x6d9   : > { %8837 = vmatpush3.bf16.msra.mxu0 %v9448_v24 }
 0x6da   : > { %8838 = vmatprep.subr.bf16.mxu0 %v9715_v58 }
 0x6db   : > { %5307 = vmatpush1.bf16.msra.mxu1 %v9476_v51 }
 0x6dc   : > { %5308 = vmatprep.subr.bf16.mxu1 %v9484_v54 }
 0x6dd   : > { %8839 = vmatpush3.bf16.msra.mxu0 %v9449_v46 }
 0x6de   : > { %8840 = vmatprep.subr.bf16.mxu0 %v9715_v58 }
 0x6df   : > { %5309 = vmatpush1.bf16.msra.mxu1 %v9482_v0 }
 0x6e0   : > { %5310 = vmatprep.subr.bf16.mxu1 %v9490_v52 }
 0x6e1   : > { %8841 = vmatpush3.bf16.msra.mxu0 %v9450_v8 }
 0x6e2   : > { %8842 = vmatprep.subr.bf16.mxu0 %v9715_v58 }
 0x6e3   : > { %5311 = vmatpush1.bf16.msra.mxu1 %v9488_v11 }
 0x6e5   : > { %8843 = vmatpush3.bf16.msra.mxu0 %v9451_v36 }
 0x6e6   : > { %5341 = vmatprep.subr.bf16.mxu0 %v9457_v7 }
 0x6e8   : > { %8845 = vmatmul.mubr.bf16.vlgmr.msra.gmra.mxu0 %v4610_v32  ;;  %v9496_v32 = vld [vmem:[%s12972_s15 + $0x4] ss:$20 sps:$4 sm:$0xff]  }
 0x6e9   : > { %5373 = vmatprep.mubr.bf16.mxu0 %v13139_v17  ;;  %5342 = vmatpush1.bf16.msra.mxu0 %v9455_v56 }
 0x6ea   : > { %5343 = vmatprep.subr.bf16.mxu0 %v9463_v42  ;;  %5312 = vmatprep.subr.bf16.mxu1 %v9496_v32 }
 0x6eb   : > { %5313 = vmatpush1.bf16.msra.mxu1 %v9494_v9 }
 0x6ec   : > { %8848 = vmatprep.subr.bf16.mxu1 %v9715_v58 }
 0x6ed   : > { %5344 = vmatpush1.bf16.msra.mxu0 %v9461_v41 }
 0x6ee   : > { %5345 = vmatprep.subr.bf16.mxu0 %v9469_v39 }
 0x6f1   : > { %5346 = vmatpush1.bf16.msra.mxu0 %v9467_v5 }
 0x6f2   : > { %5347 = vmatprep.subr.bf16.mxu0 %v9475_v33 }
 0x6f5   : > { %5348 = vmatpush1.bf16.msra.mxu0 %v9473_v43 }
 0x6f6   : > { %5349 = vmatprep.subr.bf16.mxu0 %v9481_v35 }
 0x6f9   : > { %5350 = vmatpush1.bf16.msra.mxu0 %v9479_v59 }
 0x6fa   : > { %5351 = vmatprep.subr.bf16.mxu0 %v9487_v13 }
 0x6fd   : > { %5352 = vmatpush1.bf16.msra.mxu0 %v9485_v62 }
 0x6fe   : > { %5353 = vmatprep.subr.bf16.mxu0 %v9493_v55 }
 0x701   : > { %5354 = vmatpush1.bf16.msra.mxu0 %v9491_v28 }
 0x702   : > { %5355 = vmatprep.subr.bf16.mxu0 %v9499_v22 }
 0x705   : > { %5356 = vmatpush1.bf16.msra.mxu0 %v9497_v23 }
 0x788   : > { %v4901_v24 = vpop.f32.mrf.mxu0  ;;  %v4944_v8 = vpop.f32.mrf.mxu1 }
 0x789   : > { %v4994_v7 = vrot.slane %v4901_v24, 6 }
 0x78a   : > { %v4903_v46 = vpop.f32.mrf.mxu0  ;;  %v4946_v19 = vpop.f32.mrf.mxu1 }
 0x78b   : > { %v5002_v34 = vrot.slane %v4903_v46, 7  ;;  %v5010_v35 = vrot.slane %v4946_v19, 1 }
 0x78c   : > { %v4905_v36 = vpop.f32.mrf.mxu0  ;;  %v4948_v14 = vpop.f32.mrf.mxu1 }
 0x78d   : > { %v4995_v4 = vrot.slane %v4905_v36, 6 }
 0x78e   : > { %v4907_v56 = vpop.f32.mrf.mxu0  ;;  %v4950_v5 = vpop.f32.mrf.mxu1 }
 0x78f   : > { %v4997_v42 = vsel %vm1744_vm0, %v4995_v4, %v4994_v7  ;;  %v4996_v61 = vsel %vm1744_vm0, %v4994_v7, %v4995_v4  ;;  %v5003_v41 = vrot.slane %v4907_v56, 7  ;;  %v5011_v51 = vrot.slane %v4950_v5, 1  ;;  %v9507_v5 = vld [vmem:[%s12972_s15 + $0x10] ss:$20 sps:$4 sm:$0xff]  }
 0x790   : > { %v4998_v39 = vsel %vm4537_vm3, %v4997_v42, 0.0  ;;  %v4999_v63 = vsel %vm4538_vm5, %v4996_v61, 0.0  ;;  %v9501_v42 = vld [vmem:[%s12972_s15 + $0x100] ss:$20 sps:$4 sm:$0xff]   ;;  %v9502_v61 = vld [vmem:[%s12972_s15 + $0xd8] ss:$20 sps:$4 sm:$0xff]  }
 0x791   : > { %v5004_v44 = vsel %vm1841_vm2, %v5002_v34, %v5003_v41  ;;  %v5005_v33 = vsel %vm1841_vm2, %v5003_v41, %v5002_v34  ;;  %v5000_v45 = vadd.f32 %v4998_v39, %v4944_v8  ;;  %v5001_v43 = vadd.f32 %v4999_v63, %v4948_v14  ;;  %v9503_v41 = vld [vmem:[%s12972_s15 + $0xb0] ss:$20 sps:$4 sm:$0xff]   ;;  %v9504_v34 = vld [vmem:[%s12972_s15 + $0x88] ss:$20 sps:$4 sm:$0xff]   ;;  %v9505_v39 = vld [vmem:[%s12972_s15 + $0x60] ss:$20 sps:$4 sm:$0xff]  }
 0x792   : > { %v5006_v3 = vsel %vm4553_vm9, %v5005_v33, 0.0  ;;  %v5007_v38 = vsel %vm4554_vm11, %v5004_v44, 0.0  ;;  %v5012_v62 = vsel %vm1938_vm10, %v5010_v35, %v5011_v51  ;;  %v5013_v13 = vsel %vm1938_vm10, %v5011_v51, %v5010_v35  ;;  %v9506_v63 = vld [vmem:[%s12972_s15 + $0x38] ss:$20 sps:$4 sm:$0xff]   ;;  %v9508_v44 = vld [vmem:[%s12973_s16 + $0x10] sm:$0xff]  }
 0x793   : > { %v5008_v0 = vadd.f32 %v5006_v3, %v5000_v45  ;;  %v5009_v54 = vadd.f32 %v5007_v38, %v5001_v43  ;;  %v5014_v47 = vsel %vm4571_vm1, %v5012_v62, 0.0  ;;  %v5015_v40 = vsel %vm4572_vm8, %v5013_v13, 0.0  ;;  %v9514_v33 = vld [vmem:[%s12973_s16 + $0x30] sm:$0xff]   ;;  %v9509_v62 = vld [vmem:[%s12973_s16 + $0x18] sm:$0xff]  }
 0x794   : > { %v9515_v13 = vld [vmem:[%s12973_s16 + $0x38] sm:$0xff]   ;;  %vm13152_vm9 = vcmp.ge.s32.totalorder %v11359_v29, 0  ;;  %vm13154_vm8 = vcmp.ge.s32.totalorder %v11388_v15, 0 }
 0x795   : > { %v5016_v32 = vadd.f32 %v5014_v47, %v5008_v0  ;;  %v5017_v22 = vadd.f32 %v5015_v40, %v5009_v54  ;;  %v9512_v47 = vld [vmem:[%s12973_s16 + $0x20] sm:$0xff]   ;;  %v9513_v40 = vld [vmem:[%s12973_s16 + $0x28] sm:$0xff]  }
 0x7a8   : > { %v4987_v59 = vpop.f32.mrf.mxu0 }
 0x7a9   : > { %v5018_v55 = vrot.slane %v4987_v59, 2 }
 0x7aa   : > { %v8846_v25 = vpop.f32.mrf.mxu0 }
 0x7ac   : > { %v4990_v52 = vpop.f32.mrf.mxu0 }
 0x7ad   : > { %v5019_v11 = vrot.slane %v4990_v52, 2  ;;  %v9510_v52 = vld [vmem:[%s12973_s16] sm:$0xff]  }
 0x7ae   : > { %v8847_v28 = vpop.f32.mrf.mxu0 }
 0x7af   : > { %v5020_v9 = vsel %vm2035_vm14, %v5018_v55, %v5019_v11  ;;  %v5021_v23 = vsel %vm2035_vm14, %v5019_v11, %v5018_v55  ;;  %v9511_v11 = vld [vmem:[%s12973_s16 + $0x8] sm:$0xff]   ;;  %v9516_v28 = vld [vmem:[%s12973_s16 + $0x40] sm:$0xff]  }
 0x7b0   : > { %v5022_v24 = vsel %vm4587_vm4, %v5020_v9, 0.0  ;;  %v5023_v46 = vsel %vm4588_vm13, %v5021_v23, 0.0  ;;  %vm5446_vm4 = vcmask 130048   ;;  %vm13151_vm13 = vcmp.ge.s32.totalorder %v11368_v53, 0 }
 0x7b1   : > { %v5024_v27 = vadd.f32 %v5022_v24, %v5016_v32  ;;  %v5025_v8 = vadd.f32 %v5023_v46, %v5017_v22  ;;  %v9517_v46 = vld [vmem:[%s12973_s16 + $0x48] sm:$0xff]  }
 0x7b3   : > { %v5033_v36 = vadd.f32 %v8327_v10, %v5024_v27  ;;  %v5034_v19 = vadd.f32 %v8327_v10, %v5025_v8  ;;  %v9518_v10 = vld [vmem:[%s12975_s18 + $0x118] ss:$20 sps:$4 sm:$0xff]   ;;  %v9520_v27 = vld [vmem:[%s12975_s18 + $0x11c] ss:$20 sps:$4 sm:$0xff]   ;;  %v9521_v8 = vld [vmem:[%s12975_s18 + $0x120] ss:$20 sps:$4 sm:$0xff]  }
 0x7b5   : > { %vm5035_vm1 = vcmp.ge.f32.partialorder %v5033_v36, 0.0  ;;  %vm5036_vm3 = vcmp.ge.f32.partialorder %v5034_v19, 0.0  ;;  %v5037_v4 = vmul.f32 0.01, %v5033_v36  ;;  %v5038_v56 = vmul.f32 0.01, %v5034_v19 }
 0x7b7   : > { %v5039_v7 = vsel %vm5035_vm1, %v5033_v36, %v5037_v4  ;;  %v5040_v14 = vsel %vm5036_vm3, %v5034_v19, %v5038_v56  ;;  %v9523_v36 = vld [vmem:[%s12975_s18 + $0x124] ss:$20 sps:$4 sm:$0xff]   ;;  %v9526_v4 = vld [vmem:[%s12975_s18 + $0xf4] ss:$20 sps:$4 sm:$0xff]   ;;  %vm13156_vm1 = vcmp.ge.s32.totalorder %v11361_v49, 0  ;;  %vm13157_vm3 = vcmp.ge.s32.totalorder %v11365_v60, 0 }
 0x7b8   : > { %v5041_v57 = vpack.c.bf16 %v5040_v14, %v5039_v7  ;;  %v9524_v19 = vld [vmem:[%s12975_s18 + $0xf0] ss:$20 sps:$4 sm:$0xff]   ;;  %v9527_v56 = vld [vmem:[%s12975_s18 + $0xf8] ss:$20 sps:$4 sm:$0xff]   ;;  %v9530_v14 = vld [vmem:[%s12975_s18 + $0xc8] ss:$20 sps:$4 sm:$0xff]  }
 0x7b9   : > { %v9529_v7 = vld [vmem:[%s12975_s18 + $0xfc] ss:$20 sps:$4 sm:$0xff]  }
 0x7ba   : > { %5331 = vmatmul.mubr.bf16.vlgmr.msra.gmra.mxu1 %v5041_v57  ;;  %5374 = vmatmul.mubr.bf16.vlgmr.msra.gmra.mxu0 %v5041_v57 }
 0x7bb   : > { %8849 = vmatpush3.bf16.msra.mxu1 %v9500_v48  ;;  %8864 = vmatprep.mubr.msk.bf16.mxu1 %vm9716_vm7, %v9715_v58  ;;  %v9532_v48 = vld [vmem:[%s12975_s18 + $0xcc] ss:$20 sps:$4 sm:$0xff]  }
 0x7bc   : > { %8850 = vmatprep.subr.bf16.mxu1 %v9715_v58  ;;  %8870 = vmatprep.mubr.msk.bf16.mxu0 %vm5446_vm4, %v9508_v44  ;;  %v9545_v44 = vld [vmem:[%s12975_s18 + $0x80] ss:$20 sps:$4 sm:$0xff]  }
 0x7bf   : > { %8851 = vmatpush3.bf16.msra.mxu1 %v9501_v42  ;;  %v9535_v42 = vld [vmem:[%s12975_s18 + $0xd4] ss:$20 sps:$4 sm:$0xff]  }
 0x7c0   : > { %8852 = vmatprep.subr.bf16.mxu1 %v9715_v58 }
 0x7c3   : > { %8853 = vmatpush3.bf16.msra.mxu1 %v9502_v61  ;;  %v9536_v61 = vld [vmem:[%s12975_s18 + $0xa0] ss:$20 sps:$4 sm:$0xff]  }
 0x7c4   : > { %8854 = vmatprep.subr.bf16.mxu1 %v9715_v58 }
 0x7c7   : > { %8855 = vmatpush3.bf16.msra.mxu1 %v9503_v41  ;;  %v9538_v41 = vld [vmem:[%s12975_s18 + $0xa4] ss:$20 sps:$4 sm:$0xff]  }
 0x7c8   : > { %8856 = vmatprep.subr.bf16.mxu1 %v9715_v58 }
 0x7cb   : > { %8857 = vmatpush3.bf16.msra.mxu1 %v9504_v34  ;;  %v9539_v34 = vld [vmem:[%s12975_s18 + $0xa8] ss:$20 sps:$4 sm:$0xff]  }
 0x7cc   : > { %8858 = vmatprep.subr.bf16.mxu1 %v9715_v58 }
 0x7cf   : > { %8859 = vmatpush3.bf16.msra.mxu1 %v9505_v39  ;;  %v9541_v39 = vld [vmem:[%s12975_s18 + $0xac] ss:$20 sps:$4 sm:$0xff]  }
 0x7d0   : > { %8860 = vmatprep.subr.bf16.mxu1 %v9715_v58 }
 0x7d3   : > { %8861 = vmatpush3.bf16.msra.mxu1 %v9506_v63  ;;  %v9542_v63 = vld [vmem:[%s12975_s18 + $0x78] ss:$20 sps:$4 sm:$0xff]  }
 0x7d4   : > { %8862 = vmatprep.subr.bf16.mxu1 %v9715_v58 }
 0x7d7   : > { %8863 = vmatpush3.bf16.msra.mxu1 %v9507_v5  ;;  %v9544_v5 = vld [vmem:[%s12975_s18 + $0x7c] ss:$20 sps:$4 sm:$0xff]  }
 0x7da   : > { %8865 = vmatmul.mubr.bf16.vlgmr.msra.gmra.mxu1 %v5041_v57  ;;  %v9533_v57 = vld [vmem:[%s12975_s18 + $0xd0] ss:$20 sps:$4 sm:$0xff]  }
 0x7db   : > { %8888 = vmatprep.mubr.msk.bf16.mxu1 %vm5446_vm4, %v9514_v33  ;;  %v9547_v33 = vld [vmem:[%s12975_s18 + $0x84] ss:$20 sps:$4 sm:$0xff]  }
 0x87a   : > { %v5332_v45 = vpop.f32.mrf.mxu1  ;;  %v5375_v43 = vpop.f32.mrf.mxu0 }
 0x87c   : > { %v5334_v51 = vpop.f32.mrf.mxu1  ;;  %v5377_v3 = vpop.f32.mrf.mxu0 }
 0x87e   : > { %v5336_v58 = vpop.f32.mrf.mxu1  ;;  %v5379_v38 = vpop.f32.mrf.mxu0 }
 0x87f   : > { %v5429_v54 = vpack.c.bf16 %v5336_v58, %v5332_v45  ;;  %v5572_v55 = vpack.c.bf16 %v5379_v38, %v5375_v43  ;;  %v9548_v45 = vld [vmem:[%s12975_s18 + $0x50] ss:$20 sps:$4 sm:$0xff]   ;;  %v9550_v43 = vld [vmem:[%s12975_s18 + $0x54] ss:$20 sps:$4 sm:$0xff]   ;;  %v9556_v38 = vld [vmem:[%s12975_s18 + $0x2c] ss:$20 sps:$4 sm:$0xff]  }
 0x880   : > { %v5338_v59 = vpop.f32.mrf.mxu1  ;;  %v5381_v35 = vpop.f32.mrf.mxu0  ;;  %v9554_v58 = vld [vmem:[%s12975_s18 + $0x28] ss:$20 sps:$4 sm:$0xff]  }
 0x881   : > { %v5435_v25 = vpack.c.bf16 %v5338_v59, %v5334_v51  ;;  %v5647_v0 = vpack.c.bf16 %v5381_v35, %v5377_v3  ;;  %v9551_v51 = vld [vmem:[%s12975_s18 + $0x58] ss:$20 sps:$4 sm:$0xff]   ;;  %v9553_v3 = vld [vmem:[%s12975_s18 + $0x5c] ss:$20 sps:$4 sm:$0xff]   ;;  %v9559_v35 = vld [vmem:[%s12975_s18 + $0x34] ss:$20 sps:$4 sm:$0xff]  }
 0x882   : > { %v9557_v59 = vld [vmem:[%s12975_s18 + $0x30] ss:$20 sps:$4 sm:$0xff]  }
 0x883   : > { %8868 = vmatprep.subr.bf16.mxu0 %v5435_v25  ;;  %8886 = vmatprep.subr.bf16.mxu1 %v5647_v0 }
 0x884   : > { %8869 = vmatpush3.bf16.msra.mxu0 %v5435_v25  ;;  %8887 = vmatpush3.bf16.msra.mxu1 %v5647_v0  ;;  %v9562_v25 = vld [vmem:[%s12975_s18 + $0x4] ss:$20 sps:$4 sm:$0xff]   ;;  %v9565_v0 = vld [vmem:[%s12975_s18 + $0xc] ss:$20 sps:$4 sm:$0xff]  }
 0x885   : > { %8874 = vmatprep.subr.bf16.mxu0 %v5429_v54  ;;  %6073 = vmatprep.subr.bf16.mxu1 %v9520_v27 }
 0x887   : > { %8871 = vmatmul.mubr.msk.bf16.vlgmr.msra.gmra.mxu0 %vm5446_vm4, %v9509_v62  ;;  %8889 = vmatmul.mubr.msk.bf16.vlgmr.msra.gmra.mxu1 %vm5446_vm4, %v9515_v13  ;;  %v9563_v62 = vld [vmem:[%s12975_s18 + $0x8] ss:$20 sps:$4 sm:$0xff]  }
 0x888   : > { %8875 = vmatpush3.bf16.msra.mxu0 %v5429_v54  ;;  %8876 = vmatprep.mubr.msk.bf16.mxu0 %vm5446_vm4, %v9510_v52  ;;  %v9560_v54 = vld [vmem:[%s12975_s18] ss:$20 sps:$4 sm:$0xff]   ;;  %v9566_v13 = vld [vmem:[%s12975_s18 + $0x128] ss:$20 sps:$4 sm:$0xff]  }
 0x889   : > { %8880 = vmatprep.subr.bf16.mxu0 %v5572_v55  ;;  %6105 = vmatprep.mubr.bf16.mxu1 %v13139_v17 }
 0x88a   : > { %6074 = vmatpush1.bf16.msra.mxu1 %v9518_v10 }
 0x88b   : > { %6075 = vmatprep.subr.bf16.mxu1 %v9526_v4 }
 0x88e   : > { %6076 = vmatpush1.bf16.msra.mxu1 %v9524_v19 }
 0x88f   : > { %8877 = vmatmul.mubr.msk.bf16.vlgmr.msra.gmra.mxu0 %vm5446_vm4, %v9511_v11  ;;  %6077 = vmatprep.subr.bf16.mxu1 %v9532_v48 }
 0x890   : > { %8881 = vmatpush3.bf16.msra.mxu0 %v5572_v55  ;;  %8882 = vmatprep.mubr.msk.bf16.mxu0 %vm5446_vm4, %v9512_v47 }
 0x892   : > { %6078 = vmatpush1.bf16.msra.mxu1 %v9530_v14 }
 0x893   : > { %6079 = vmatprep.subr.bf16.mxu1 %v9538_v41 }
 0x896   : > { %6080 = vmatpush1.bf16.msra.mxu1 %v9536_v61 }
 0x897   : > { %8883 = vmatmul.mubr.msk.bf16.vlgmr.msra.gmra.mxu0 %vm5446_vm4, %v9513_v40  ;;  %6081 = vmatprep.subr.bf16.mxu1 %v9544_v5 }
 0x898   : > { %8894 = vmatprep.mubr.msk.bf16.mxu0 %vm5446_vm4, %v9516_v28 }
 0x89a   : > { %v5418_v32 = vpop.f32.mrf.mxu1  ;;  %6082 = vmatpush1.bf16.msra.mxu1 %v9542_v63  ;;  %v8404_v63 = vld [vmem:[%s12974_s17] ss:$0 sm:$0xff] }
 0x89b   : > { %6083 = vmatprep.subr.bf16.mxu1 %v9550_v43 }
 0x89c   : > { %v8866_v22 = vpop.f32.mrf.mxu1 }
 0x89e   : > { %v5421_v9 = vpop.f32.mrf.mxu1  ;;  %6084 = vmatpush1.bf16.msra.mxu1 %v9548_v45 }
 0x89f   : > { %v5722_v23 = vpack.c.bf16 %v5421_v9, %v5418_v32  ;;  %6085 = vmatprep.subr.bf16.mxu1 %v9556_v38 }
 0x8a0   : > { %v8867_v24 = vpop.f32.mrf.mxu1 }
 0x8a1   : > { %8892 = vmatprep.subr.bf16.mxu0 %v5722_v23 }
 0x8a2   : > { %8893 = vmatpush3.bf16.msra.mxu0 %v5722_v23  ;;  %6086 = vmatpush1.bf16.msra.mxu1 %v9554_v58 }
 0x8a3   : > { %6126 = vmatprep.subr.bf16.mxu0 %v9523_v36  ;;  %6087 = vmatprep.subr.bf16.mxu1 %v9562_v25 }
 0x8a5   : > { %8895 = vmatmul.mubr.msk.bf16.vlgmr.msra.gmra.mxu0 %vm5446_vm4, %v9517_v46  ;;  %vm13158_vm4 = vcmp.lt.s32.totalorder %v11395_v16, 8 }
 0x8a6   : > { %6158 = vmatprep.mubr.bf16.mxu0 %v13139_v17  ;;  %6127 = vmatpush1.bf16.msra.mxu0 %v9521_v8 }
 0x8a7   : > { %6128 = vmatprep.subr.bf16.mxu0 %v9529_v7  ;;  %6088 = vmatpush1.bf16.msra.mxu1 %v9560_v54 }
 0x8a8   : > { %8898 = vmatprep.subr.bf16.mxu1 %v9566_v13 }
 0x8aa   : > { %6129 = vmatpush1.bf16.msra.mxu0 %v9527_v56 }
 0x8ab   : > { %6130 = vmatprep.subr.bf16.mxu0 %v9535_v42 }
 0x8ae   : > { %6131 = vmatpush1.bf16.msra.mxu0 %v9533_v57 }
 0x8af   : > { %6132 = vmatprep.subr.bf16.mxu0 %v9541_v39 }
 0x8b2   : > { %6133 = vmatpush1.bf16.msra.mxu0 %v9539_v34 }
 0x8b3   : > { %6134 = vmatprep.subr.bf16.mxu0 %v9547_v33 }
 0x8b6   : > { %6135 = vmatpush1.bf16.msra.mxu0 %v9545_v44 }
 0x8b7   : > { %6136 = vmatprep.subr.bf16.mxu0 %v9553_v3 }
 0x8ba   : > { %6137 = vmatpush1.bf16.msra.mxu0 %v9551_v51 }
 0x8bb   : > { %6138 = vmatprep.subr.bf16.mxu0 %v9559_v35 }
 0x8be   : > { %6139 = vmatpush1.bf16.msra.mxu0 %v9557_v59 }
 0x8bf   : > { %6140 = vmatprep.subr.bf16.mxu0 %v9565_v0 }
 0x8c2   : > { %6141 = vmatpush1.bf16.msra.mxu0 %v9563_v62 }
 0x947   : > { %v8872_v52 = vpop.f32.mrf.mxu0  ;;  %v8890_v24 = vpop.f32.mrf.mxu1 }
 0x949   : > { %v5487_v55 = vpop.f32.mrf.mxu0  ;;  %v5698_v10 = vpop.f32.mrf.mxu1 }
 0x94b   : > { %v8873_v11 = vpop.f32.mrf.mxu0  ;;  %v8891_v19 = vpop.f32.mrf.mxu1 }
 0x94d   : > { %v5490_v47 = vpop.f32.mrf.mxu0  ;;  %v5701_v61 = vpop.f32.mrf.mxu1 }
 0x94f   : > { %v8878_v40 = vpop.f32.mrf.mxu0 }
 0x950   : > { %v5561_v14 = vadd.f32 %v8878_v40, %v8872_v52 }
 0x951   : > { %v5552_v28 = vpop.f32.mrf.mxu0 }
 0x952   : > { %v5553_v27 = vadd.f32 %v5552_v28, %v5487_v55  ;;  %v9568_v28 = vld [vmem:[%s12975_s18 + $0xd8] ss:$20 sps:$4 sm:$0xff]  }
 0x953   : > { %v8879_v32 = vpop.f32.mrf.mxu0 }
 0x954   : > { %v5564_v4 = vadd.f32 %v8879_v32, %v8873_v11  ;;  %v9567_v11 = vld [vmem:[%s12975_s18 + $0x100] ss:$20 sps:$4 sm:$0xff]  }
 0x955   : > { %v5555_v22 = vpop.f32.mrf.mxu0 }
 0x956   : > { %v5556_v56 = vadd.f32 %v5555_v22, %v5490_v47 }
 0x957   : > { %v8884_v9 = vpop.f32.mrf.mxu0 }
 0x958   : > { %v5640_v34 = vadd.f32 %v8884_v9, %v5561_v14  ;;  %v9583_v14 = vld [vmem:[%s12977_s20 + $0xf8] ss:$20 sps:$4 sm:$0xff]  }
 0x959   : > { %v5623_v23 = vpop.f32.mrf.mxu0 }
 0x95a   : > { %v5638_v8 = vadd.f32 %v5623_v23, %v5553_v27  ;;  %v5715_v51 = vadd.f32 %v8890_v24, %v5640_v34  ;;  %v9569_v23 = vld [vmem:[%s12975_s18 + $0xb0] ss:$20 sps:$4 sm:$0xff]   ;;  %v9571_v24 = vld [vmem:[%s12975_s18 + $0x60] ss:$20 sps:$4 sm:$0xff]   ;;  %v9574_v27 = vld [vmem:[%s12977_s20 + $0x118] ss:$20 sps:$4 sm:$0xff]  }
 0x95b   : > { %v8885_v46 = vpop.f32.mrf.mxu0  ;;  %v9592_v34 = vld [vmem:[%s12977_s20 + $0xa0] ss:$20 sps:$4 sm:$0xff]  }
 0x95c   : > { %v5641_v48 = vadd.f32 %v8885_v46, %v5564_v4  ;;  %v5713_v57 = vadd.f32 %v5698_v10, %v5638_v8  ;;  %v9572_v46 = vld [vmem:[%s12975_s18 + $0x38] ss:$20 sps:$4 sm:$0xff]   ;;  %v9573_v10 = vld [vmem:[%s12975_s18 + $0x10] ss:$20 sps:$4 sm:$0xff]   ;;  %v9582_v4 = vld [vmem:[%s12977_s20 + $0xf4] ss:$20 sps:$4 sm:$0xff]  }
 0x95d   : > { %v5626_v36 = vpop.f32.mrf.mxu0  ;;  %v9576_v8 = vld [vmem:[%s12977_s20 + $0x11c] ss:$20 sps:$4 sm:$0xff]  }
 0x95e   : > { %v5639_v42 = vadd.f32 %v5626_v36, %v5556_v56  ;;  %v5716_v44 = vadd.f32 %v8891_v19, %v5641_v48  ;;  %v9577_v36 = vld [vmem:[%s12977_s20 + $0x120] ss:$20 sps:$4 sm:$0xff]   ;;  %v9579_v19 = vld [vmem:[%s12977_s20 + $0x124] ss:$20 sps:$4 sm:$0xff]   ;;  %6573 = vmatprep.subr.bf16.mxu0 %v9576_v8  ;;  %v9585_v56 = vld [vmem:[%s12977_s20 + $0xfc] ss:$20 sps:$4 sm:$0xff]  }
 0x95f   : > { %v9588_v48 = vld [vmem:[%s12977_s20 + $0xcc] ss:$20 sps:$4 sm:$0xff]  }
 0x960   : > { %v5714_v33 = vadd.f32 %v5701_v61, %v5639_v42  ;;  %v9586_v42 = vld [vmem:[%s12977_s20 + $0xc8] ss:$20 sps:$4 sm:$0xff]   ;;  %v9589_v61 = vld [vmem:[%s12977_s20 + $0xd0] ss:$20 sps:$4 sm:$0xff]  }
 0x965   : > { %v8896_v7 = vpop.f32.mrf.mxu0 }
 0x966   : > { %v5790_v38 = vadd.f32 %v8896_v7, %v5715_v51  ;;  %v9580_v7 = vld [vmem:[%s12977_s20 + $0xf0] ss:$20 sps:$4 sm:$0xff]   ;;  %v9606_v51 = vld [vmem:[%s12977_s20 + $0x54] ss:$20 sps:$4 sm:$0xff]  }
 0x967   : > { %v5773_v41 = vpop.f32.mrf.mxu0 }
 0x968   : > { %v5788_v39 = vadd.f32 %v5773_v41, %v5713_v57  ;;  %v5801_v54 = vadd.f32 %v8404_v63, %v5790_v38  ;;  %v9591_v57 = vld [vmem:[%s12977_s20 + $0xd4] ss:$20 sps:$4 sm:$0xff]   ;;  %v9594_v41 = vld [vmem:[%s12977_s20 + $0xa4] ss:$20 sps:$4 sm:$0xff]   ;;  %v9612_v38 = vld [vmem:[%s12977_s20 + $0x2c] ss:$20 sps:$4 sm:$0xff]  }
 0x969   : > { %v8897_v5 = vpop.f32.mrf.mxu0 }
 0x96a   : > { %v5799_v45 = vadd.f32 %v8404_v63, %v5788_v39  ;;  %v5791_v3 = vadd.f32 %v8897_v5, %v5716_v44  ;;  %v5809_v40 = vmul.f32 0.01, %v5801_v54  ;;  %vm5805_vm7 = vcmp.ge.f32.partialorder %v5801_v54, 0.0  ;;  %v9597_v39 = vld [vmem:[%s12977_s20 + $0xac] ss:$20 sps:$4 sm:$0xff]  }
 0x96b   : > { %v5776_v43 = vpop.f32.mrf.mxu0  ;;  %v9600_v5 = vld [vmem:[%s12977_s20 + $0x7c] ss:$20 sps:$4 sm:$0xff]   ;;  %v9598_v44 = vld [vmem:[%s12977_s20 + $0x78] ss:$20 sps:$4 sm:$0xff]  }
 0x96c   : > { %v5789_v58 = vadd.f32 %v5776_v43, %v5714_v33  ;;  %v5807_v59 = vmul.f32 0.01, %v5799_v45  ;;  %vm5803_vm5 = vcmp.ge.f32.partialorder %v5799_v45, 0.0  ;;  %v5802_v25 = vadd.f32 %v8404_v63, %v5791_v3  ;;  %v9601_v33 = vld [vmem:[%s12977_s20 + $0x80] ss:$20 sps:$4 sm:$0xff]  }
 0x96d   : > { %v5813_v22 = vsel %vm5805_vm7, %v5801_v54, %v5809_v40  ;;  %v9604_v43 = vld [vmem:[%s12977_s20 + $0x50] ss:$20 sps:$4 sm:$0xff]   ;;  %v9607_v3 = vld [vmem:[%s12977_s20 + $0x58] ss:$20 sps:$4 sm:$0xff]   ;;  %vm13162_vm7 = vcmp.lt.s32.totalorder %v11438_v18, 8 }
 0x96e   : > { %v5800_v35 = vadd.f32 %v8404_v63, %v5789_v58  ;;  %v5811_v62 = vsel %vm5803_vm5, %v5799_v45, %v5807_v59  ;;  %v5810_v47 = vmul.f32 0.01, %v5802_v25  ;;  %vm5806_vm12 = vcmp.ge.f32.partialorder %v5802_v25, 0.0  ;;  %v9595_v63 = vld [vmem:[%s12977_s20 + $0xa8] ss:$20 sps:$4 sm:$0xff]  }
 0x96f   : > { %v9603_v45 = vld [vmem:[%s12977_s20 + $0x84] ss:$20 sps:$4 sm:$0xff]   ;;  %v9609_v58 = vld [vmem:[%s12977_s20 + $0x5c] ss:$20 sps:$4 sm:$0xff]   ;;  %v9615_v59 = vld [vmem:[%s12977_s20 + $0x34] ss:$20 sps:$4 sm:$0xff]  }
 0x970   : > { %vm5804_vm11 = vcmp.ge.f32.partialorder %v5800_v35, 0.0  ;;  %v5808_v0 = vmul.f32 0.01, %v5800_v35  ;;  %v5814_v32 = vsel %vm5806_vm12, %v5802_v25, %v5810_v47  ;;  %v9613_v25 = vld [vmem:[%s12977_s20 + $0x30] ss:$20 sps:$4 sm:$0xff]   ;;  %vm13159_vm5 = vcmp.lt.s32.totalorder %v11378_v6, 8 }
 0x971   : > { %v5816_v9 = vpack.c.bf16 %v5814_v32, %v5813_v22  ;;  %v9621_v54 = vld [vmem:[%s12977_s20 + $0xc] ss:$20 sps:$4 sm:$0xff]   ;;  %vm13161_vm12 = vcmp.lt.s32.totalorder %v11397_v12, 8 }
 0x972   : > { %v5812_v52 = vsel %vm5804_vm11, %v5800_v35, %v5808_v0  ;;  %v9610_v35 = vld [vmem:[%s12977_s20 + $0x28] ss:$20 sps:$4 sm:$0xff]   ;;  %v9618_v0 = vld [vmem:[%s12977_s20 + $0x4] ss:$20 sps:$4 sm:$0xff]   ;;  %vm13160_vm11 = vcmp.lt.s32.totalorder %v11393_v50, 8 }
 0x973   : > { %v5815_v55 = vpack.c.bf16 %v5812_v52, %v5811_v62  ;;  %v9616_v62 = vld [vmem:[%s12977_s20] ss:$20 sps:$4 sm:$0xff]   ;;  %v9619_v52 = vld [vmem:[%s12977_s20 + $0x8] ss:$20 sps:$4 sm:$0xff]  }
 0x975   : > { %6106 = vmatmul.mubr.bf16.vlgmr.msra.gmra.mxu1 %v5815_v55  ;;  %6159 = vmatmul.mubr.bf16.vlgmr.msra.gmra.mxu0 %v5815_v55 }
 0x976   : > { %8899 = vmatpush3.bf16.msra.mxu1 %v9566_v13  ;;  %6115 = vmatprep.mubr.bf16.mxu1 %v13139_v17  ;;  %v9570_v13 = vld [vmem:[%s12975_s18 + $0x88] ss:$20 sps:$4 sm:$0xff]  }
 0x977   : > { %8900 = vmatprep.subr.bf16.mxu1 %v9567_v11  ;;  %6168 = vmatprep.mubr.bf16.mxu0 %v13139_v17 }
 0x978   : > { %6574 = vmatpush1.bf16.msra.mxu0 %v9574_v27 }
 0x979   : > { %6575 = vmatprep.subr.bf16.mxu0 %v9582_v4 }
 0x97a   : > { %8901 = vmatpush3.bf16.msra.mxu1 %v9567_v11 }
 0x97b   : > { %8902 = vmatprep.subr.bf16.mxu1 %v9568_v28 }
 0x97c   : > { %6576 = vmatpush1.bf16.msra.mxu0 %v9580_v7 }
 0x97d   : > { %6116 = vmatmul.mubr.bf16.gmra.mxu1 %v5816_v9  ;;  %6169 = vmatmul.mubr.bf16.gmra.mxu0 %v5816_v9 }
 0x97e   : > { %8903 = vmatpush3.bf16.msra.mxu1 %v9568_v28  ;;  %8914 = vmatprep.mubr.bf16.mxu1 %v5815_v55  ;;  %v12450_v55 = vld [vmem:[%s12977_s20 + $0x128] ss:$20 sps:$4 sm:$0xff]  }
 0x97f   : > { %8904 = vmatprep.subr.bf16.mxu1 %v9569_v23  ;;  %6605 = vmatprep.mubr.bf16.mxu0 %v13139_v17 }
 0x980   : > { %6577 = vmatprep.subr.bf16.mxu0 %v9588_v48 }
 0x981   : > { %6578 = vmatpush1.bf16.msra.mxu0 %v9586_v42 }
 0x982   : > { %8905 = vmatpush3.bf16.msra.mxu1 %v9569_v23  ;;  %6579 = vmatprep.subr.bf16.mxu0 %v9594_v41 }
 0x983   : > { %8906 = vmatprep.subr.bf16.mxu1 %v9570_v13 }
 0x985   : > { %6580 = vmatpush1.bf16.msra.mxu0 %v9592_v34 }
 0x986   : > { %8907 = vmatpush3.bf16.msra.mxu1 %v9570_v13  ;;  %6581 = vmatprep.subr.bf16.mxu0 %v9600_v5 }
 0x987   : > { %8908 = vmatprep.subr.bf16.mxu1 %v9571_v24 }
 0x989   : > { %6582 = vmatpush1.bf16.msra.mxu0 %v9598_v44 }
 0x98a   : > { %8909 = vmatpush3.bf16.msra.mxu1 %v9571_v24  ;;  %6583 = vmatprep.subr.bf16.mxu0 %v9606_v51 }
 0x98b   : > { %8910 = vmatprep.subr.bf16.mxu1 %v9572_v46 }
 0x98d   : > { %6584 = vmatpush1.bf16.msra.mxu0 %v9604_v43 }
 0x98e   : > { %8911 = vmatpush3.bf16.msra.mxu1 %v9572_v46  ;;  %6585 = vmatprep.subr.bf16.mxu0 %v9612_v38 }
 0x98f   : > { %8912 = vmatprep.subr.bf16.mxu1 %v9573_v10 }
 0x991   : > { %6586 = vmatpush1.bf16.msra.mxu0 %v9610_v35 }
 0x992   : > { %8913 = vmatpush3.bf16.msra.mxu1 %v9573_v10  ;;  %6587 = vmatprep.subr.bf16.mxu0 %v9618_v0 }
 0x993   : > { %6626 = vmatprep.subr.bf16.mxu1 %v9579_v19 }
 0x995   : > { %8915 = vmatmul.mubr.bf16.vlgmr.msra.gmra.mxu1 %v5816_v9  ;;  %6588 = vmatpush1.bf16.msra.mxu0 %v9616_v62 }
 0x996   : > { %6658 = vmatprep.mubr.bf16.mxu1 %v13139_v17  ;;  %6627 = vmatpush1.bf16.msra.mxu1 %v9577_v36 }
 0x997   : > { %6628 = vmatprep.subr.bf16.mxu1 %v9585_v56  ;;  %8918 = vmatprep.subr.bf16.mxu0 %v12450_v55 }
 0x99a   : > { %6629 = vmatpush1.bf16.msra.mxu1 %v9583_v14 }
 0x99b   : > { %6630 = vmatprep.subr.bf16.mxu1 %v9591_v57 }
 0x99e   : > { %6631 = vmatpush1.bf16.msra.mxu1 %v9589_v61 }
 0x99f   : > { %6632 = vmatprep.subr.bf16.mxu1 %v9597_v39 }
 0x9a2   : > { %6633 = vmatpush1.bf16.msra.mxu1 %v9595_v63 }
 0x9a3   : > { %6634 = vmatprep.subr.bf16.mxu1 %v9603_v45 }
 0x9a6   : > { %6635 = vmatpush1.bf16.msra.mxu1 %v9601_v33 }
 0x9a7   : > { %6636 = vmatprep.subr.bf16.mxu1 %v9609_v58 }
 0x9aa   : > { %6637 = vmatpush1.bf16.msra.mxu1 %v9607_v3 }
 0x9ab   : > { %6638 = vmatprep.subr.bf16.mxu1 %v9615_v59 }
 0x9ae   : > { %6639 = vmatpush1.bf16.msra.mxu1 %v9613_v25 }
 0x9af   : > { %6640 = vmatprep.subr.bf16.mxu1 %v9621_v54 }
 0x9b2   : > { %6641 = vmatpush1.bf16.msra.mxu1 %v9619_v52 }
 0xa35   : > { %v6107_v11 = vpop.f32.mrf.mxu1  ;;  %v6160_v47 = vpop.f32.mrf.mxu0 }
 0xa36   : > { %v6228_v7 = vrot.slane %v6107_v11, 6 }
 0xa37   : > { %v6109_v40 = vpop.f32.mrf.mxu1  ;;  %v6162_v28 = vpop.f32.mrf.mxu0 }
 0xa38   : > { %v6244_v63 = vrot.slane %v6109_v40, 7  ;;  %v6260_v25 = vrot.slane %v6162_v28, 1 }
 0xa39   : > { %v6111_v32 = vpop.f32.mrf.mxu1  ;;  %v6164_v22 = vpop.f32.mrf.mxu0 }
 0xa3a   : > { %v6229_v4 = vrot.slane %v6111_v32, 6 }
 0xa3b   : > { %v6113_v9 = vpop.f32.mrf.mxu1  ;;  %v6166_v23 = vpop.f32.mrf.mxu0 }
 0xa3c   : > { %v6234_v61 = vsel %vm1744_vm0, %v6228_v7, %v6229_v4  ;;  %v6245_v41 = vrot.slane %v6113_v9, 7  ;;  %v6261_v33 = vrot.slane %v6166_v23, 1 }
 0xa3d   : > { %v6117_v13 = vpop.f32.mrf.mxu1  ;;  %v6170_v24 = vpop.f32.mrf.mxu0  ;;  %v6237_v51 = vsel %vm13152_vm9, %v6234_v61, 0.0  ;;  %vm13164_vm9 = vcmp.lt.s32.totalorder %v11405_v2, 8 }
 0xa3e   : > { %v6230_v56 = vrot.slane %v6117_v13, 6  ;;  %v6250_v37 = vsel %vm1841_vm2, %v6244_v63, %v6245_v41  ;;  %v6241_v54 = vadd.f32 %v6237_v51, %v6164_v22  ;;  %v6266_v32 = vsel %vm1938_vm10, %v6260_v25, %v6261_v33 }
 0xa3f   : > { %v6119_v46 = vpop.f32.mrf.mxu1  ;;  %v6172_v10 = vpop.f32.mrf.mxu0  ;;  %v6253_v40 = vsel %vm13156_vm1, %v6250_v37, 0.0  ;;  %v6268_v60 = vsel %vm13159_vm5, %v6266_v32, 0.0  ;;  %v9624_v37 = vld [vmem:[%s12977_s20 + $0xd8] ss:$20 sps:$4 sm:$0xff]  }
 0xa40   : > { %v6233_v34 = vsel %vm1744_vm0, %v6229_v4, %v6230_v56  ;;  %v6246_v39 = vrot.slane %v6119_v46, 7  ;;  %v6262_v58 = vrot.slane %v6172_v10, 1  ;;  %v6257_v46 = vadd.f32 %v6253_v40, %v6241_v54  ;;  %v9630_v54 = vld [vmem:[%s12978_s21] sm:$0xff]  }
 0xa41   : > { %v6121_v27 = vpop.f32.mrf.mxu1  ;;  %v6174_v36 = vpop.f32.mrf.mxu0  ;;  %v6238_v3 = vsel %vm13153_vm15, %v6233_v34, 0.0  ;;  %vm13165_vm15 = vcmp.lt.s32.totalorder %v11436_v30, 8  ;;  %v9623_v30 = vld [vmem:[%s12977_s20 + $0x100] ss:$20 sps:$4 sm:$0xff]  }
 0xa42   : > { %v6231_v8 = vrot.slane %v6121_v27, 6  ;;  %v6249_v53 = vsel %vm1841_vm2, %v6245_v41, %v6246_v39  ;;  %v6242_v62 = vadd.f32 %v6238_v3, %v6170_v24  ;;  %v6265_v15 = vsel %vm1938_vm10, %v6261_v33, %v6262_v58 }
 0xa43   : > { %v6123_v19 = vpop.f32.mrf.mxu1  ;;  %v6176_v57 = vpop.f32.mrf.mxu0  ;;  %v6269_v27 = vsel %vm13160_vm11, %v6265_v15, 0.0 }
 0xa44   : > { %v6232_v14 = vsel %vm1744_vm0, %v6230_v56, %v6231_v8  ;;  %v6247_v48 = vrot.slane %v6123_v19, 7  ;;  %v6235_v42 = vsel %vm1744_vm0, %v6231_v8, %v6228_v7  ;;  %v6263_v44 = vrot.slane %v6176_v57, 1 }
 0xa45   : > { %v6239_v5 = vsel %vm3502_vm6, %v6232_v14, 0.0  ;;  %v6236_v45 = vsel %vm13151_vm13, %v6235_v42, 0.0  ;;  %vm13155_vm6 = vcmp.ge.s32.totalorder %v11370_v26, 0  ;;  %vm13163_vm13 = vcmp.lt.s32.totalorder %v11440_v21, 8  ;;  %v8445_v21 = vld [vmem:[%s12976_s19] ss:$0 sm:$0xff] }
 0xa46   : > { %v6248_v43 = vsel %vm1841_vm2, %v6246_v39, %v6247_v48  ;;  %v6251_v38 = vsel %vm1841_vm2, %v6247_v48, %v6244_v63  ;;  %v6243_v59 = vadd.f32 %v6239_v5, %v6174_v36  ;;  %v6240_v0 = vadd.f32 %v6236_v45, %v6160_v47 }
 0xa47   : > { %v6255_v29 = vsel %vm13154_vm8, %v6248_v43, 0.0  ;;  %v6264_v1 = vsel %vm1938_vm10, %v6262_v58, %v6263_v44  ;;  %v6252_v52 = vsel %vm13155_vm6, %v6251_v38, 0.0  ;;  %v6254_v47 = vsel %vm13157_vm3, %v6249_v53, 0.0 }
 0xa48   : > { %v6259_v28 = vadd.f32 %v6255_v29, %v6243_v59  ;;  %v6267_v22 = vsel %vm1938_vm10, %v6263_v44, %v6260_v25  ;;  %v6270_v26 = vsel %vm13158_vm4, %v6264_v1, 0.0  ;;  %v6256_v23 = vadd.f32 %v6252_v52, %v6240_v0  ;;  %v9625_v25 = vld [vmem:[%s12977_s20 + $0xb0] ss:$20 sps:$4 sm:$0xff]   ;;  %v9627_v0 = vld [vmem:[%s12977_s20 + $0x60] ss:$20 sps:$4 sm:$0xff]  }
 0xa49   : > { %v6258_v10 = vadd.f32 %v6254_v47, %v6242_v62  ;;  %v6271_v36 = vsel %vm13161_vm12, %v6267_v22, 0.0  ;;  %v6273_v14 = vadd.f32 %v6269_v27, %v6257_v46  ;;  %v9628_v29 = vld [vmem:[%s12977_s20 + $0x38] ss:$20 sps:$4 sm:$0xff]   ;;  %v9629_v1 = vld [vmem:[%s12977_s20 + $0x10] ss:$20 sps:$4 sm:$0xff]   ;;  %vm13166_vm4 = vcmask 261120  }
 0xa4a   : > { %v6275_v7 = vadd.f32 %v6271_v36, %v6259_v28  ;;  %v6272_v48 = vadd.f32 %v6268_v60, %v6256_v23  ;;  %v9631_v62 = vld [vmem:[%s12978_s21 + $0x20] sm:$0xff]   ;;  %vm13167_vm5 = vmmov %vm13166_vm4 }
 0xa4b   : > { %v6274_v56 = vadd.f32 %v6270_v26, %v6258_v10  ;;  %vm13168_vm11 = vmmov %vm13166_vm4 }
 0xa4c   : > { %vm13169_vm12 = vmmov %vm13166_vm4 }
 0xa55   : > { %v8916_v35 = vpop.f32.mrf.mxu1 }
 0xa56   : > { %v6278_v49 = vrot.slane %v8916_v35, 2 }
 0xa57   : > { %v6213_v11 = vpop.f32.mrf.mxu1 }
 0xa58   : > { %v6276_v13 = vrot.slane %v6213_v11, 2 }
 0xa59   : > { %v8917_v9 = vpop.f32.mrf.mxu1 }
 0xa5a   : > { %v6279_v24 = vrot.slane %v8917_v9, 2 }
 0xa5b   : > { %v6216_v8 = vpop.f32.mrf.mxu1 }
 0xa5c   : > { %v6280_v16 = vsel %vm2035_vm14, %v6278_v49, %v6279_v24  ;;  %v6283_v19 = vsel %vm2035_vm14, %v6279_v24, %v6276_v13  ;;  %v6277_v4 = vrot.slane %v6216_v8, 2 }
 0xa5d   : > { %v6286_v6 = vsel %vm13162_vm7, %v6280_v16, 0.0  ;;  %v6287_v50 = vsel %vm13163_vm13, %v6283_v19, 0.0  ;;  %v9632_v19 = vld [vmem:[%s12978_s21 + $0x8] sm:$0xff]   ;;  %vm13170_vm7 = vmmov %vm13166_vm4 }
 0xa5e   : > { %v6281_v12 = vsel %vm2035_vm14, %v6277_v4, %v6278_v49  ;;  %v6282_v57 = vsel %vm2035_vm14, %v6276_v13, %v6277_v4  ;;  %v6290_v42 = vadd.f32 %v6286_v6, %v6274_v56  ;;  %v6291_v61 = vadd.f32 %v6287_v50, %v6275_v7  ;;  %v9636_v4 = vld [vmem:[%s12978_s21 + $0x10] sm:$0xff]   ;;  %v9633_v7 = vld [vmem:[%s12978_s21 + $0x28] sm:$0xff]   ;;  %vm13171_vm13 = vmmov %vm13166_vm4 }
 0xa5f   : > { %v6284_v41 = vsel %vm13164_vm9, %v6282_v57, 0.0  ;;  %v6285_v18 = vsel %vm13165_vm15, %v6281_v12, 0.0  ;;  %v9634_v6 = vld [vmem:[%s12978_s21 + $0x30] sm:$0xff]   ;;  %v9640_v12 = vld [vmem:[%s12978_s21 + $0x60] sm:$0xff]   ;;  %v9635_v57 = vld [vmem:[%s12978_s21 + $0x38] sm:$0xff]  }
 0xa60   : > { %v6288_v34 = vadd.f32 %v6284_v41, %v6272_v48  ;;  %v6289_v39 = vadd.f32 %v6285_v18, %v6273_v14  ;;  %v6301_v44 = vadd.f32 %v8445_v21, %v6290_v42  ;;  %v6302_v33 = vadd.f32 %v8445_v21, %v6291_v61  ;;  %v9637_v48 = vld [vmem:[%s12978_s21 + $0x18] sm:$0xff]   ;;  %v9638_v42 = vld [vmem:[%s12978_s21 + $0x40] sm:$0xff]   ;;  %vm13172_vm9 = vmmov %vm13166_vm4 }
 0xa61   : > { %vm13173_vm15 = vmmov %vm13166_vm4  ;;  %v9641_v18 = vld [vmem:[%s12978_s21 + $0x68] sm:$0xff]  }
 0xa62   : > { %v6299_v63 = vadd.f32 %v8445_v21, %v6288_v34  ;;  %v6300_v5 = vadd.f32 %v8445_v21, %v6289_v39  ;;  %v6309_v58 = vmul.f32 0.01, %v6301_v44  ;;  %v6310_v38 = vmul.f32 0.01, %v6302_v33  ;;  %v9644_v34 = vld [vmem:[%s12978_s21 + $0x70] sm:$0xff]  }
 0xa63   : > { %vm6305_vm1 = vcmp.ge.f32.partialorder %v6301_v44, 0.0  ;;  %vm6306_vm3 = vcmp.ge.f32.partialorder %v6302_v33, 0.0 }
 0xa64   : > { %vm6303_vm8 = vcmp.ge.f32.partialorder %v6299_v63, 0.0  ;;  %vm6304_vm6 = vcmp.ge.f32.partialorder %v6300_v5, 0.0  ;;  %v6307_v45 = vmul.f32 0.01, %v6299_v63  ;;  %v6308_v43 = vmul.f32 0.01, %v6300_v5 }
 0xa65   : > { %v6313_v53 = vsel %vm6305_vm1, %v6301_v44, %v6309_v58  ;;  %v6314_v59 = vsel %vm6306_vm3, %v6302_v33, %v6310_v38  ;;  %v9642_v44 = vld [vmem:[%s12978_s21 + $0x50] sm:$0xff]   ;;  %vm13176_vm1 = vmmov %vm13166_vm4  ;;  %v9650_v58 = vld [vmem:[%s12980_s23 + $0x118] ss:$20 sps:$4 sm:$0xff]  }
 0xa66   : > { %v6311_v51 = vsel %vm6303_vm8, %v6299_v63, %v6307_v45  ;;  %v6312_v2 = vsel %vm6304_vm6, %v6300_v5, %v6308_v43  ;;  %v6316_v35 = vpack.c.bf16 %v6314_v59, %v6313_v53  ;;  %vm13174_vm8 = vmmov %vm13166_vm4  ;;  %v9639_v63 = vld [vmem:[%s12978_s21 + $0x48] sm:$0xff]   ;;  %v9645_v45 = vld [vmem:[%s12978_s21 + $0x78] sm:$0xff]  }
 0xa67   : > { %v6315_v3 = vpack.c.bf16 %v6312_v2, %v6311_v51  ;;  %vm13175_vm6 = vmmov %vm13166_vm4  ;;  %v9643_v43 = vld [vmem:[%s12978_s21 + $0x58] sm:$0xff]   ;;  %v9646_v51 = vld [vmem:[%s12978_s21 + $0x80] sm:$0xff]  }
 0xa68   : > { %vm13177_vm3 = vmmov %vm13176_vm1  ;;  %v9647_v2 = vld [vmem:[%s12978_s21 + $0x88] sm:$0xff]   ;;  %v9652_v38 = vld [vmem:[%s12980_s23 + $0x11c] ss:$20 sps:$4 sm:$0xff]  }
 0xa69   : > { %6606 = vmatmul.mubr.bf16.vlgmr.msra.gmra.mxu0 %v6315_v3  ;;  %6659 = vmatmul.mubr.bf16.vlgmr.msra.gmra.mxu1 %v6315_v3  ;;  %v9655_v53 = vld [vmem:[%s12980_s23 + $0x124] ss:$20 sps:$4 sm:$0xff]  }
 0xa6a   : > { %8919 = vmatpush3.bf16.msra.mxu0 %v12450_v55  ;;  %6615 = vmatprep.mubr.bf16.mxu0 %v13139_v17  ;;  %v9626_v55 = vld [vmem:[%s12977_s20 + $0x88] ss:$20 sps:$4 sm:$0xff]   ;;  %v9656_v59 = vld [vmem:[%s12980_s23 + $0xf0] ss:$20 sps:$4 sm:$0xff]  }
 0xa6b   : > { %8920 = vmatprep.subr.bf16.mxu0 %v9623_v30  ;;  %6668 = vmatprep.mubr.bf16.mxu1 %v13139_v17 }
 0xa6e   : > { %8921 = vmatpush3.bf16.msra.mxu0 %v9623_v30  ;;  %v9649_v30 = vld [vmem:[%s12978_s21 + $0x98] sm:$0xff]  }
 0xa6f   : > { %8922 = vmatprep.subr.bf16.mxu0 %v9624_v37 }
 0xa71   : > { %6616 = vmatmul.mubr.bf16.gmra.mxu0 %v6316_v35  ;;  %6669 = vmatmul.mubr.bf16.gmra.mxu1 %v6316_v35 }
 0xa72   : > { %8923 = vmatpush3.bf16.msra.mxu0 %v9624_v37  ;;  %8934 = vmatprep.mubr.bf16.mxu0 %v6315_v3  ;;  %v9648_v3 = vld [vmem:[%s12978_s21 + $0x90] sm:$0xff]  }
 0xa73   : > { %8924 = vmatprep.subr.bf16.mxu0 %v9625_v25  ;;  %8954 = vmatprep.mubr.msk.bf16.mxu1 %vm13166_vm4, %v9630_v54  ;;  %vm13178_vm4 = vmmov %vm13176_vm1  ;;  %v9653_v37 = vld [vmem:[%s12980_s23 + $0x120] ss:$20 sps:$4 sm:$0xff]  }
 0xa74   : > { %v9667_v54 = vld [vmem:[%s12980_s23 + $0xd4] ss:$20 sps:$4 sm:$0xff]  }
 0xa76   : > { %8925 = vmatpush3.bf16.msra.mxu0 %v9625_v25  ;;  %v9659_v25 = vld [vmem:[%s12980_s23 + $0xf8] ss:$20 sps:$4 sm:$0xff]  }
 0xa77   : > { %8926 = vmatprep.subr.bf16.mxu0 %v9626_v55 }
 0xa7a   : > { %8927 = vmatpush3.bf16.msra.mxu0 %v9626_v55  ;;  %v9661_v55 = vld [vmem:[%s12980_s23 + $0xfc] ss:$20 sps:$4 sm:$0xff]  }
 0xa7b   : > { %8928 = vmatprep.subr.bf16.mxu0 %v9627_v0 }
 0xa7e   : > { %8929 = vmatpush3.bf16.msra.mxu0 %v9627_v0  ;;  %v9662_v0 = vld [vmem:[%s12980_s23 + $0xc8] ss:$20 sps:$4 sm:$0xff]  }
 0xa7f   : > { %8930 = vmatprep.subr.bf16.mxu0 %v9628_v29 }
 0xa82   : > { %8931 = vmatpush3.bf16.msra.mxu0 %v9628_v29  ;;  %v9664_v29 = vld [vmem:[%s12980_s23 + $0xcc] ss:$20 sps:$4 sm:$0xff]  }
 0xa83   : > { %8932 = vmatprep.subr.bf16.mxu0 %v9629_v1 }
 0xa86   : > { %8933 = vmatpush3.bf16.msra.mxu0 %v9629_v1  ;;  %v9665_v1 = vld [vmem:[%s12980_s23 + $0xd0] ss:$20 sps:$4 sm:$0xff]  }
 0xa89   : > { %8935 = vmatmul.mubr.bf16.vlgmr.msra.gmra.mxu0 %v6316_v35  ;;  %v9658_v35 = vld [vmem:[%s12980_s23 + $0xf4] ss:$20 sps:$4 sm:$0xff]  }
 0xa8a   : > { %8942 = vmatprep.mubr.msk.bf16.mxu0 %vm13167_vm5, %v9631_v62  ;;  %vm13179_vm5 = vmmov %vm13176_vm1  ;;  %v9668_v62 = vld [vmem:[%s12980_s23 + $0xa0] ss:$20 sps:$4 sm:$0xff]  }
 0xb29   : > { %v6607_v52 = vpop.f32.mrf.mxu0  ;;  %v6660_v11 = vpop.f32.mrf.mxu1 }
 0xb2b   : > { %v6609_v40 = vpop.f32.mrf.mxu0  ;;  %v6662_v32 = vpop.f32.mrf.mxu1 }
 0xb2d   : > { %v6611_v47 = vpop.f32.mrf.mxu0  ;;  %v6664_v15 = vpop.f32.mrf.mxu1 }
 0xb2e   : > { %v6736_v10 = vpack.c.bf16 %v6611_v47, %v6607_v52  ;;  %v6952_v14 = vpack.c.bf16 %v6664_v15, %v6660_v11  ;;  %v9670_v52 = vld [vmem:[%s12980_s23 + $0xa4] ss:$20 sps:$4 sm:$0xff]   ;;  %v9671_v11 = vld [vmem:[%s12980_s23 + $0xa8] ss:$20 sps:$4 sm:$0xff]   ;;  %v9677_v15 = vld [vmem:[%s12980_s23 + $0x80] ss:$20 sps:$4 sm:$0xff]  }
 0xb2f   : > { %v6613_v28 = vpop.f32.mrf.mxu0  ;;  %v6666_v22 = vpop.f32.mrf.mxu1  ;;  %v9676_v47 = vld [vmem:[%s12980_s23 + $0x7c] ss:$20 sps:$4 sm:$0xff]  }
 0xb30   : > { %v6747_v36 = vpack.c.bf16 %v6613_v28, %v6609_v40  ;;  %v7068_v50 = vpack.c.bf16 %v6666_v22, %v6662_v32  ;;  %v9673_v40 = vld [vmem:[%s12980_s23 + $0xac] ss:$20 sps:$4 sm:$0xff]   ;;  %v9679_v28 = vld [vmem:[%s12980_s23 + $0x84] ss:$20 sps:$4 sm:$0xff]  }
 0xb31   : > { %v6617_v26 = vpop.f32.mrf.mxu0  ;;  %v6670_v9 = vpop.f32.mrf.mxu1  ;;  %v9674_v32 = vld [vmem:[%s12980_s23 + $0x78] ss:$20 sps:$4 sm:$0xff]   ;;  %v9680_v22 = vld [vmem:[%s12980_s23 + $0x50] ss:$20 sps:$4 sm:$0xff]  }
 0xb33   : > { %v6619_v23 = vpop.f32.mrf.mxu0  ;;  %v6672_v49 = vpop.f32.mrf.mxu1 }
 0xb35   : > { %v6621_v13 = vpop.f32.mrf.mxu0  ;;  %v6674_v24 = vpop.f32.mrf.mxu1 }
 0xb36   : > { %v6737_v46 = vpack.c.bf16 %v6621_v13, %v6617_v26  ;;  %v6953_v56 = vpack.c.bf16 %v6674_v24, %v6670_v9  ;;  %v9682_v26 = vld [vmem:[%s12980_s23 + $0x54] ss:$20 sps:$4 sm:$0xff]   ;;  %v9683_v9 = vld [vmem:[%s12980_s23 + $0x58] ss:$20 sps:$4 sm:$0xff]   ;;  %v9689_v24 = vld [vmem:[%s12980_s23 + $0x30] ss:$20 sps:$4 sm:$0xff]  }
 0xb37   : > { %v6623_v60 = vpop.f32.mrf.mxu0  ;;  %v6676_v8 = vpop.f32.mrf.mxu1  ;;  %v9688_v13 = vld [vmem:[%s12980_s23 + $0x2c] ss:$20 sps:$4 sm:$0xff]  }
 0xb38   : > { %v6748_v27 = vpack.c.bf16 %v6623_v60, %v6619_v23  ;;  %8950 = vmatprep.subr.bf16.mxu1 %v6737_v46  ;;  %v7069_v16 = vpack.c.bf16 %v6676_v8, %v6672_v49  ;;  %v9685_v23 = vld [vmem:[%s12980_s23 + $0x5c] ss:$20 sps:$4 sm:$0xff]   ;;  %v9692_v60 = vld [vmem:[%s12980_s23] ss:$20 sps:$4 sm:$0xff]  }
 0xb39   : > { %8951 = vmatpush3.bf16.msra.mxu1 %v6737_v46  ;;  %v9686_v49 = vld [vmem:[%s12980_s23 + $0x28] ss:$20 sps:$4 sm:$0xff]   ;;  %v9697_v8 = vld [vmem:[%s12980_s23 + $0xc] ss:$20 sps:$4 sm:$0xff]  }
 0xb3a   : > { %8938 = vmatprep.subr.bf16.mxu0 %v6748_v27  ;;  %8952 = vmatprep.subr.bf16.mxu1 %v6736_v10  ;;  %v9691_v46 = vld [vmem:[%s12980_s23 + $0x34] ss:$20 sps:$4 sm:$0xff]  }
 0xb3b   : > { %8939 = vmatpush3.bf16.msra.mxu0 %v6748_v27  ;;  %v9695_v27 = vld [vmem:[%s12980_s23 + $0x8] ss:$20 sps:$4 sm:$0xff]  }
 0xb3c   : > { %8940 = vmatprep.subr.bf16.mxu0 %v6747_v36 }
 0xb3d   : > { %8953 = vmatpush3.bf16.msra.mxu1 %v6736_v10  ;;  %v9694_v10 = vld [vmem:[%s12980_s23 + $0x4] ss:$20 sps:$4 sm:$0xff]  }
 0xb3e   : > { %8974 = vmatprep.subr.bf16.mxu1 %v7069_v16 }
 0xb3f   : > { %8941 = vmatpush3.bf16.msra.mxu0 %v6747_v36  ;;  %v12725_v36 = vld [vmem:[%s12980_s23 + $0x128] ss:$20 sps:$4 sm:$0xff]  }
 0xb40   : > { %8962 = vmatprep.subr.bf16.mxu0 %v6953_v56  ;;  %8955 = vmatmul.mubr.msk.bf16.vlgmr.msra.gmra.mxu1 %vm13168_vm11, %v9632_v19  ;;  %vm13180_vm11 = vmmov %vm13176_vm1 }
 0xb41   : > { %8975 = vmatpush3.bf16.msra.mxu1 %v7069_v16  ;;  %8958 = vmatprep.mubr.msk.bf16.mxu1 %vm13169_vm12, %v9636_v4  ;;  %vm13181_vm12 = vmmov %vm13176_vm1 }
 0xb42   : > { %8943 = vmatmul.mubr.msk.bf16.vlgmr.msra.gmra.mxu0 %vm13170_vm7, %v9633_v7  ;;  %8976 = vmatprep.subr.bf16.mxu1 %v7068_v50  ;;  %vm13182_vm7 = vmmov %vm13176_vm1 }
 0xb43   : > { %8963 = vmatpush3.bf16.msra.mxu0 %v6953_v56  ;;  %8946 = vmatprep.mubr.msk.bf16.mxu0 %vm13171_vm13, %v9634_v6  ;;  %vm13183_vm13 = vmmov %vm13176_vm1 }
 0xb44   : > { %8964 = vmatprep.subr.bf16.mxu0 %v6952_v14 }
 0xb45   : > { %8977 = vmatpush3.bf16.msra.mxu1 %v7068_v50 }
 0xb46   : > { %7590 = vmatprep.subr.bf16.mxu1 %v9652_v38 }
 0xb47   : > { %8965 = vmatpush3.bf16.msra.mxu0 %v6952_v14 }
 0xb48   : > { %8959 = vmatmul.mubr.msk.bf16.gmra.mxu1 %vm13172_vm9, %v9637_v48  ;;  %vm13184_vm9 = vmmov %vm13176_vm1 }
 0xb49   : > { %v8936_v61 = vpop.f32.mrf.mxu0  ;;  %8978 = vmatprep.mubr.msk.bf16.mxu1 %vm13173_vm15, %v9640_v12  ;;  %vm13185_vm15 = vmmov %vm13176_vm1 }
 0xb4a   : > { %8947 = vmatmul.mubr.msk.bf16.gmra.mxu0 %vm13174_vm8, %v9635_v57 }
 0xb4b   : > { %v6713_v41 = vpop.f32.mrf.mxu0  ;;  %8966 = vmatprep.mubr.msk.bf16.mxu0 %vm13175_vm6, %v9638_v42 }
 0xb4d   : > { %v8937_v21 = vpop.f32.mrf.mxu0 }
 0xb4e   : > { %v7185_v39 = vpack.c.bf16 %v8937_v21, %v8936_v61 }
 0xb4f   : > { %v6716_v5 = vpop.f32.mrf.mxu0 }
 0xb50   : > { %8986 = vmatprep.subr.bf16.mxu0 %v7185_v39  ;;  %8979 = vmatmul.mubr.msk.bf16.vlgmr.msra.gmra.mxu1 %vm13176_vm1, %v9641_v18  ;;  %v7184_v33 = vpack.c.bf16 %v6716_v5, %v6713_v41 }
 0xb51   : > { %8982 = vmatprep.mubr.msk.bf16.mxu1 %vm13177_vm3, %v9644_v34  ;;  %7591 = vmatpush1.bf16.msra.mxu1 %v9650_v58 }
 0xb52   : > { %8967 = vmatmul.mubr.msk.bf16.vlgmr.msra.gmra.mxu0 %vm13178_vm4, %v9639_v63  ;;  %7592 = vmatprep.subr.bf16.mxu1 %v9658_v35 }
 0xb53   : > { %8987 = vmatpush3.bf16.msra.mxu0 %v7185_v39  ;;  %8970 = vmatprep.mubr.msk.bf16.mxu0 %vm13179_vm5, %v9642_v44 }
 0xb54   : > { %8988 = vmatprep.subr.bf16.mxu0 %v7184_v33 }
 0xb55   : > { %7593 = vmatpush1.bf16.msra.mxu1 %v9656_v59 }
 0xb56   : > { %7594 = vmatprep.subr.bf16.mxu1 %v9664_v29 }
 0xb57   : > { %8989 = vmatpush3.bf16.msra.mxu0 %v7184_v33 }
 0xb58   : > { %8983 = vmatmul.mubr.msk.bf16.gmra.mxu1 %vm13180_vm11, %v9645_v45  ;;  %7663 = vmatprep.subr.bf16.mxu0 %v9655_v53 }
 0xb59   : > { %7622 = vmatprep.mubr.bf16.mxu1 %v13139_v17  ;;  %7595 = vmatpush1.bf16.msra.mxu1 %v9662_v0 }
 0xb5a   : > { %8971 = vmatmul.mubr.msk.bf16.gmra.mxu0 %vm13181_vm12, %v9643_v43  ;;  %7596 = vmatprep.subr.bf16.mxu1 %v9670_v52 }
 0xb5b   : > { %8990 = vmatprep.mubr.msk.bf16.mxu0 %vm13182_vm7, %v9646_v51 }
 0xb5d   : > { %7597 = vmatpush1.bf16.msra.mxu1 %v9668_v62 }
 0xb5e   : > { %7598 = vmatprep.subr.bf16.mxu1 %v9676_v47 }
 0xb61   : > { %7599 = vmatpush1.bf16.msra.mxu1 %v9674_v32 }
 0xb62   : > { %8991 = vmatmul.mubr.msk.bf16.vlgmr.msra.gmra.mxu0 %vm13183_vm13, %v9647_v2  ;;  %7600 = vmatprep.subr.bf16.mxu1 %v9682_v26 }
 0xb63   : > { %8994 = vmatprep.mubr.msk.bf16.mxu0 %vm13184_vm9, %v9648_v3  ;;  %7664 = vmatpush1.bf16.msra.mxu0 %v9653_v37  ;;  %vm13190_vm9 = vcmp.lt.s32.totalorder %v10338_v20, 16 }
 0xb64   : > { %7665 = vmatprep.subr.bf16.mxu0 %v9661_v55 }
 0xb65   : > { %7601 = vmatpush1.bf16.msra.mxu1 %v9680_v22 }
 0xb66   : > { %7602 = vmatprep.subr.bf16.mxu1 %v9688_v13 }
 0xb67   : > { %7666 = vmatpush1.bf16.msra.mxu0 %v9659_v25 }
 0xb68   : > { %7667 = vmatprep.subr.bf16.mxu0 %v9667_v54 }
 0xb69   : > { %7603 = vmatpush1.bf16.msra.mxu1 %v9686_v49 }
 0xb6a   : > { %8995 = vmatmul.mubr.msk.bf16.gmra.mxu0 %vm13185_vm15, %v9649_v30  ;;  %7604 = vmatprep.subr.bf16.mxu1 %v9694_v10 }
 0xb6b   : > { %7695 = vmatprep.mubr.bf16.mxu0 %v13139_v17  ;;  %7668 = vmatpush1.bf16.msra.mxu0 %v9665_v1 }
 0xb6c   : > { %7669 = vmatprep.subr.bf16.mxu0 %v9673_v40  ;;  %v12739_v40 = vld [vmem:[%s12979_s22] ss:$0 sm:$0xff] }
 0xb6d   : > { %7605 = vmatpush1.bf16.msra.mxu1 %v9692_v60 }
 0xb6e   : > { %8998 = vmatprep.subr.bf16.mxu1 %v12725_v36 }
 0xb6f   : > { %7670 = vmatpush1.bf16.msra.mxu0 %v9671_v11 }
 0xb70   : > { %7671 = vmatprep.subr.bf16.mxu0 %v9679_v28 }
 0xb73   : > { %7672 = vmatpush1.bf16.msra.mxu0 %v9677_v15 }
 0xb74   : > { %7673 = vmatprep.subr.bf16.mxu0 %v9685_v23 }
 0xb77   : > { %7674 = vmatpush1.bf16.msra.mxu0 %v9683_v9 }
 0xb78   : > { %7675 = vmatprep.subr.bf16.mxu0 %v9691_v46 }
 0xb7b   : > { %7676 = vmatpush1.bf16.msra.mxu0 %v9689_v24 }
 0xb7c   : > { %7677 = vmatprep.subr.bf16.mxu0 %v9697_v8 }
 0xb7f   : > { %7678 = vmatpush1.bf16.msra.mxu0 %v9695_v27 }
 0xc00   : > { %v8956_v16 = vpop.f32.mrf.mxu1 }
 0xc02   : > { %v8944_v19 = vpop.f32.mrf.mxu0  ;;  %v6912_v4 = vpop.f32.mrf.mxu1 }
 0xc03   : > { %v6921_v55 = vadd.f32 %v8956_v16, %v8944_v19 }
 0xc04   : > { %v6815_v56 = vpop.f32.mrf.mxu0  ;;  %v8957_v7 = vpop.f32.mrf.mxu1 }
 0xc05   : > { %v6913_v2 = vadd.f32 %v6912_v4, %v6815_v56 }
 0xc06   : > { %v8945_v6 = vpop.f32.mrf.mxu0  ;;  %v6915_v50 = vpop.f32.mrf.mxu1 }
 0xc07   : > { %v6924_v53 = vadd.f32 %v8957_v7, %v8945_v6 }
 0xc08   : > { %v6818_v14 = vpop.f32.mrf.mxu0  ;;  %v12728_v48 = vpop.f32.mrf.mxu1 }
 0xc09   : > { %v6916_v59 = vadd.f32 %v6915_v50, %v6818_v14 }
 0xc0a   : > { %v12730_v12 = vpop.f32.mrf.mxu0  ;;  %v6928_v57 = vpop.f32.mrf.mxu1 }
 0xc0c   : > { %v6831_v42 = vpop.f32.mrf.mxu0  ;;  %v8961_v61 = vpop.f32.mrf.mxu1 }
 0xc0d   : > { %v6929_v24 = vadd.f32 %v6928_v57, %v6831_v42 }
 0xc0e   : > { %v8949_v41 = vpop.f32.mrf.mxu0  ;;  %v6931_v18 = vpop.f32.mrf.mxu1 }
 0xc10   : > { %v6834_v21 = vpop.f32.mrf.mxu0  ;;  %v8980_v34 = vpop.f32.mrf.mxu1 }
 0xc11   : > { %v6932_v26 = vadd.f32 %v6931_v18, %v6834_v21  ;;  %v9699_v21 = vld [vmem:[%s12980_s23 + $0x100] ss:$20 sps:$4 sm:$0xff]  }
 0xc12   : > { %v8968_v39 = vpop.f32.mrf.mxu0  ;;  %v7136_v5 = vpop.f32.mrf.mxu1 }
 0xc13   : > { %v7053_v52 = vadd.f32 %v8968_v39, %v6921_v55 }
 0xc14   : > { %v7020_v63 = vpop.f32.mrf.mxu0  ;;  %v8981_v45 = vpop.f32.mrf.mxu1 }
 0xc15   : > { %v7051_v58 = vadd.f32 %v7020_v63, %v6913_v2  ;;  %v7169_v9 = vadd.f32 %v8980_v34, %v7053_v52  ;;  %v6940_v34 = vadd.f32 %v8961_v61, %v8949_v41  ;;  %v9700_v61 = vld [vmem:[%s12980_s23 + $0xd8] ss:$20 sps:$4 sm:$0xff]  }
 0xc16   : > { %v8969_v44 = vpop.f32.mrf.mxu0  ;;  %v7139_v3 = vpop.f32.mrf.mxu1 }
 0xc17   : > { %v7167_v25 = vadd.f32 %v7136_v5, %v7051_v58  ;;  %v7054_v0 = vadd.f32 %v8969_v44, %v6924_v53  ;;  %v6937_v44 = vadd.f32 %v12728_v48, %v12730_v12  ;;  %v9701_v58 = vld [vmem:[%s12980_s23 + $0xb0] ss:$20 sps:$4 sm:$0xff]  }
 0xc18   : > { %v7023_v33 = vpop.f32.mrf.mxu0  ;;  %v12734_v37 = vpop.f32.mrf.mxu1 }
 0xc19   : > { %v7052_v29 = vadd.f32 %v7023_v33, %v6916_v59  ;;  %v7170_v32 = vadd.f32 %v8981_v45, %v7054_v0 }
 0xc1a   : > { %v12732_v43 = vpop.f32.mrf.mxu0  ;;  %v7152_v54 = vpop.f32.mrf.mxu1 }
 0xc1b   : > { %v7168_v47 = vadd.f32 %v7139_v3, %v7052_v29  ;;  %v7057_v41 = vadd.f32 %v12732_v43, %v6937_v44 }
 0xc1c   : > { %v7036_v51 = vpop.f32.mrf.mxu0  ;;  %v8985_v22 = vpop.f32.mrf.mxu1 }
 0xc1d   : > { %v7055_v19 = vadd.f32 %v7036_v51, %v6929_v24 }
 0xc1e   : > { %v8973_v30 = vpop.f32.mrf.mxu0  ;;  %v7155_v16 = vpop.f32.mrf.mxu1 }
 0xc1f   : > { %v7171_v39 = vadd.f32 %v7152_v54, %v7055_v19  ;;  %v7058_v33 = vadd.f32 %v8973_v30, %v6940_v34  ;;  %v9703_v54 = vld [vmem:[%s12980_s23 + $0x60] ss:$20 sps:$4 sm:$0xff]  }
 0xc20   : > { %v7039_v38 = vpop.f32.mrf.mxu0 }
 0xc21   : > { %v7056_v46 = vadd.f32 %v7039_v38, %v6932_v26  ;;  %v7174_v12 = vadd.f32 %v8985_v22, %v7058_v33  ;;  %v7173_v38 = vadd.f32 %v12734_v37, %v7057_v41  ;;  %v13186_v41 = vld [vmem:[#allocation4_spill] sm:$0xff] }
 0xc22   : > { %v8992_v35 = vpop.f32.mrf.mxu0  ;;  %vm13187_vm7 = vcmp.ge.s32.totalorder %v13186_v41, 0  ;;  %v13197_v41 = vld [vmem:[#allocation12_spill] sm:$0xff] }
 0xc23   : > { %v7285_v60 = vadd.f32 %v8992_v35, %v7169_v9  ;;  %v7172_v6 = vadd.f32 %v7155_v16, %v7056_v46 }
 0xc24   : > { %v7252_v1 = vpop.f32.mrf.mxu0 }
 0xc25   : > { %v7283_v62 = vadd.f32 %v7252_v1, %v7167_v25  ;;  %v7300_v50 = vadd.f32 %v12739_v40, %v7285_v60  ;;  %v9702_v25 = vld [vmem:[%s12980_s23 + $0x88] ss:$20 sps:$4 sm:$0xff]  }
 0xc26   : > { %v8993_v11 = vpop.f32.mrf.mxu0 }
 0xc27   : > { %v7298_v15 = vadd.f32 %v12739_v40, %v7283_v62  ;;  %v7286_v23 = vadd.f32 %v8993_v11, %v7170_v32  ;;  %v7316_v45 = vmul.f32 0.01, %v7300_v50  ;;  %vm7308_vm3 = vcmp.ge.f32.partialorder %v7300_v50, 0.0  ;;  %v9704_v11 = vld [vmem:[%s12980_s23 + $0x38] ss:$20 sps:$4 sm:$0xff]  }
 0xc28   : > { %v7255_v28 = vpop.f32.mrf.mxu0 }
 0xc29   : > { %v7284_v49 = vadd.f32 %v7255_v28, %v7168_v47  ;;  %v7314_v10 = vmul.f32 0.01, %v7298_v15  ;;  %vm7306_vm8 = vcmp.ge.f32.partialorder %v7298_v15, 0.0  ;;  %v7301_v4 = vadd.f32 %v12739_v40, %v7286_v23 }
 0xc2a   : > { %v8996_v13 = vpop.f32.mrf.mxu0  ;;  %v7324_v3 = vsel %vm7308_vm3, %v7300_v50, %v7316_v45 }
 0xc2b   : > { %v7299_v27 = vadd.f32 %v12739_v40, %v7284_v49  ;;  %v7322_v14 = vsel %vm7306_vm8, %v7298_v15, %v7314_v10  ;;  %v7317_v63 = vmul.f32 0.01, %v7301_v4  ;;  %vm7309_vm1 = vcmp.ge.f32.partialorder %v7301_v4, 0.0  ;;  %v9705_v15 = vld [vmem:[%s12980_s23 + $0x10] ss:$20 sps:$4 sm:$0xff]  }
 0xc2c   : > { %v7268_v8 = vpop.f32.mrf.mxu0  ;;  %v7289_v43 = vadd.f32 %v8996_v13, %v7173_v38 }
 0xc2d   : > { %vm7307_vm6 = vcmp.ge.f32.partialorder %v7299_v27, 0.0  ;;  %v7315_v56 = vmul.f32 0.01, %v7299_v27  ;;  %v7287_v51 = vadd.f32 %v7268_v8, %v7171_v39  ;;  %v7325_v2 = vsel %vm7309_vm1, %v7301_v4, %v7317_v63 }
 0xc2e   : > { %v8997_v7 = vpop.f32.mrf.mxu0  ;;  %v7304_v0 = vadd.f32 %v12739_v40, %v7289_v43  ;;  %vm13198_vm1 = vcmp.ge.s32.totalorder %v13197_v41, 0 }
 0xc2f   : > { %v7323_v18 = vsel %vm7307_vm6, %v7299_v27, %v7315_v56  ;;  %v7302_v30 = vadd.f32 %v12739_v40, %v7287_v51  ;;  %v7290_v53 = vadd.f32 %v8997_v7, %v7174_v12 }
 0xc30   : > { %v7271_v57 = vpop.f32.mrf.mxu0  ;;  %v12745_v42 = vpack.c.bf16 %v7323_v18, %v7322_v14  ;;  %v7320_v52 = vmul.f32 0.01, %v7304_v0  ;;  %vm7312_vm12 = vcmp.ge.f32.partialorder %v7304_v0, 0.0 }
 0xc31   : > { %v7288_v5 = vadd.f32 %v7271_v57, %v7172_v6  ;;  %v7318_v35 = vmul.f32 0.01, %v7302_v30  ;;  %vm7310_vm5 = vcmp.ge.f32.partialorder %v7302_v30, 0.0  ;;  %v7305_v37 = vadd.f32 %v12739_v40, %v7290_v53 }
 0xc32   : > { %7623 = vmatmul.mubr.bf16.vlgmr.msra.gmra.mxu1 %v12745_v42  ;;  %7696 = vmatmul.mubr.bf16.vlgmr.msra.gmra.mxu0 %v12745_v42  ;;  %v7328_v32 = vsel %vm7312_vm12, %v7304_v0, %v7320_v52  ;;  %v13188_v0 = vld [vmem:[#allocation8_spill] sm:$0xff] }
 0xc33   : > { %8999 = vmatpush3.bf16.msra.mxu1 %v12725_v36  ;;  %7632 = vmatprep.mubr.bf16.mxu1 %v13139_v17  ;;  %v7303_v48 = vadd.f32 %v12739_v40, %v7288_v5  ;;  %v7331_v36 = vpack.c.bf16 %v7325_v2, %v7324_v3  ;;  %v7326_v29 = vsel %vm7310_vm5, %v7302_v30, %v7318_v35  ;;  %v7321_v62 = vmul.f32 0.01, %v7305_v37 }
 0xc34   : > { %9000 = vmatprep.subr.bf16.mxu1 %v9699_v21  ;;  %7705 = vmatprep.mubr.bf16.mxu0 %v13139_v17  ;;  %vm7313_vm11 = vcmp.ge.f32.partialorder %v7305_v37, 0.0  ;;  %vm13189_vm13 = vcmp.ge.s32.totalorder %v13188_v0, 0 }
 0xc35   : > { %v7319_v59 = vmul.f32 0.01, %v7303_v48  ;;  %vm7311_vm4 = vcmp.ge.f32.partialorder %v7303_v48, 0.0  ;;  %v7329_v40 = vsel %vm7313_vm11, %v7305_v37, %v7321_v62 }
 0xc36   : > { %v7333_v47 = vpack.c.bf16 %v7329_v40, %v7328_v32 }
 0xc37   : > { %9001 = vmatpush3.bf16.msra.mxu1 %v9699_v21  ;;  %v7327_v55 = vsel %vm7311_vm4, %v7303_v48, %v7319_v59 }
 0xc38   : > { %9002 = vmatprep.subr.bf16.mxu1 %v9700_v61  ;;  %v7332_v1 = vpack.c.bf16 %v7327_v55, %v7326_v29 }
 0xc3a   : > { %7633 = vmatmul.mubr.bf16.gmra.mxu1 %v7331_v36  ;;  %7706 = vmatmul.mubr.bf16.gmra.mxu0 %v7331_v36 }
 0xc3b   : > { %9003 = vmatpush3.bf16.msra.mxu1 %v9700_v61  ;;  %7642 = vmatprep.mubr.bf16.mxu1 %v13139_v17 }
 0xc3c   : > { %9004 = vmatprep.subr.bf16.mxu1 %v9701_v58  ;;  %7715 = vmatprep.mubr.bf16.mxu0 %v13139_v17 }
 0xc3f   : > { %9005 = vmatpush3.bf16.msra.mxu1 %v9701_v58 }
 0xc40   : > { %9006 = vmatprep.subr.bf16.mxu1 %v9702_v25 }
 0xc42   : > { %7643 = vmatmul.mubr.bf16.gmra.mxu1 %v7332_v1  ;;  %7716 = vmatmul.mubr.bf16.gmra.mxu0 %v7332_v1 }
 0xc43   : > { %9007 = vmatpush3.bf16.msra.mxu1 %v9702_v25  ;;  %7652 = vmatprep.mubr.bf16.mxu1 %v13139_v17 }
 0xc44   : > { %9008 = vmatprep.subr.bf16.mxu1 %v9703_v54  ;;  %7725 = vmatprep.mubr.bf16.mxu0 %v13139_v17 }
 0xc47   : > { %9009 = vmatpush3.bf16.msra.mxu1 %v9703_v54 }
 0xc48   : > { %9010 = vmatprep.subr.bf16.mxu1 %v9704_v11 }
 0xc4a   : > { %7653 = vmatmul.mubr.bf16.gmra.mxu1 %v7333_v47  ;;  %7726 = vmatmul.mubr.bf16.gmra.mxu0 %v7333_v47 }
 0xc4b   : > { %9011 = vmatpush3.bf16.msra.mxu1 %v9704_v11  ;;  %9014 = vmatprep.mubr.bf16.mxu1 %v12745_v42 }
 0xc4c   : > { %9012 = vmatprep.subr.bf16.mxu1 %v9705_v15 }
 0xc4f   : > { %9013 = vmatpush3.bf16.msra.mxu1 %v9705_v15 }
 0xc52   : > { %9015 = vmatmul.mubr.bf16.vlgmr.msra.gmra.mxu1 %v7331_v36 }
 0xc53   : > { %9018 = vmatprep.mubr.bf16.mxu1 %v7332_v1 }
 0xc5a   : > { %9019 = vmatmul.mubr.bf16.gmra.mxu1 %v7333_v47  ;;  %v13191_v47 = vld [vmem:[#allocation9_spill] sm:$0xff] }
 0xc5b   : > { %vm13192_vm15 = vcmp.ge.s32.totalorder %v13191_v47, 0 }
 0xcf2   : > { %v12786_v17 = vpop.f32.mrf.mxu1  ;;  %v12788_v28 = vpop.f32.mrf.mxu0 }
 0xcf3   : > { %v7801_v18 = vrot.slane %v12786_v17, 6 }
 0xcf4   : > { %v12790_v22 = vpop.f32.mrf.mxu1  ;;  %v12792_v26 = vpop.f32.mrf.mxu0 }
 0xcf5   : > { %v7833_v51 = vrot.slane %v12790_v22, 7  ;;  %v7865_v58 = vrot.slane %v12792_v26, 1 }
 0xcf6   : > { %v7628_v9 = vpop.f32.mrf.mxu1  ;;  %v7701_v23 = vpop.f32.mrf.mxu0 }
 0xcf7   : > { %v7802_v6 = vrot.slane %v7628_v9, 6 }
 0xcf8   : > { %v7630_v49 = vpop.f32.mrf.mxu1  ;;  %v7703_v13 = vpop.f32.mrf.mxu0 }
 0xcf9   : > { %v7815_v39 = vsel %vm1744_vm0, %v7801_v18, %v7802_v6  ;;  %v7834_v63 = vrot.slane %v7630_v49, 7  ;;  %v7866_v61 = vrot.slane %v7703_v13, 1 }
 0xcfa   : > { %v7634_v24 = vpop.f32.mrf.mxu1  ;;  %v7707_v46 = vpop.f32.mrf.mxu0  ;;  %v7826_v12 = vadd.f32 %v7815_v39, %v7701_v23 }
 0xcfb   : > { %v7803_v4 = vrot.slane %v7634_v24, 6  ;;  %v7847_v38 = vsel %vm1841_vm2, %v7833_v51, %v7834_v63  ;;  %v7879_v11 = vsel %vm1938_vm10, %v7865_v58, %v7866_v61 }
 0xcfc   : > { %v7636_v60 = vpop.f32.mrf.mxu1  ;;  %v7709_v10 = vpop.f32.mrf.mxu0  ;;  %v7858_v52 = vadd.f32 %v7847_v38, %v7826_v12 }
 0xcfd   : > { %v7814_v57 = vsel %vm1744_vm0, %v7802_v6, %v7803_v4  ;;  %v7835_v42 = vrot.slane %v7636_v60, 7  ;;  %v7867_v5 = vrot.slane %v7709_v10, 1 }
 0xcfe   : > { %v7638_v27 = vpop.f32.mrf.mxu1  ;;  %v7711_v8 = vpop.f32.mrf.mxu0  ;;  %v7819_v2 = vsel %vm13187_vm7, %v7814_v57, 0.0 }
 0xcff   : > { %v7804_v48 = vrot.slane %v7638_v27, 6  ;;  %v7846_v3 = vsel %vm1841_vm2, %v7834_v63, %v7835_v42  ;;  %v7878_v53 = vsel %vm1938_vm10, %v7866_v61, %v7867_v5  ;;  %v7827_v59 = vadd.f32 %v7819_v2, %v7707_v46 }
 0xd00   : > { %v7640_v16 = vpop.f32.mrf.mxu1  ;;  %v12794_v19 = vpop.f32.mrf.mxu0  ;;  %v7851_v29 = vsel %vm13189_vm13, %v7846_v3, 0.0  ;;  %v7882_v40 = vsel %vm13190_vm9, %v7878_v53, 0.0 }
 0xd01   : > { %v7836_v43 = vrot.slane %v7640_v16, 7  ;;  %v7813_v1 = vsel %vm1744_vm0, %v7803_v4, %v7804_v48  ;;  %v7868_v54 = vrot.slane %v12794_v19, 1  ;;  %v7859_v49 = vadd.f32 %v7851_v29, %v7827_v59  ;;  %v13193_v4 = vld [vmem:[#allocation10_spill] sm:$0xff] }
 0xd02   : > { %v12796_v56 = vpop.f32.mrf.mxu1  ;;  %v7717_v7 = vpop.f32.mrf.mxu0  ;;  %v7828_v13 = vadd.f32 %v7813_v1, %v7711_v8  ;;  %v7890_v8 = vadd.f32 %v7882_v40, %v7858_v52  ;;  %vm13194_vm8 = vcmp.ge.s32.totalorder %v13193_v4, 0  ;;  %v13201_v59 = vld [vmem:[#allocation14_spill] sm:$0xff] }
 0xd03   : > { %v7805_v44 = vrot.slane %v12796_v56, 6  ;;  %v7845_v24 = vsel %vm1841_vm2, %v7835_v42, %v7836_v43  ;;  %v7877_v60 = vsel %vm1938_vm10, %v7867_v5, %v7868_v54  ;;  %v13195_v42 = vld [vmem:[#allocation13_spill] sm:$0xff]  ;;  %vm13202_vm4 = vcmp.lt.s32.totalorder %v13201_v59, 16  ;;  %v13214_v59 = vld [vmem:[#allocation23_spill] sm:$0xff] }
 0xd04   : > { %v12798_v50 = vpop.f32.mrf.mxu1  ;;  %v12800_v14 = vpop.f32.mrf.mxu0  ;;  %vm13196_vm6 = vcmp.ge.s32.totalorder %v13195_v42, 0  ;;  %v7860_v61 = vadd.f32 %v7845_v24, %v7828_v13  ;;  %v13210_v42 = vld [vmem:[#allocation16_spill] sm:$0xff] }
 0xd05   : > { %v7812_v35 = vsel %vm1744_vm0, %v7804_v48, %v7805_v44  ;;  %v7837_v25 = vrot.slane %v12798_v50, 7  ;;  %v7869_v17 = vrot.slane %v12800_v14, 1  ;;  %vm13211_vm11 = vcmp.lt.s32.totalorder %v13210_v42, 16  ;;  %v13212_v14 = vld [vmem:[#allocation21_spill] sm:$0xff] }
 0xd06   : > { %v12805_v21 = vpop.f32.mrf.mxu1  ;;  %v12807_v34 = vpop.f32.mrf.mxu0  ;;  %v7821_v15 = vsel %vm13192_vm15, %v7812_v35, 0.0  ;;  %vm13213_vm12 = vcmp.lt.s32.totalorder %v13212_v14, 16 }
 0xd07   : > { %v7806_v22 = vrot.slane %v12805_v21, 6  ;;  %v7844_v20 = vsel %vm1841_vm2, %v7836_v43, %v7837_v25  ;;  %v7829_v19 = vadd.f32 %v7821_v15, %v7717_v7  ;;  %v7876_v39 = vsel %vm1938_vm10, %v7868_v54, %v7869_v17 }
 0xd08   : > { %v12812_v33 = vpop.f32.mrf.mxu1  ;;  %v12814_v45 = vpop.f32.mrf.mxu0  ;;  %v7853_v21 = vsel %vm13196_vm6, %v7844_v20, 0.0  ;;  %v7891_v7 = vadd.f32 %v7877_v60, %v7859_v49  ;;  %v7884_v43 = vsel %vm13202_vm4, %v7876_v39, 0.0 }
 0xd09   : > { %v7838_v63 = vrot.slane %v12812_v33, 7  ;;  %v7811_v3 = vsel %vm1744_vm0, %v7805_v44, %v7806_v22  ;;  %v13199_v33 = vld [vmem:[#allocation11_spill] sm:$0xff]  ;;  %v7861_v53 = vadd.f32 %v7853_v21, %v7829_v19  ;;  %v7870_v52 = vrot.slane %v12814_v45, 1 }
 0xd0a   : > { %v7654_v30 = vpop.f32.mrf.mxu1  ;;  %v7727_v36 = vpop.f32.mrf.mxu0  ;;  %vm13200_vm3 = vcmp.ge.s32.totalorder %v13199_v33, 0  ;;  %v7830_v54 = vadd.f32 %v7811_v3, %v12807_v34  ;;  %v8599_v34 = vld [vmem:[%s12981_s24] ss:$0 sm:$0xff] }
 0xd0b   : > { %v7807_v62 = vrot.slane %v7654_v30, 6  ;;  %v7843_v45 = vsel %vm1841_vm2, %v7837_v25, %v7838_v63 }
 0xd0c   : > { %v7656_v37 = vpop.f32.mrf.mxu1  ;;  %v12829_v55 = vpop.f32.mrf.mxu0  ;;  %v7862_v41 = vadd.f32 %v7843_v45, %v7830_v54 }
 0xd0d   : > { %v7810_v10 = vsel %vm1744_vm0, %v7806_v22, %v7807_v62  ;;  %v7839_v27 = vrot.slane %v7656_v37, 7  ;;  %v7871_v29 = vrot.slane %v12829_v55, 1 }
 0xd0e   : > { %v7658_v32 = vpop.f32.mrf.mxu1  ;;  %v7731_v23 = vpop.f32.mrf.mxu0  ;;  %v7823_v2 = vsel %vm13198_vm1, %v7810_v10, 0.0 }
 0xd0f   : > { %v7808_v9 = vrot.slane %v7658_v32, 6  ;;  %v7842_v30 = vsel %vm1841_vm2, %v7838_v63, %v7839_v27  ;;  %v7831_v0 = vadd.f32 %v7823_v2, %v7727_v36  ;;  %v7874_v20 = vsel %vm1938_vm10, %v7870_v52, %v7871_v29 }
 0xd10   : > { %v7660_v46 = vpop.f32.mrf.mxu1  ;;  %v7886_v21 = vsel %vm13211_vm11, %v7874_v20, 0.0 }
 0xd11   : > { %v7816_v16 = vsel %vm1744_vm0, %v7808_v9, %v7801_v18  ;;  %v7840_v6 = vrot.slane %v7660_v46, 7  ;;  %v7733_v18 = vpop.f32.mrf.mxu0 }
 0xd12   : > { %v7817_v56 = vsel %vm13194_vm8, %v7816_v16, 0.0  ;;  %v9016_v57 = vpop.f32.mrf.mxu1  ;;  %v13208_v16 = vld [vmem:[#allocation17_spill] sm:$0xff] }
 0xd13   : > { %v7825_v5 = vadd.f32 %v7817_v56, %v12788_v28  ;;  %v7848_v48 = vsel %vm1841_vm2, %v7840_v6, %v7833_v51  ;;  %v7809_v28 = vsel %vm1744_vm0, %v7807_v62, %v7808_v9  ;;  %v7872_v51 = vrot.slane %v7733_v18, 1  ;;  %v13203_v62 = vld [vmem:[#allocation15_spill] sm:$0xff] }
 0xd14   : > { %v12872_v12 = vpop.f32.mrf.mxu1  ;;  %v7849_v38 = vsel %vm13200_vm3, %v7848_v48, 0.0  ;;  %v7899_v44 = vrot.slane %v9016_v57, 2  ;;  %vm13204_vm0 = vcmp.ge.s32.totalorder %v13203_v62, 0  ;;  %v7832_v32 = vadd.f32 %v7809_v28, %v7731_v23 }
 0xd15   : > { %v7857_v35 = vadd.f32 %v7849_v38, %v7825_v5  ;;  %v7855_v40 = vsel %vm13204_vm0, %v7842_v30, 0.0  ;;  %v7841_v15 = vsel %vm1841_vm2, %v7839_v27, %v7840_v6  ;;  %v7897_v22 = vrot.slane %v12872_v12, 2 }
 0xd16   : > { %v9017_v37 = vpop.f32.mrf.mxu1  ;;  %v7880_v9 = vsel %vm1938_vm10, %v7872_v51, %v7865_v58  ;;  %v7863_v24 = vadd.f32 %v7855_v40, %v7831_v0  ;;  %v7864_v58 = vadd.f32 %v7841_v15, %v7832_v32  ;;  %v7873_v27 = vsel %vm1938_vm10, %v7871_v29, %v7872_v51 }
 0xd17   : > { %v7900_v1 = vrot.slane %v9017_v37, 2  ;;  %v7889_v49 = vadd.f32 %v7879_v11, %v7857_v35  ;;  %v13206_v11 = vld [vmem:[#allocation20_spill] sm:$0xff]  ;;  %vm13209_vm5 = vcmp.lt.s32.totalorder %v13208_v16, 16  ;;  %v7892_v6 = vadd.f32 %v7884_v43, %v7860_v61 }
 0xd18   : > { %v7773_v47 = vpop.f32.mrf.mxu1  ;;  %vm13207_vm2 = vcmp.lt.s32.totalorder %v13206_v11, 16  ;;  %v7888_v19 = vsel %vm13209_vm5, %v7880_v9, 0.0  ;;  %v7875_v57 = vsel %vm1938_vm10, %v7869_v17, %v7870_v52  ;;  %v7895_v61 = vadd.f32 %v7873_v27, %v7863_v24 }
 0xd19   : > { %v7909_v36 = vsel %vm2035_vm14, %v7899_v44, %v7900_v1  ;;  %v7898_v55 = vrot.slane %v7773_v47, 2  ;;  %v7896_v2 = vadd.f32 %v7888_v19, %v7864_v58  ;;  %v7893_v33 = vadd.f32 %v7875_v57, %v7861_v53 }
 0xd1a   : > { %v7923_v23 = vadd.f32 %v7909_v36, %v7891_v7  ;;  %v9020_v13 = vpop.f32.mrf.mxu1  ;;  %v7894_v38 = vadd.f32 %v7886_v21, %v7862_v41  ;;  %vm13215_vm10 = vcmp.lt.s32.totalorder %v13214_v59, 16 }
 0xd1b   : > { %v7910_v26 = vsel %vm2035_vm14, %v7898_v55, %v7899_v44  ;;  %v7911_v50 = vsel %vm2035_vm14, %v7897_v22, %v7898_v55  ;;  %v7903_v18 = vrot.slane %v9020_v13, 2 }
 0xd1c   : > { %v7938_v25 = vadd.f32 %v8599_v34, %v7923_v23  ;;  %v7914_v46 = vsel %vm13207_vm2, %v7910_v26, 0.0  ;;  %v7921_v60 = vadd.f32 %v7911_v50, %v7889_v49  ;;  %v7786_v10 = vpop.f32.mrf.mxu1 }
 0xd1d   : > { %v7922_v4 = vadd.f32 %v7914_v46, %v7890_v8  ;;  %v7901_v56 = vrot.slane %v7786_v10, 2 }
 0xd1e   : > { %7946 = vst [vmem:[%s12912_s9 + $0x10] sm:$0xff] %v7938_v25  ;;  %v7936_v39 = vadd.f32 %v8599_v34, %v7921_v60  ;;  %v9021_v63 = vpop.f32.mrf.mxu1 }
 0xd1f   : > { %v7937_v5 = vadd.f32 %v8599_v34, %v7922_v4  ;;  %v7908_v7 = vsel %vm2035_vm14, %v7900_v1, %v7901_v56  ;;  %v7904_v8 = vrot.slane %v9021_v63, 2  ;;  %v13216_v1 = vld [vmem:[#allocation22_spill] sm:$0xff] }
 0xd20   : > { %7944 = vst [vmem:[%s12912_s9] sm:$0xff] %v7936_v39  ;;  %v7916_v48 = vsel %vm13213_vm12, %v7908_v7, 0.0  ;;  %v7789_v17 = vpop.f32.mrf.mxu1  ;;  %vm13217_vm7 = vcmp.lt.s32.totalorder %v13216_v1, 16 }
 0xd21   : > { %7945 = vst [vmem:[%s12912_s9 + $0x8] sm:$0xff] %v7937_v5  ;;  %v7924_v12 = vadd.f32 %v7916_v48, %v7892_v6  ;;  %v7905_v3 = vsel %vm2035_vm14, %v7903_v18, %v7904_v8  ;;  %v7912_v30 = vsel %vm2035_vm14, %v7904_v8, %v7897_v22  ;;  %v7902_v28 = vrot.slane %v7789_v17, 2 }
 0xd22   : > { %v7920_v43 = vsel %vm13215_vm10, %v7912_v30, 0.0  ;;  %v7927_v35 = vadd.f32 %v7905_v3, %v7895_v61 }
 0xd23   : > { %v7939_v51 = vadd.f32 %v8599_v34, %v7924_v12  ;;  %v7928_v37 = vadd.f32 %v7920_v43, %v7896_v2  ;;  %v7906_v0 = vsel %vm2035_vm14, %v7902_v28, %v7903_v18  ;;  %v7907_v29 = vsel %vm2035_vm14, %v7901_v56, %v7902_v28 }
 0xd24   : > { %v7942_v44 = vadd.f32 %v8599_v34, %v7927_v35  ;;  %v7918_v53 = vsel %vm13217_vm7, %v7906_v0, 0.0  ;;  %v7925_v54 = vadd.f32 %v7907_v29, %v7893_v33 }
 0xd25   : > { %7947 = vst [vmem:[%s12912_s9 + $0x18] sm:$0xff] %v7939_v51  ;;  %v7943_v52 = vadd.f32 %v8599_v34, %v7928_v37  ;;  %v7926_v62 = vadd.f32 %v7918_v53, %v7894_v38 }
 0xd26   : > { %7950 = vst [vmem:[%s12912_s9 + $0x30] sm:$0xff] %v7942_v44  ;;  %v7940_v40 = vadd.f32 %v8599_v34, %v7925_v54 }
 0xd27   : > { %7951 = vst [vmem:[%s12912_s9 + $0x38] sm:$0xff] %v7943_v52  ;;  %v7941_v32 = vadd.f32 %v8599_v34, %v7926_v62 }
 0xd28   : > { %7948 = vst [vmem:[%s12912_s9 + $0x20] sm:$0xff] %v7940_v40 }
 0xd29   : > { %7949 = vst [vmem:[%s12912_s9 + $0x28] sm:$0xff] %v7941_v32 }
 0xd2a PF: > { %s35_s29 = sadd.s32 1, %s9712_s29  }
 0xd2b   : > { %p32_p4 = scmp.ge.s32.totalorder %s35_s29, 4  }
 0xd2d   :  { %34 = sbr.rel (!%p32_p4) target bundleno = 11 (0xb), region = 158 }

</bundles_post_ra>
